<compile_context>
chip_gen: v6e
topology: v6e:2x2x1
jax: 0.10.0
libtpu: 0.0.40
codegen_flags: <defaults>
</compile_context>

<pallas_src>
import numpy as np
import jax
import jax.numpy as jnp
from jax.experimental import pallas as pl
from jax.experimental.pallas import tpu as pltpu


# ----------------------------------------------------------------------------
# Fused kernel: conv1(3x3)+ReLU -> conv2(3x3)+ReLU -> conv3(1x1) -> bilinear up
# grid = (batch, output-row-block).  Conv stack + column interp run only at
# r == 0 per image; every step emits one (TR, OW) row block per class.
# ----------------------------------------------------------------------------
def _fused_cnn_kernel(x_ref, masks_ref, w1_ref, b1_ref, w2_ref, b2_ref,
                      w3_ref, b3_ref, awt_ref, ah_ref, o_ref,
                      p1_ref, p2_ref, h1pad_ref, ymat_ref, t_ref):
    """
    x_ref:     (1, C0, GL+HW+GL)  channel-major input, flat spatial on lanes,
                                  zero guard bands of GL lanes on both sides
    masks_ref: (9, HW)            per-tap validity mask (1 inside, 0 where the
                                  3x3 "same" padding would read a zero)
    w1_ref:    (C1, 9*C0)         conv1 weight, (tap-major, cin-minor) columns
    b1_ref:    (C1, 1)
    w2_ref:    (C2, 9*C1)         conv2 weight
    b2_ref:    (C2, 1)
    w3_ref:    (K, C2)            1x1 conv weight
    b3_ref:    (K, 1)
    awt_ref:   (W, OW)            column (width) interpolation matrix, transposed
    ah_ref:    (TR, H)            row (height) interpolation, this row block
    o_ref:     (1, K, TR, OW)     NCHW output row block
    scratch:   p1 (9*C0, HW), p2 (9*C1, HW), h1pad (C1, GL+HW+GL),
               ymat (K, H, W), t (H, K*OW)
    """
    C0 = p1_ref.shape[0] // 9
    C1 = w1_ref.shape[0]
    K = w3_ref.shape[0]
    W = awt_ref.shape[0]
    OW = awt_ref.shape[1]
    HW = masks_ref.shape[1]
    H = HW // W
    GL = (x_ref.shape[2] - HW) // 2
    taps = [(dy, dx) for dy in (-1, 0, 1) for dx in (-1, 0, 1)]

    r = pl.program_id(1)

    # ---- heavy part: conv stack + column interp, once per image (r == 0) ----
    @pl.when(r == 0)
    def _conv_stack():
        masks = masks_ref[...]                                     # (9, HW)

        # conv1: 9 shifted tap slabs -> p1 scratch (full-lane, sublane-aligned
        # stores), then ONE MXU GEMM over the 9*C0 contraction.
        for k, (dy, dx) in enumerate(taps):
            off = dy * W + dx
            v = x_ref[0, :, GL + off:GL + off + HW]                # (C0, HW)
            p1_ref[k * C0:(k + 1) * C0, :] = jnp.where(
                masks[k:k + 1, :] > 0.0, v, 0.0)
        h1 = jnp.dot(w1_ref[...], p1_ref[...],
                     preferred_element_type=jnp.float32)
        h1 = jnp.maximum(h1 + b1_ref[...], 0.0)                    # (C1, HW)

        # conv1 activation stays in VMEM, stored once at a lane-aligned offset;
        # guard bands make every conv2 tap a plain shifted slice read.
        h1pad_ref[:, GL:GL + HW] = h1

        # conv2: 9 shifted tap slabs -> p2 scratch, ONE GEMM (contraction 9*C1).
        for k, (dy, dx) in enumerate(taps):
            off = dy * W + dx
            v = h1pad_ref[:, GL + off:GL + off + HW]               # (C1, HW)
            p2_ref[k * C1:(k + 1) * C1, :] = jnp.where(
                masks[k:k + 1, :] > 0.0, v, 0.0)
        h2 = jnp.dot(w2_ref[...], p2_ref[...],
                     preferred_element_type=jnp.float32)
        h2 = jnp.maximum(h2 + b2_ref[...], 0.0)                    # (C2, HW)

        # conv3 (1x1), lane-dense: (K, C2) @ (C2, HW).  The bias rides through
        # the upsample (rows of ah / columns of awt sum to 1, no nonlinearity).
        y = jnp.dot(w3_ref[...], h2,
                    preferred_element_type=jnp.float32) + b3_ref[...]   # (K, HW)

        # Unflatten the K*HW result into (K, H, W) via H small aligned-lane
        # slices (once per image), then column-interp both classes into the
        # persistent (H, K*OW) scratch with 512-lane-aligned stores.
        for i in range(H):
            ymat_ref[:, i, :] = y[:, i * W:(i + 1) * W]
        awt = awt_ref[...]
        for c in range(K):
            t_ref[:, c * OW:(c + 1) * OW] = jnp.dot(
                ymat_ref[c], awt, preferred_element_type=jnp.float32)

    # ---- every step: one row-interp GEMM for this TR-row block, lane-dense ----
    chunk = jnp.dot(ah_ref[...], t_ref[...],
                    preferred_element_type=jnp.float32)            # (TR, K*OW)
    for c in range(K):
        o_ref[0, c] = chunk[:, c * OW:(c + 1) * OW]


# ----------------------------------------------------------------------------
# Host helpers
# ----------------------------------------------------------------------------
def _bilinear_matrix(out_size, in_size):
    """(out, in) matrix equal to torch Upsample(mode='bilinear',
    align_corners=False); built with host numpy (static constant)."""
    scale = in_size / out_size
    dst = np.arange(out_size, dtype=np.float64)
    src = np.maximum((dst + 0.5) * scale - 0.5, 0.0)
    i0 = np.minimum(np.floor(src), in_size - 1).astype(np.int64)
    i1 = np.minimum(i0 + 1, in_size - 1)
    frac = (src - i0).astype(np.float32)
    A = np.zeros((out_size, in_size), np.float32)
    A[np.arange(out_size), i0] += 1.0 - frac
    A[np.arange(out_size), i1] += frac
    return A


def _tap_masks(H, W):
    """(9, H*W) validity masks for the 3x3 'same' convolution taps."""
    ii, jj = np.divmod(np.arange(H * W), W)
    masks = np.zeros((9, H * W), np.float32)
    k = 0
    for dy in (-1, 0, 1):
        for dx in (-1, 0, 1):
            ok = (ii + dy >= 0) & (ii + dy < H) & (jj + dx >= 0) & (jj + dx < W)
            masks[k] = ok.astype(np.float32)
            k += 1
    return masks


def simple_cnn_forward(x_nchw, params, out_hw=(512, 512)):
    """x: (N, Cin, H, W) NCHW, params in PyTorch layout -> (N, K, OH, OW)."""
    N, Cin, H, W = x_nchw.shape
    OH, OW = out_hw
    HW = H * W
    GL = 128                                   # lane guard for shifted tap reads
    C0 = max(8, ((Cin + 7) // 8) * 8)          # channel-pad input to sublane mult

    # --- PyTorch -> kernel weight layouts (channel-major GEMMs) ---
    w1t = jnp.transpose(params["conv1.weight"], (0, 2, 3, 1))       # (C1,3,3,Cin)
    C1 = w1t.shape[0]
    w1 = jnp.pad(w1t, ((0, 0), (0, 0), (0, 0), (0, C0 - Cin))).reshape(C1, 9 * C0)
    w2t = jnp.transpose(params["conv2.weight"], (0, 2, 3, 1))       # (C2,3,3,C1)
    C2 = w2t.shape[0]
    w2 = w2t.reshape(C2, 9 * C1)
    K = params["conv3.weight"].shape[0]
    w3 = params["conv3.weight"].reshape(K, C2)
    b1 = params["conv1.bias"].reshape(C1, 1)
    b2 = params["conv2.bias"].reshape(C2, 1)
    b3 = params["conv3.bias"].reshape(K, 1)

    # Input: NCHW -> channel-major flat spatial, channel pad, zero lane guards.
    x = x_nchw.reshape(N, Cin, HW).astype(jnp.float32)
    x = jnp.pad(x, ((0, 0), (0, C0 - Cin), (GL, GL)))               # (N,C0,GL+HW+GL)

    masks = jnp.asarray(_tap_masks(H, W))                           # (9, HW)
    ah = jnp.asarray(_bilinear_matrix(OH, H))                       # (OH, H)
    awt = jnp.asarray(_bilinear_matrix(OW, W).T)                    # (W, OW)

    TR = 256 if OH % 256 == 0 else OH                               # output row tile
    R = OH // TR

    return pl.pallas_call(
        _fused_cnn_kernel,
        out_shape=jax.ShapeDtypeStruct((N, K, OH, OW), jnp.float32),
        grid=(N, R),
        in_specs=[
            pl.BlockSpec((1, C0, GL + HW + GL), lambda n, r: (n, 0, 0)),
            pl.BlockSpec((9, HW), lambda n, r: (0, 0)),
            pl.BlockSpec((C1, 9 * C0), lambda n, r: (0, 0)),
            pl.BlockSpec((C1, 1), lambda n, r: (0, 0)),
            pl.BlockSpec((C2, 9 * C1), lambda n, r: (0, 0)),
            pl.BlockSpec((C2, 1), lambda n, r: (0, 0)),
            pl.BlockSpec((K, C2), lambda n, r: (0, 0)),
            pl.BlockSpec((K, 1), lambda n, r: (0, 0)),
            pl.BlockSpec((W, OW), lambda n, r: (0, 0)),
            pl.BlockSpec((TR, H), lambda n, r: (r, 0)),
        ],
        out_specs=pl.BlockSpec((1, K, TR, OW), lambda n, r: (n, 0, r, 0)),
        scratch_shapes=[
            pltpu.VMEM((9 * C0, HW), jnp.float32),        # conv1 im2col slabs
            pltpu.VMEM((9 * C1, HW), jnp.float32),        # conv2 im2col slabs
            pltpu.VMEM((C1, GL + HW + GL), jnp.float32),  # conv1 act + guards
            pltpu.VMEM((K, H, W), jnp.float32),           # conv3 out as (K,H,W)
            pltpu.VMEM((H, K * OW), jnp.float32),         # column-interp result
        ],
        compiler_params=pltpu.CompilerParams(
            dimension_semantics=("parallel", "arbitrary")),
    )(x, masks, w1, b1, w2, b2, w3, b3, awt, ah)


# ----------------------------------------------------------------------------
# Pure-JAX reference (same math as the PyTorch module) for a numerical check.
# ----------------------------------------------------------------------------
def _reference_forward(x, params, out_hw=(512, 512)):
    OH, OW = out_hw
    dn = ("NCHW", "OIHW", "NCHW")
    h = jax.lax.conv_general_dilated(x, params["conv1.weight"], (1, 1),
                                     ((1, 1), (1, 1)), dimension_numbers=dn)
    h = jax.nn.relu(h + params["conv1.bias"][None, :, None, None])
    h = jax.lax.conv_general_dilated(h, params["conv2.weight"], (1, 1),
                                     ((1, 1), (1, 1)), dimension_numbers=dn)
    h = jax.nn.relu(h + params["conv2.bias"][None, :, None, None])
    h = jax.lax.conv_general_dilated(h, params["conv3.weight"], (1, 1),
                                     ((0, 0), (0, 0)), dimension_numbers=dn)
    h = h + params["conv3.bias"][None, :, None, None]
    H, W = x.shape[2], x.shape[3]
    ah = jnp.asarray(_bilinear_matrix(OH, H))
    aw = jnp.asarray(_bilinear_matrix(OW, W))
    return jnp.einsum("oi,ncij,pj->ncop", ah, h, aw)


if __name__ == "__main__":
    key = jax.random.PRNGKey(0)
    kx, k1, k2, k3, k4, k5, k6 = jax.random.split(key, 7)

    N, Cin, H, W = 2, 6, 16, 16
    num_classes = 2

    x = jax.random.normal(kx, (N, Cin, H, W), dtype=jnp.float32)

    # Parameters in the PyTorch layout of SimpleCNNModel.__init__.
    params = {
        "conv1.weight": jax.random.normal(k1, (64, Cin, 3, 3), jnp.float32) * 0.10,
        "conv1.bias":   jax.random.normal(k2, (64,), jnp.float32) * 0.01,
        "conv2.weight": jax.random.normal(k3, (128, 64, 3, 3), jnp.float32) * 0.05,
        "conv2.bias":   jax.random.normal(k4, (128,), jnp.float32) * 0.01,
        "conv3.weight": jax.random.normal(k5, (num_classes, 128, 1, 1), jnp.float32) * 0.05,
        "conv3.bias":   jax.random.normal(k6, (num_classes,), jnp.float32) * 0.01,
    }

    out = jax.jit(simple_cnn_forward)(x, params)
    out = jax.block_until_ready(out)
    assert out.shape == (N, num_classes, 512, 512), out.shape
    assert out.dtype == jnp.float32
    assert bool(jnp.all(jnp.isfinite(out)))

    # Numerical parity against a pure-JAX reference of the same module.
    ref = jax.block_until_ready(_reference_forward(x, params))
    max_err = float(jnp.max(jnp.abs(out - ref)))
    assert max_err < 2e-3, f"kernel/reference mismatch: max |diff| = {max_err}"

    print("KERNEL_OK")
</pallas_src>

<mosaic_0001>
module attributes {stable_mosaic.version = 11 : i64} {
  func.func @_fused_cnn_kernel(%arg0: i32, %arg1: i32, %arg2: memref<1x8x512xf32, #tpu.memory_space<vmem>>, %arg3: memref<9x256xf32, #tpu.memory_space<vmem>>, %arg4: memref<64x72xf32, #tpu.memory_space<vmem>>, %arg5: memref<64x1xf32, #tpu.memory_space<vmem>>, %arg6: memref<128x576xf32, #tpu.memory_space<vmem>>, %arg7: memref<128x1xf32, #tpu.memory_space<vmem>>, %arg8: memref<2x128xf32, #tpu.memory_space<vmem>>, %arg9: memref<2x1xf32, #tpu.memory_space<vmem>>, %arg10: memref<16x512xf32, #tpu.memory_space<vmem>>, %arg11: memref<256x16xf32, #tpu.memory_space<vmem>>, %arg12: memref<1x2x256x512xf32, #tpu.memory_space<vmem>>, %arg13: memref<72x256xf32, #tpu.memory_space<vmem>>, %arg14: memref<576x256xf32, #tpu.memory_space<vmem>>, %arg15: memref<64x512xf32, #tpu.memory_space<vmem>>, %arg16: memref<2x16x16xf32, #tpu.memory_space<vmem>>, %arg17: memref<16x1024xf32, #tpu.memory_space<vmem>>) attributes {dimension_semantics = [#tpu.dimension_semantics<parallel>, #tpu.dimension_semantics<arbitrary>], iteration_bounds = array<i64: 2, 2>, scalar_prefetch = 0 : i64, scratch_operands = 5 : i64, tpu.core_type = #tpu.core_type<tc>, window_params = [{transform_indices = @transform_0, window_bounds = array<i64: 1, 8, 512>}, {pipeline_mode = #tpu.pipeline_mode<synchronous>, transform_indices = @transform_1, window_bounds = array<i64: 9, 256>}, {pipeline_mode = #tpu.pipeline_mode<synchronous>, transform_indices = @transform_2, window_bounds = array<i64: 64, 72>}, {pipeline_mode = #tpu.pipeline_mode<synchronous>, transform_indices = @transform_3, window_bounds = array<i64: 64, 1>}, {pipeline_mode = #tpu.pipeline_mode<synchronous>, transform_indices = @transform_4, window_bounds = array<i64: 128, 576>}, {pipeline_mode = #tpu.pipeline_mode<synchronous>, transform_indices = @transform_5, window_bounds = array<i64: 128, 1>}, {pipeline_mode = #tpu.pipeline_mode<synchronous>, transform_indices = @transform_6, window_bounds = array<i64: 2, 128>}, {pipeline_mode = #tpu.pipeline_mode<synchronous>, transform_indices = @transform_7, window_bounds = array<i64: 2, 1>}, {pipeline_mode = #tpu.pipeline_mode<synchronous>, transform_indices = @transform_8, window_bounds = array<i64: 16, 512>}, {transform_indices = @transform_9, window_bounds = array<i64: 256, 16>}, {transform_indices = @transform_10, window_bounds = array<i64: 1, 2, 256, 512>}]} {
    %c0_i32 = arith.constant 0 : i32
    %0 = arith.cmpi eq, %arg1, %c0_i32 : i32
    %1 = arith.extui %0 : i1 to i32
    %c0_i32_0 = arith.constant 0 : i32
    %2 = arith.cmpi ne, %1, %c0_i32_0 : i32
    scf.if %2 {
      %c0_11 = arith.constant 0 : index
      %c0_12 = arith.constant 0 : index
      %14 = vector.load %arg3[%c0_11, %c0_12] : memref<9x256xf32, #tpu.memory_space<vmem>>, vector<9x256xf32>
      %c0_13 = arith.constant 0 : index
      %c0_14 = arith.constant 0 : index
      %c111 = arith.constant 111 : index
      %15 = vector.load %arg2[%c0_13, %c0_14, %c111] : memref<1x8x512xf32, #tpu.memory_space<vmem>>, vector<1x8x256xf32>
      %16 = vector.shape_cast %15 : vector<1x8x256xf32> to vector<8x256xf32>
      %17 = vector.extract_strided_slice %14 {offsets = [0, 0], sizes = [1, 256], strides = [1, 1]} : vector<9x256xf32> to vector<1x256xf32>
      %cst_15 = arith.constant 0.000000e+00 : f32
      %18 = vector.broadcast %cst_15 : f32 to vector<1x256xf32>
      %19 = arith.cmpf ogt, %17, %18 : vector<1x256xf32>
      %cst_16 = arith.constant 0.000000e+00 : f32
      %20 = vector.shape_cast %19 : vector<1x256xi1> to vector<1x256xi1>
      %21 = vector.broadcast %20 : vector<1x256xi1> to vector<8x256xi1>
      %22 = vector.broadcast %cst_16 : f32 to vector<8x256xf32>
      %23 = arith.select %21, %16, %22 : vector<8x256xi1>, vector<8x256xf32>
      %c0_17 = arith.constant 0 : index
      %c0_18 = arith.constant 0 : index
      %24 = vector.load %arg13[%c0_17, %c0_18] : memref<72x256xf32, #tpu.memory_space<vmem>>, vector<8x256xf32>
      tpu.vector_store %arg13[%c0_17, %c0_18], %23 {strides = array<i32>} : memref<72x256xf32, #tpu.memory_space<vmem>>, vector<8x256xf32>,
      %c0_19 = arith.constant 0 : index
      %c0_20 = arith.constant 0 : index
      %c112 = arith.constant 112 : index
      %25 = vector.load %arg2[%c0_19, %c0_20, %c112] : memref<1x8x512xf32, #tpu.memory_space<vmem>>, vector<1x8x256xf32>
      %26 = vector.shape_cast %25 : vector<1x8x256xf32> to vector<8x256xf32>
      %27 = vector.extract_strided_slice %14 {offsets = [1, 0], sizes = [1, 256], strides = [1, 1]} : vector<9x256xf32> to vector<1x256xf32>
      %cst_21 = arith.constant 0.000000e+00 : f32
      %28 = vector.broadcast %cst_21 : f32 to vector<1x256xf32>
      %29 = arith.cmpf ogt, %27, %28 : vector<1x256xf32>
      %cst_22 = arith.constant 0.000000e+00 : f32
      %30 = vector.shape_cast %29 : vector<1x256xi1> to vector<1x256xi1>
      %31 = vector.broadcast %30 : vector<1x256xi1> to vector<8x256xi1>
      %32 = vector.broadcast %cst_22 : f32 to vector<8x256xf32>
      %33 = arith.select %31, %26, %32 : vector<8x256xi1>, vector<8x256xf32>
      %c8 = arith.constant 8 : index
      %c0_23 = arith.constant 0 : index
      %34 = vector.load %arg13[%c8, %c0_23] : memref<72x256xf32, #tpu.memory_space<vmem>>, vector<8x256xf32>
      tpu.vector_store %arg13[%c8, %c0_23], %33 {strides = array<i32>} : memref<72x256xf32, #tpu.memory_space<vmem>>, vector<8x256xf32>,
      %c0_24 = arith.constant 0 : index
      %c0_25 = arith.constant 0 : index
      %c113 = arith.constant 113 : index
      %35 = vector.load %arg2[%c0_24, %c0_25, %c113] : memref<1x8x512xf32, #tpu.memory_space<vmem>>, vector<1x8x256xf32>
      %36 = vector.shape_cast %35 : vector<1x8x256xf32> to vector<8x256xf32>
      %37 = vector.extract_strided_slice %14 {offsets = [2, 0], sizes = [1, 256], strides = [1, 1]} : vector<9x256xf32> to vector<1x256xf32>
      %cst_26 = arith.constant 0.000000e+00 : f32
      %38 = vector.broadcast %cst_26 : f32 to vector<1x256xf32>
      %39 = arith.cmpf ogt, %37, %38 : vector<1x256xf32>
      %cst_27 = arith.constant 0.000000e+00 : f32
      %40 = vector.shape_cast %39 : vector<1x256xi1> to vector<1x256xi1>
      %41 = vector.broadcast %40 : vector<1x256xi1> to vector<8x256xi1>
      %42 = vector.broadcast %cst_27 : f32 to vector<8x256xf32>
      %43 = arith.select %41, %36, %42 : vector<8x256xi1>, vector<8x256xf32>
      %c16 = arith.constant 16 : index
      %c0_28 = arith.constant 0 : index
      %44 = vector.load %arg13[%c16, %c0_28] : memref<72x256xf32, #tpu.memory_space<vmem>>, vector<8x256xf32>
      tpu.vector_store %arg13[%c16, %c0_28], %43 {strides = array<i32>} : memref<72x256xf32, #tpu.memory_space<vmem>>, vector<8x256xf32>,
      %c0_29 = arith.constant 0 : index
      %c0_30 = arith.constant 0 : index
      %c127 = arith.constant 127 : index
      %45 = vector.load %arg2[%c0_29, %c0_30, %c127] : memref<1x8x512xf32, #tpu.memory_space<vmem>>, vector<1x8x256xf32>
      %46 = vector.shape_cast %45 : vector<1x8x256xf32> to vector<8x256xf32>
      %47 = vector.extract_strided_slice %14 {offsets = [3, 0], sizes = [1, 256], strides = [1, 1]} : vector<9x256xf32> to vector<1x256xf32>
      %cst_31 = arith.constant 0.000000e+00 : f32
      %48 = vector.broadcast %cst_31 : f32 to vector<1x256xf32>
      %49 = arith.cmpf ogt, %47, %48 : vector<1x256xf32>
      %cst_32 = arith.constant 0.000000e+00 : f32
      %50 = vector.shape_cast %49 : vector<1x256xi1> to vector<1x256xi1>
      %51 = vector.broadcast %50 : vector<1x256xi1> to vector<8x256xi1>
      %52 = vector.broadcast %cst_32 : f32 to vector<8x256xf32>
      %53 = arith.select %51, %46, %52 : vector<8x256xi1>, vector<8x256xf32>
      %c24 = arith.constant 24 : index
      %c0_33 = arith.constant 0 : index
      %54 = vector.load %arg13[%c24, %c0_33] : memref<72x256xf32, #tpu.memory_space<vmem>>, vector<8x256xf32>
      tpu.vector_store %arg13[%c24, %c0_33], %53 {strides = array<i32>} : memref<72x256xf32, #tpu.memory_space<vmem>>, vector<8x256xf32>,
      %c0_34 = arith.constant 0 : index
      %c0_35 = arith.constant 0 : index
      %c128 = arith.constant 128 : index
      %55 = vector.load %arg2[%c0_34, %c0_35, %c128] : memref<1x8x512xf32, #tpu.memory_space<vmem>>, vector<1x8x256xf32>
      %56 = vector.shape_cast %55 : vector<1x8x256xf32> to vector<8x256xf32>
      %57 = vector.extract_strided_slice %14 {offsets = [4, 0], sizes = [1, 256], strides = [1, 1]} : vector<9x256xf32> to vector<1x256xf32>
      %cst_36 = arith.constant 0.000000e+00 : f32
      %58 = vector.broadcast %cst_36 : f32 to vector<1x256xf32>
      %59 = arith.cmpf ogt, %57, %58 : vector<1x256xf32>
      %cst_37 = arith.constant 0.000000e+00 : f32
      %60 = vector.shape_cast %59 : vector<1x256xi1> to vector<1x256xi1>
      %61 = vector.broadcast %60 : vector<1x256xi1> to vector<8x256xi1>
      %62 = vector.broadcast %cst_37 : f32 to vector<8x256xf32>
      %63 = arith.select %61, %56, %62 : vector<8x256xi1>, vector<8x256xf32>
      %c32 = arith.constant 32 : index
      %c0_38 = arith.constant 0 : index
      %64 = vector.load %arg13[%c32, %c0_38] : memref<72x256xf32, #tpu.memory_space<vmem>>, vector<8x256xf32>
      tpu.vector_store %arg13[%c32, %c0_38], %63 {strides = array<i32>} : memref<72x256xf32, #tpu.memory_space<vmem>>, vector<8x256xf32>,
      %c0_39 = arith.constant 0 : index
      %c0_40 = arith.constant 0 : index
      %c129 = arith.constant 129 : index
      %65 = vector.load %arg2[%c0_39, %c0_40, %c129] : memref<1x8x512xf32, #tpu.memory_space<vmem>>, vector<1x8x256xf32>
      %66 = vector.shape_cast %65 : vector<1x8x256xf32> to vector<8x256xf32>
      %67 = vector.extract_strided_slice %14 {offsets = [5, 0], sizes = [1, 256], strides = [1, 1]} : vector<9x256xf32> to vector<1x256xf32>
      %cst_41 = arith.constant 0.000000e+00 : f32
      %68 = vector.broadcast %cst_41 : f32 to vector<1x256xf32>
      %69 = arith.cmpf ogt, %67, %68 : vector<1x256xf32>
      %cst_42 = arith.constant 0.000000e+00 : f32
      %70 = vector.shape_cast %69 : vector<1x256xi1> to vector<1x256xi1>
      %71 = vector.broadcast %70 : vector<1x256xi1> to vector<8x256xi1>
      %72 = vector.broadcast %cst_42 : f32 to vector<8x256xf32>
      %73 = arith.select %71, %66, %72 : vector<8x256xi1>, vector<8x256xf32>
      %c40 = arith.constant 40 : index
      %c0_43 = arith.constant 0 : index
      %74 = vector.load %arg13[%c40, %c0_43] : memref<72x256xf32, #tpu.memory_space<vmem>>, vector<8x256xf32>
      tpu.vector_store %arg13[%c40, %c0_43], %73 {strides = array<i32>} : memref<72x256xf32, #tpu.memory_space<vmem>>, vector<8x256xf32>,
      %c0_44 = arith.constant 0 : index
      %c0_45 = arith.constant 0 : index
      %c143 = arith.constant 143 : index
      %75 = vector.load %arg2[%c0_44, %c0_45, %c143] : memref<1x8x512xf32, #tpu.memory_space<vmem>>, vector<1x8x256xf32>
      %76 = vector.shape_cast %75 : vector<1x8x256xf32> to vector<8x256xf32>
      %77 = vector.extract_strided_slice %14 {offsets = [6, 0], sizes = [1, 256], strides = [1, 1]} : vector<9x256xf32> to vector<1x256xf32>
      %cst_46 = arith.constant 0.000000e+00 : f32
      %78 = vector.broadcast %cst_46 : f32 to vector<1x256xf32>
      %79 = arith.cmpf ogt, %77, %78 : vector<1x256xf32>
      %cst_47 = arith.constant 0.000000e+00 : f32
      %80 = vector.shape_cast %79 : vector<1x256xi1> to vector<1x256xi1>
      %81 = vector.broadcast %80 : vector<1x256xi1> to vector<8x256xi1>
      %82 = vector.broadcast %cst_47 : f32 to vector<8x256xf32>
      %83 = arith.select %81, %76, %82 : vector<8x256xi1>, vector<8x256xf32>
      %c48 = arith.constant 48 : index
      %c0_48 = arith.constant 0 : index
      %84 = vector.load %arg13[%c48, %c0_48] : memref<72x256xf32, #tpu.memory_space<vmem>>, vector<8x256xf32>
      tpu.vector_store %arg13[%c48, %c0_48], %83 {strides = array<i32>} : memref<72x256xf32, #tpu.memory_space<vmem>>, vector<8x256xf32>,
      %c0_49 = arith.constant 0 : index
      %c0_50 = arith.constant 0 : index
      %c144 = arith.constant 144 : index
      %85 = vector.load %arg2[%c0_49, %c0_50, %c144] : memref<1x8x512xf32, #tpu.memory_space<vmem>>, vector<1x8x256xf32>
      %86 = vector.shape_cast %85 : vector<1x8x256xf32> to vector<8x256xf32>
      %87 = vector.extract_strided_slice %14 {offsets = [7, 0], sizes = [1, 256], strides = [1, 1]} : vector<9x256xf32> to vector<1x256xf32>
      %cst_51 = arith.constant 0.000000e+00 : f32
      %88 = vector.broadcast %cst_51 : f32 to vector<1x256xf32>
      %89 = arith.cmpf ogt, %87, %88 : vector<1x256xf32>
      %cst_52 = arith.constant 0.000000e+00 : f32
      %90 = vector.shape_cast %89 : vector<1x256xi1> to vector<1x256xi1>
      %91 = vector.broadcast %90 : vector<1x256xi1> to vector<8x256xi1>
      %92 = vector.broadcast %cst_52 : f32 to vector<8x256xf32>
      %93 = arith.select %91, %86, %92 : vector<8x256xi1>, vector<8x256xf32>
      %c56 = arith.constant 56 : index
      %c0_53 = arith.constant 0 : index
      %94 = vector.load %arg13[%c56, %c0_53] : memref<72x256xf32, #tpu.memory_space<vmem>>, vector<8x256xf32>
      tpu.vector_store %arg13[%c56, %c0_53], %93 {strides = array<i32>} : memref<72x256xf32, #tpu.memory_space<vmem>>, vector<8x256xf32>,
      %c0_54 = arith.constant 0 : index
      %c0_55 = arith.constant 0 : index
      %c145 = arith.constant 145 : index
      %95 = vector.load %arg2[%c0_54, %c0_55, %c145] : memref<1x8x512xf32, #tpu.memory_space<vmem>>, vector<1x8x256xf32>
      %96 = vector.shape_cast %95 : vector<1x8x256xf32> to vector<8x256xf32>
      %97 = vector.extract_strided_slice %14 {offsets = [8, 0], sizes = [1, 256], strides = [1, 1]} : vector<9x256xf32> to vector<1x256xf32>
      %cst_56 = arith.constant 0.000000e+00 : f32
      %98 = vector.broadcast %cst_56 : f32 to vector<1x256xf32>
      %99 = arith.cmpf ogt, %97, %98 : vector<1x256xf32>
      %cst_57 = arith.constant 0.000000e+00 : f32
      %100 = vector.shape_cast %99 : vector<1x256xi1> to vector<1x256xi1>
      %101 = vector.broadcast %100 : vector<1x256xi1> to vector<8x256xi1>
      %102 = vector.broadcast %cst_57 : f32 to vector<8x256xf32>
      %103 = arith.select %101, %96, %102 : vector<8x256xi1>, vector<8x256xf32>
      %c64 = arith.constant 64 : index
      %c0_58 = arith.constant 0 : index
      %104 = vector.load %arg13[%c64, %c0_58] : memref<72x256xf32, #tpu.memory_space<vmem>>, vector<8x256xf32>
      tpu.vector_store %arg13[%c64, %c0_58], %103 {strides = array<i32>} : memref<72x256xf32, #tpu.memory_space<vmem>>, vector<8x256xf32>,
      %c0_59 = arith.constant 0 : index
      %c0_60 = arith.constant 0 : index
      %105 = vector.load %arg4[%c0_59, %c0_60] : memref<64x72xf32, #tpu.memory_space<vmem>>, vector<64x72xf32>
      %c0_61 = arith.constant 0 : index
      %c0_62 = arith.constant 0 : index
      %106 = vector.load %arg13[%c0_61, %c0_62] : memref<72x256xf32, #tpu.memory_space<vmem>>, vector<72x256xf32>
      %cst_63 = arith.constant dense<0.000000e+00> : vector<64x256xf32>
      %107 = tpu.matmul %105, %106, %cst_63 {dimension_numbers = #tpu.dot_dimension_numbers<[1], [0], [0], [1], [0, 0, 1, 1], [], []>} : vector<64x72xf32>, vector<72x256xf32>, vector<64x256xf32> -> vector<64x256xf32>
      %c0_64 = arith.constant 0 : index
      %c0_65 = arith.constant 0 : index
      %108 = vector.load %arg5[%c0_64, %c0_65] : memref<64x1xf32, #tpu.memory_space<vmem>>, vector<64x1xf32>
      %109 = vector.broadcast %108 : vector<64x1xf32> to vector<64x256xf32>
      %110 = arith.addf %107, %109 : vector<64x256xf32>
      %cst_66 = arith.constant 0.000000e+00 : f32
      %111 = vector.broadcast %cst_66 : f32 to vector<64x256xf32>
      %112 = arith.maximumf %110, %111 : vector<64x256xf32>
      %c0_67 = arith.constant 0 : index
      %c128_68 = arith.constant 128 : index
      %113 = vector.load %arg15[%c0_67, %c128_68] : memref<64x512xf32, #tpu.memory_space<vmem>>, vector<64x256xf32>
      tpu.vector_store %arg15[%c0_67, %c128_68], %112 {strides = array<i32>} : memref<64x512xf32, #tpu.memory_space<vmem>>, vector<64x256xf32>,
      %c0_69 = arith.constant 0 : index
      %c111_70 = arith.constant 111 : index
      %114 = vector.load %arg15[%c0_69, %c111_70] : memref<64x512xf32, #tpu.memory_space<vmem>>, vector<64x256xf32>
      %115 = vector.extract_strided_slice %14 {offsets = [0, 0], sizes = [1, 256], strides = [1, 1]} : vector<9x256xf32> to vector<1x256xf32>
      %cst_71 = arith.constant 0.000000e+00 : f32
      %116 = vector.broadcast %cst_71 : f32 to vector<1x256xf32>
      %117 = arith.cmpf ogt, %115, %116 : vector<1x256xf32>
      %cst_72 = arith.constant 0.000000e+00 : f32
      %118 = vector.shape_cast %117 : vector<1x256xi1> to vector<1x256xi1>
      %119 = vector.broadcast %118 : vector<1x256xi1> to vector<64x256xi1>
      %120 = vector.broadcast %cst_72 : f32 to vector<64x256xf32>
      %121 = arith.select %119, %114, %120 : vector<64x256xi1>, vector<64x256xf32>
      %c0_73 = arith.constant 0 : index
      %c0_74 = arith.constant 0 : index
      %122 = vector.load %arg14[%c0_73, %c0_74] : memref<576x256xf32, #tpu.memory_space<vmem>>, vector<64x256xf32>
      tpu.vector_store %arg14[%c0_73, %c0_74], %121 {strides = array<i32>} : memref<576x256xf32, #tpu.memory_space<vmem>>, vector<64x256xf32>,
      %c0_75 = arith.constant 0 : index
      %c112_76 = arith.constant 112 : index
      %123 = vector.load %arg15[%c0_75, %c112_76] : memref<64x512xf32, #tpu.memory_space<vmem>>, vector<64x256xf32>
      %124 = vector.extract_strided_slice %14 {offsets = [1, 0], sizes = [1, 256], strides = [1, 1]} : vector<9x256xf32> to vector<1x256xf32>
      %cst_77 = arith.constant 0.000000e+00 : f32
      %125 = vector.broadcast %cst_77 : f32 to vector<1x256xf32>
      %126 = arith.cmpf ogt, %124, %125 : vector<1x256xf32>
      %cst_78 = arith.constant 0.000000e+00 : f32
      %127 = vector.shape_cast %126 : vector<1x256xi1> to vector<1x256xi1>
      %128 = vector.broadcast %127 : vector<1x256xi1> to vector<64x256xi1>
      %129 = vector.broadcast %cst_78 : f32 to vector<64x256xf32>
      %130 = arith.select %128, %123, %129 : vector<64x256xi1>, vector<64x256xf32>
      %c64_79 = arith.constant 64 : index
      %c0_80 = arith.constant 0 : index
      %131 = vector.load %arg14[%c64_79, %c0_80] : memref<576x256xf32, #tpu.memory_space<vmem>>, vector<64x256xf32>
      tpu.vector_store %arg14[%c64_79, %c0_80], %130 {strides = array<i32>} : memref<576x256xf32, #tpu.memory_space<vmem>>, vector<64x256xf32>,
      %c0_81 = arith.constant 0 : index
      %c113_82 = arith.constant 113 : index
      %132 = vector.load %arg15[%c0_81, %c113_82] : memref<64x512xf32, #tpu.memory_space<vmem>>, vector<64x256xf32>
      %133 = vector.extract_strided_slice %14 {offsets = [2, 0], sizes = [1, 256], strides = [1, 1]} : vector<9x256xf32> to vector<1x256xf32>
      %cst_83 = arith.constant 0.000000e+00 : f32
      %134 = vector.broadcast %cst_83 : f32 to vector<1x256xf32>
      %135 = arith.cmpf ogt, %133, %134 : vector<1x256xf32>
      %cst_84 = arith.constant 0.000000e+00 : f32
      %136 = vector.shape_cast %135 : vector<1x256xi1> to vector<1x256xi1>
      %137 = vector.broadcast %136 : vector<1x256xi1> to vector<64x256xi1>
      %138 = vector.broadcast %cst_84 : f32 to vector<64x256xf32>
      %139 = arith.select %137, %132, %138 : vector<64x256xi1>, vector<64x256xf32>
      %c128_85 = arith.constant 128 : index
      %c0_86 = arith.constant 0 : index
      %140 = vector.load %arg14[%c128_85, %c0_86] : memref<576x256xf32, #tpu.memory_space<vmem>>, vector<64x256xf32>
      tpu.vector_store %arg14[%c128_85, %c0_86], %139 {strides = array<i32>} : memref<576x256xf32, #tpu.memory_space<vmem>>, vector<64x256xf32>,
      %c0_87 = arith.constant 0 : index
      %c127_88 = arith.constant 127 : index
      %141 = vector.load %arg15[%c0_87, %c127_88] : memref<64x512xf32, #tpu.memory_space<vmem>>, vector<64x256xf32>
      %142 = vector.extract_strided_slice %14 {offsets = [3, 0], sizes = [1, 256], strides = [1, 1]} : vector<9x256xf32> to vector<1x256xf32>
      %cst_89 = arith.constant 0.000000e+00 : f32
      %143 = vector.broadcast %cst_89 : f32 to vector<1x256xf32>
      %144 = arith.cmpf ogt, %142, %143 : vector<1x256xf32>
      %cst_90 = arith.constant 0.000000e+00 : f32
      %145 = vector.shape_cast %144 : vector<1x256xi1> to vector<1x256xi1>
      %146 = vector.broadcast %145 : vector<1x256xi1> to vector<64x256xi1>
      %147 = vector.broadcast %cst_90 : f32 to vector<64x256xf32>
      %148 = arith.select %146, %141, %147 : vector<64x256xi1>, vector<64x256xf32>
      %c192 = arith.constant 192 : index
      %c0_91 = arith.constant 0 : index
      %149 = vector.load %arg14[%c192, %c0_91] : memref<576x256xf32, #tpu.memory_space<vmem>>, vector<64x256xf32>
      tpu.vector_store %arg14[%c192, %c0_91], %148 {strides = array<i32>} : memref<576x256xf32, #tpu.memory_space<vmem>>, vector<64x256xf32>,
      %c0_92 = arith.constant 0 : index
      %c128_93 = arith.constant 128 : index
      %150 = vector.load %arg15[%c0_92, %c128_93] : memref<64x512xf32, #tpu.memory_space<vmem>>, vector<64x256xf32>
      %151 = vector.extract_strided_slice %14 {offsets = [4, 0], sizes = [1, 256], strides = [1, 1]} : vector<9x256xf32> to vector<1x256xf32>
      %cst_94 = arith.constant 0.000000e+00 : f32
      %152 = vector.broadcast %cst_94 : f32 to vector<1x256xf32>
      %153 = arith.cmpf ogt, %151, %152 : vector<1x256xf32>
      %cst_95 = arith.constant 0.000000e+00 : f32
      %154 = vector.shape_cast %153 : vector<1x256xi1> to vector<1x256xi1>
      %155 = vector.broadcast %154 : vector<1x256xi1> to vector<64x256xi1>
      %156 = vector.broadcast %cst_95 : f32 to vector<64x256xf32>
      %157 = arith.select %155, %150, %156 : vector<64x256xi1>, vector<64x256xf32>
      %c256 = arith.constant 256 : index
      %c0_96 = arith.constant 0 : index
      %158 = vector.load %arg14[%c256, %c0_96] : memref<576x256xf32, #tpu.memory_space<vmem>>, vector<64x256xf32>
      tpu.vector_store %arg14[%c256, %c0_96], %157 {strides = array<i32>} : memref<576x256xf32, #tpu.memory_space<vmem>>, vector<64x256xf32>,
      %c0_97 = arith.constant 0 : index
      %c129_98 = arith.constant 129 : index
      %159 = vector.load %arg15[%c0_97, %c129_98] : memref<64x512xf32, #tpu.memory_space<vmem>>, vector<64x256xf32>
      %160 = vector.extract_strided_slice %14 {offsets = [5, 0], sizes = [1, 256], strides = [1, 1]} : vector<9x256xf32> to vector<1x256xf32>
      %cst_99 = arith.constant 0.000000e+00 : f32
      %161 = vector.broadcast %cst_99 : f32 to vector<1x256xf32>
      %162 = arith.cmpf ogt, %160, %161 : vector<1x256xf32>
      %cst_100 = arith.constant 0.000000e+00 : f32
      %163 = vector.shape_cast %162 : vector<1x256xi1> to vector<1x256xi1>
      %164 = vector.broadcast %163 : vector<1x256xi1> to vector<64x256xi1>
      %165 = vector.broadcast %cst_100 : f32 to vector<64x256xf32>
      %166 = arith.select %164, %159, %165 : vector<64x256xi1>, vector<64x256xf32>
      %c320 = arith.constant 320 : index
      %c0_101 = arith.constant 0 : index
      %167 = vector.load %arg14[%c320, %c0_101] : memref<576x256xf32, #tpu.memory_space<vmem>>, vector<64x256xf32>
      tpu.vector_store %arg14[%c320, %c0_101], %166 {strides = array<i32>} : memref<576x256xf32, #tpu.memory_space<vmem>>, vector<64x256xf32>,
      %c0_102 = arith.constant 0 : index
      %c143_103 = arith.constant 143 : index
      %168 = vector.load %arg15[%c0_102, %c143_103] : memref<64x512xf32, #tpu.memory_space<vmem>>, vector<64x256xf32>
      %169 = vector.extract_strided_slice %14 {offsets = [6, 0], sizes = [1, 256], strides = [1, 1]} : vector<9x256xf32> to vector<1x256xf32>
      %cst_104 = arith.constant 0.000000e+00 : f32
      %170 = vector.broadcast %cst_104 : f32 to vector<1x256xf32>
      %171 = arith.cmpf ogt, %169, %170 : vector<1x256xf32>
      %cst_105 = arith.constant 0.000000e+00 : f32
      %172 = vector.shape_cast %171 : vector<1x256xi1> to vector<1x256xi1>
      %173 = vector.broadcast %172 : vector<1x256xi1> to vector<64x256xi1>
      %174 = vector.broadcast %cst_105 : f32 to vector<64x256xf32>
      %175 = arith.select %173, %168, %174 : vector<64x256xi1>, vector<64x256xf32>
      %c384 = arith.constant 384 : index
      %c0_106 = arith.constant 0 : index
      %176 = vector.load %arg14[%c384, %c0_106] : memref<576x256xf32, #tpu.memory_space<vmem>>, vector<64x256xf32>
      tpu.vector_store %arg14[%c384, %c0_106], %175 {strides = array<i32>} : memref<576x256xf32, #tpu.memory_space<vmem>>, vector<64x256xf32>,
      %c0_107 = arith.constant 0 : index
      %c144_108 = arith.constant 144 : index
      %177 = vector.load %arg15[%c0_107, %c144_108] : memref<64x512xf32, #tpu.memory_space<vmem>>, vector<64x256xf32>
      %178 = vector.extract_strided_slice %14 {offsets = [7, 0], sizes = [1, 256], strides = [1, 1]} : vector<9x256xf32> to vector<1x256xf32>
      %cst_109 = arith.constant 0.000000e+00 : f32
      %179 = vector.broadcast %cst_109 : f32 to vector<1x256xf32>
      %180 = arith.cmpf ogt, %178, %179 : vector<1x256xf32>
      %cst_110 = arith.constant 0.000000e+00 : f32
      %181 = vector.shape_cast %180 : vector<1x256xi1> to vector<1x256xi1>
      %182 = vector.broadcast %181 : vector<1x256xi1> to vector<64x256xi1>
      %183 = vector.broadcast %cst_110 : f32 to vector<64x256xf32>
      %184 = arith.select %182, %177, %183 : vector<64x256xi1>, vector<64x256xf32>
      %c448 = arith.constant 448 : index
      %c0_111 = arith.constant 0 : index
      %185 = vector.load %arg14[%c448, %c0_111] : memref<576x256xf32, #tpu.memory_space<vmem>>, vector<64x256xf32>
      tpu.vector_store %arg14[%c448, %c0_111], %184 {strides = array<i32>} : memref<576x256xf32, #tpu.memory_space<vmem>>, vector<64x256xf32>,
      %c0_112 = arith.constant 0 : index
      %c145_113 = arith.constant 145 : index
      %186 = vector.load %arg15[%c0_112, %c145_113] : memref<64x512xf32, #tpu.memory_space<vmem>>, vector<64x256xf32>
      %187 = vector.extract_strided_slice %14 {offsets = [8, 0], sizes = [1, 256], strides = [1, 1]} : vector<9x256xf32> to vector<1x256xf32>
      %cst_114 = arith.constant 0.000000e+00 : f32
      %188 = vector.broadcast %cst_114 : f32 to vector<1x256xf32>
      %189 = arith.cmpf ogt, %187, %188 : vector<1x256xf32>
      %cst_115 = arith.constant 0.000000e+00 : f32
      %190 = vector.shape_cast %189 : vector<1x256xi1> to vector<1x256xi1>
      %191 = vector.broadcast %190 : vector<1x256xi1> to vector<64x256xi1>
      %192 = vector.broadcast %cst_115 : f32 to vector<64x256xf32>
      %193 = arith.select %191, %186, %192 : vector<64x256xi1>, vector<64x256xf32>
      %c512 = arith.constant 512 : index
      %c0_116 = arith.constant 0 : index
      %194 = vector.load %arg14[%c512, %c0_116] : memref<576x256xf32, #tpu.memory_space<vmem>>, vector<64x256xf32>
      tpu.vector_store %arg14[%c512, %c0_116], %193 {strides = array<i32>} : memref<576x256xf32, #tpu.memory_space<vmem>>, vector<64x256xf32>,
      %c0_117 = arith.constant 0 : index
      %c0_118 = arith.constant 0 : index
      %195 = vector.load %arg6[%c0_117, %c0_118] : memref<128x576xf32, #tpu.memory_space<vmem>>, vector<128x576xf32>
      %c0_119 = arith.constant 0 : index
      %c0_120 = arith.constant 0 : index
      %196 = vector.load %arg14[%c0_119, %c0_120] : memref<576x256xf32, #tpu.memory_space<vmem>>, vector<576x256xf32>
      %cst_121 = arith.constant dense<0.000000e+00> : vector<128x256xf32>
      %197 = tpu.matmul %195, %196, %cst_121 {dimension_numbers = #tpu.dot_dimension_numbers<[1], [0], [0], [1], [0, 0, 1, 1], [], []>} : vector<128x576xf32>, vector<576x256xf32>, vector<128x256xf32> -> vector<128x256xf32>
      %c0_122 = arith.constant 0 : index
      %c0_123 = arith.constant 0 : index
      %198 = vector.load %arg7[%c0_122, %c0_123] : memref<128x1xf32, #tpu.memory_space<vmem>>, vector<128x1xf32>
      %199 = vector.broadcast %198 : vector<128x1xf32> to vector<128x256xf32>
      %200 = arith.addf %197, %199 : vector<128x256xf32>
      %cst_124 = arith.constant 0.000000e+00 : f32
      %201 = vector.broadcast %cst_124 : f32 to vector<128x256xf32>
      %202 = arith.maximumf %200, %201 : vector<128x256xf32>
      %c0_125 = arith.constant 0 : index
      %c0_126 = arith.constant 0 : index
      %203 = vector.load %arg8[%c0_125, %c0_126] : memref<2x128xf32, #tpu.memory_space<vmem>>, vector<2x128xf32>
      %cst_127 = arith.constant dense<0.000000e+00> : vector<2x256xf32>
      %204 = tpu.matmul %203, %202, %cst_127 {dimension_numbers = #tpu.dot_dimension_numbers<[1], [0], [0], [1], [0, 0, 1, 1], [], []>} : vector<2x128xf32>, vector<128x256xf32>, vector<2x256xf32> -> vector<2x256xf32>
      %c0_128 = arith.constant 0 : index
      %c0_129 = arith.constant 0 : index
      %205 = vector.load %arg9[%c0_128, %c0_129] : memref<2x1xf32, #tpu.memory_space<vmem>>, vector<2x1xf32>
      %206 = vector.broadcast %205 : vector<2x1xf32> to vector<2x256xf32>
      %207 = arith.addf %204, %206 : vector<2x256xf32>
      %208 = vector.extract_strided_slice %207 {offsets = [0, 0], sizes = [2, 16], strides = [1, 1]} : vector<2x256xf32> to vector<2x16xf32>
      %c0_130 = arith.constant 0 : index
      %c0_131 = arith.constant 0 : index
      %c0_132 = arith.constant 0 : index
      %209 = vector.load %arg16[%c0_130, %c0_131, %c0_132] : memref<2x16x16xf32, #tpu.memory_space<vmem>>, vector<2x1x16xf32>
      %210 = vector.shape_cast %209 : vector<2x1x16xf32> to vector<2x16xf32>
      %211 = vector.shape_cast %208 : vector<2x16xf32> to vector<2x1x16xf32>
      tpu.vector_store %arg16[%c0_130, %c0_131, %c0_132], %211 {strides = array<i32>} : memref<2x16x16xf32, #tpu.memory_space<vmem>>, vector<2x1x16xf32>,
      %212 = vector.extract_strided_slice %207 {offsets = [0, 16], sizes = [2, 16], strides = [1, 1]} : vector<2x256xf32> to vector<2x16xf32>
      %c0_133 = arith.constant 0 : index
      %c1_134 = arith.constant 1 : index
      %c0_135 = arith.constant 0 : index
      %213 = vector.load %arg16[%c0_133, %c1_134, %c0_135] : memref<2x16x16xf32, #tpu.memory_space<vmem>>, vector<2x1x16xf32>
      %214 = vector.shape_cast %213 : vector<2x1x16xf32> to vector<2x16xf32>
      %215 = vector.shape_cast %212 : vector<2x16xf32> to vector<2x1x16xf32>
      tpu.vector_store %arg16[%c0_133, %c1_134, %c0_135], %215 {strides = array<i32>} : memref<2x16x16xf32, #tpu.memory_space<vmem>>, vector<2x1x16xf32>,
      %216 = vector.extract_strided_slice %207 {offsets = [0, 32], sizes = [2, 16], strides = [1, 1]} : vector<2x256xf32> to vector<2x16xf32>
      %c0_136 = arith.constant 0 : index
      %c2 = arith.constant 2 : index
      %c0_137 = arith.constant 0 : index
      %217 = vector.load %arg16[%c0_136, %c2, %c0_137] : memref<2x16x16xf32, #tpu.memory_space<vmem>>, vector<2x1x16xf32>
      %218 = vector.shape_cast %217 : vector<2x1x16xf32> to vector<2x16xf32>
      %219 = vector.shape_cast %216 : vector<2x16xf32> to vector<2x1x16xf32>
      tpu.vector_store %arg16[%c0_136, %c2, %c0_137], %219 {strides = array<i32>} : memref<2x16x16xf32, #tpu.memory_space<vmem>>, vector<2x1x16xf32>,
      %220 = vector.extract_strided_slice %207 {offsets = [0, 48], sizes = [2, 16], strides = [1, 1]} : vector<2x256xf32> to vector<2x16xf32>
      %c0_138 = arith.constant 0 : index
      %c3 = arith.constant 3 : index
      %c0_139 = arith.constant 0 : index
      %221 = vector.load %arg16[%c0_138, %c3, %c0_139] : memref<2x16x16xf32, #tpu.memory_space<vmem>>, vector<2x1x16xf32>
      %222 = vector.shape_cast %221 : vector<2x1x16xf32> to vector<2x16xf32>
      %223 = vector.shape_cast %220 : vector<2x16xf32> to vector<2x1x16xf32>
      tpu.vector_store %arg16[%c0_138, %c3, %c0_139], %223 {strides = array<i32>} : memref<2x16x16xf32, #tpu.memory_space<vmem>>, vector<2x1x16xf32>,
      %224 = vector.extract_strided_slice %207 {offsets = [0, 64], sizes = [2, 16], strides = [1, 1]} : vector<2x256xf32> to vector<2x16xf32>
      %c0_140 = arith.constant 0 : index
      %c4 = arith.constant 4 : index
      %c0_141 = arith.constant 0 : index
      %225 = vector.load %arg16[%c0_140, %c4, %c0_141] : memref<2x16x16xf32, #tpu.memory_space<vmem>>, vector<2x1x16xf32>
      %226 = vector.shape_cast %225 : vector<2x1x16xf32> to vector<2x16xf32>
      %227 = vector.shape_cast %224 : vector<2x16xf32> to vector<2x1x16xf32>
      tpu.vector_store %arg16[%c0_140, %c4, %c0_141], %227 {strides = array<i32>} : memref<2x16x16xf32, #tpu.memory_space<vmem>>, vector<2x1x16xf32>,
      %228 = vector.extract_strided_slice %207 {offsets = [0, 80], sizes = [2, 16], strides = [1, 1]} : vector<2x256xf32> to vector<2x16xf32>
      %c0_142 = arith.constant 0 : index
      %c5 = arith.constant 5 : index
      %c0_143 = arith.constant 0 : index
      %229 = vector.load %arg16[%c0_142, %c5, %c0_143] : memref<2x16x16xf32, #tpu.memory_space<vmem>>, vector<2x1x16xf32>
      %230 = vector.shape_cast %229 : vector<2x1x16xf32> to vector<2x16xf32>
      %231 = vector.shape_cast %228 : vector<2x16xf32> to vector<2x1x16xf32>
      tpu.vector_store %arg16[%c0_142, %c5, %c0_143], %231 {strides = array<i32>} : memref<2x16x16xf32, #tpu.memory_space<vmem>>, vector<2x1x16xf32>,
      %232 = vector.extract_strided_slice %207 {offsets = [0, 96], sizes = [2, 16], strides = [1, 1]} : vector<2x256xf32> to vector<2x16xf32>
      %c0_144 = arith.constant 0 : index
      %c6 = arith.constant 6 : index
      %c0_145 = arith.constant 0 : index
      %233 = vector.load %arg16[%c0_144, %c6, %c0_145] : memref<2x16x16xf32, #tpu.memory_space<vmem>>, vector<2x1x16xf32>
      %234 = vector.shape_cast %233 : vector<2x1x16xf32> to vector<2x16xf32>
      %235 = vector.shape_cast %232 : vector<2x16xf32> to vector<2x1x16xf32>
      tpu.vector_store %arg16[%c0_144, %c6, %c0_145], %235 {strides = array<i32>} : memref<2x16x16xf32, #tpu.memory_space<vmem>>, vector<2x1x16xf32>,
      %236 = vector.extract_strided_slice %207 {offsets = [0, 112], sizes = [2, 16], strides = [1, 1]} : vector<2x256xf32> to vector<2x16xf32>
      %c0_146 = arith.constant 0 : index
      %c7 = arith.constant 7 : index
      %c0_147 = arith.constant 0 : index
      %237 = vector.load %arg16[%c0_146, %c7, %c0_147] : memref<2x16x16xf32, #tpu.memory_space<vmem>>, vector<2x1x16xf32>
      %238 = vector.shape_cast %237 : vector<2x1x16xf32> to vector<2x16xf32>
      %239 = vector.shape_cast %236 : vector<2x16xf32> to vector<2x1x16xf32>
      tpu.vector_store %arg16[%c0_146, %c7, %c0_147], %239 {strides = array<i32>} : memref<2x16x16xf32, #tpu.memory_space<vmem>>, vector<2x1x16xf32>,
      %240 = vector.extract_strided_slice %207 {offsets = [0, 128], sizes = [2, 16], strides = [1, 1]} : vector<2x256xf32> to vector<2x16xf32>
      %c0_148 = arith.constant 0 : index
      %c8_149 = arith.constant 8 : index
      %c0_150 = arith.constant 0 : index
      %241 = vector.load %arg16[%c0_148, %c8_149, %c0_150] : memref<2x16x16xf32, #tpu.memory_space<vmem>>, vector<2x1x16xf32>
      %242 = vector.shape_cast %241 : vector<2x1x16xf32> to vector<2x16xf32>
      %243 = vector.shape_cast %240 : vector<2x16xf32> to vector<2x1x16xf32>
      tpu.vector_store %arg16[%c0_148, %c8_149, %c0_150], %243 {strides = array<i32>} : memref<2x16x16xf32, #tpu.memory_space<vmem>>, vector<2x1x16xf32>,
      %244 = vector.extract_strided_slice %207 {offsets = [0, 144], sizes = [2, 16], strides = [1, 1]} : vector<2x256xf32> to vector<2x16xf32>
      %c0_151 = arith.constant 0 : index
      %c9 = arith.constant 9 : index
      %c0_152 = arith.constant 0 : index
      %245 = vector.load %arg16[%c0_151, %c9, %c0_152] : memref<2x16x16xf32, #tpu.memory_space<vmem>>, vector<2x1x16xf32>
      %246 = vector.shape_cast %245 : vector<2x1x16xf32> to vector<2x16xf32>
      %247 = vector.shape_cast %244 : vector<2x16xf32> to vector<2x1x16xf32>
      tpu.vector_store %arg16[%c0_151, %c9, %c0_152], %247 {strides = array<i32>} : memref<2x16x16xf32, #tpu.memory_space<vmem>>, vector<2x1x16xf32>,
      %248 = vector.extract_strided_slice %207 {offsets = [0, 160], sizes = [2, 16], strides = [1, 1]} : vector<2x256xf32> to vector<2x16xf32>
      %c0_153 = arith.constant 0 : index
      %c10 = arith.constant 10 : index
      %c0_154 = arith.constant 0 : index
      %249 = vector.load %arg16[%c0_153, %c10, %c0_154] : memref<2x16x16xf32, #tpu.memory_space<vmem>>, vector<2x1x16xf32>
      %250 = vector.shape_cast %249 : vector<2x1x16xf32> to vector<2x16xf32>
      %251 = vector.shape_cast %248 : vector<2x16xf32> to vector<2x1x16xf32>
      tpu.vector_store %arg16[%c0_153, %c10, %c0_154], %251 {strides = array<i32>} : memref<2x16x16xf32, #tpu.memory_space<vmem>>, vector<2x1x16xf32>,
      %252 = vector.extract_strided_slice %207 {offsets = [0, 176], sizes = [2, 16], strides = [1, 1]} : vector<2x256xf32> to vector<2x16xf32>
      %c0_155 = arith.constant 0 : index
      %c11 = arith.constant 11 : index
      %c0_156 = arith.constant 0 : index
      %253 = vector.load %arg16[%c0_155, %c11, %c0_156] : memref<2x16x16xf32, #tpu.memory_space<vmem>>, vector<2x1x16xf32>
      %254 = vector.shape_cast %253 : vector<2x1x16xf32> to vector<2x16xf32>
      %255 = vector.shape_cast %252 : vector<2x16xf32> to vector<2x1x16xf32>
      tpu.vector_store %arg16[%c0_155, %c11, %c0_156], %255 {strides = array<i32>} : memref<2x16x16xf32, #tpu.memory_space<vmem>>, vector<2x1x16xf32>,
      %256 = vector.extract_strided_slice %207 {offsets = [0, 192], sizes = [2, 16], strides = [1, 1]} : vector<2x256xf32> to vector<2x16xf32>
      %c0_157 = arith.constant 0 : index
      %c12 = arith.constant 12 : index
      %c0_158 = arith.constant 0 : index
      %257 = vector.load %arg16[%c0_157, %c12, %c0_158] : memref<2x16x16xf32, #tpu.memory_space<vmem>>, vector<2x1x16xf32>
      %258 = vector.shape_cast %257 : vector<2x1x16xf32> to vector<2x16xf32>
      %259 = vector.shape_cast %256 : vector<2x16xf32> to vector<2x1x16xf32>
      tpu.vector_store %arg16[%c0_157, %c12, %c0_158], %259 {strides = array<i32>} : memref<2x16x16xf32, #tpu.memory_space<vmem>>, vector<2x1x16xf32>,
      %260 = vector.extract_strided_slice %207 {offsets = [0, 208], sizes = [2, 16], strides = [1, 1]} : vector<2x256xf32> to vector<2x16xf32>
      %c0_159 = arith.constant 0 : index
      %c13 = arith.constant 13 : index
      %c0_160 = arith.constant 0 : index
      %261 = vector.load %arg16[%c0_159, %c13, %c0_160] : memref<2x16x16xf32, #tpu.memory_space<vmem>>, vector<2x1x16xf32>
      %262 = vector.shape_cast %261 : vector<2x1x16xf32> to vector<2x16xf32>
      %263 = vector.shape_cast %260 : vector<2x16xf32> to vector<2x1x16xf32>
      tpu.vector_store %arg16[%c0_159, %c13, %c0_160], %263 {strides = array<i32>} : memref<2x16x16xf32, #tpu.memory_space<vmem>>, vector<2x1x16xf32>,
      %264 = vector.extract_strided_slice %207 {offsets = [0, 224], sizes = [2, 16], strides = [1, 1]} : vector<2x256xf32> to vector<2x16xf32>
      %c0_161 = arith.constant 0 : index
      %c14 = arith.constant 14 : index
      %c0_162 = arith.constant 0 : index
      %265 = vector.load %arg16[%c0_161, %c14, %c0_162] : memref<2x16x16xf32, #tpu.memory_space<vmem>>, vector<2x1x16xf32>
      %266 = vector.shape_cast %265 : vector<2x1x16xf32> to vector<2x16xf32>
      %267 = vector.shape_cast %264 : vector<2x16xf32> to vector<2x1x16xf32>
      tpu.vector_store %arg16[%c0_161, %c14, %c0_162], %267 {strides = array<i32>} : memref<2x16x16xf32, #tpu.memory_space<vmem>>, vector<2x1x16xf32>,
      %268 = vector.extract_strided_slice %207 {offsets = [0, 240], sizes = [2, 16], strides = [1, 1]} : vector<2x256xf32> to vector<2x16xf32>
      %c0_163 = arith.constant 0 : index
      %c15 = arith.constant 15 : index
      %c0_164 = arith.constant 0 : index
      %269 = vector.load %arg16[%c0_163, %c15, %c0_164] : memref<2x16x16xf32, #tpu.memory_space<vmem>>, vector<2x1x16xf32>
      %270 = vector.shape_cast %269 : vector<2x1x16xf32> to vector<2x16xf32>
      %271 = vector.shape_cast %268 : vector<2x16xf32> to vector<2x1x16xf32>
      tpu.vector_store %arg16[%c0_163, %c15, %c0_164], %271 {strides = array<i32>} : memref<2x16x16xf32, #tpu.memory_space<vmem>>, vector<2x1x16xf32>,
      %c0_165 = arith.constant 0 : index
      %c0_166 = arith.constant 0 : index
      %272 = vector.load %arg10[%c0_165, %c0_166] : memref<16x512xf32, #tpu.memory_space<vmem>>, vector<16x512xf32>
      %c0_167 = arith.constant 0 : index
      %c0_168 = arith.constant 0 : index
      %c0_169 = arith.constant 0 : index
      %273 = vector.load %arg16[%c0_167, %c0_168, %c0_169] : memref<2x16x16xf32, #tpu.memory_space<vmem>>, vector<1x16x16xf32>
      %274 = vector.shape_cast %273 : vector<1x16x16xf32> to vector<16x16xf32>
      %cst_170 = arith.constant dense<0.000000e+00> : vector<16x512xf32>
      %275 = tpu.matmul %274, %272, %cst_170 {dimension_numbers = #tpu.dot_dimension_numbers<[1], [0], [0], [1], [0, 0, 1, 1], [], []>} : vector<16x16xf32>, vector<16x512xf32>, vector<16x512xf32> -> vector<16x512xf32>
      %c0_171 = arith.constant 0 : index
      %c0_172 = arith.constant 0 : index
      %276 = vector.load %arg17[%c0_171, %c0_172] : memref<16x1024xf32, #tpu.memory_space<vmem>>, vector<16x512xf32>
      tpu.vector_store %arg17[%c0_171, %c0_172], %275 {strides = array<i32>} : memref<16x1024xf32, #tpu.memory_space<vmem>>, vector<16x512xf32>,
      %c1_173 = arith.constant 1 : index
      %c0_174 = arith.constant 0 : index
      %c0_175 = arith.constant 0 : index
      %277 = vector.load %arg16[%c1_173, %c0_174, %c0_175] : memref<2x16x16xf32, #tpu.memory_space<vmem>>, vector<1x16x16xf32>
      %278 = vector.shape_cast %277 : vector<1x16x16xf32> to vector<16x16xf32>
      %cst_176 = arith.constant dense<0.000000e+00> : vector<16x512xf32>
      %279 = tpu.matmul %278, %272, %cst_176 {dimension_numbers = #tpu.dot_dimension_numbers<[1], [0], [0], [1], [0, 0, 1, 1], [], []>} : vector<16x16xf32>, vector<16x512xf32>, vector<16x512xf32> -> vector<16x512xf32>
      %c0_177 = arith.constant 0 : index
      %c512_178 = arith.constant 512 : index
      %280 = vector.load %arg17[%c0_177, %c512_178] : memref<16x1024xf32, #tpu.memory_space<vmem>>, vector<16x512xf32>
      tpu.vector_store %arg17[%c0_177, %c512_178], %279 {strides = array<i32>} : memref<16x1024xf32, #tpu.memory_space<vmem>>, vector<16x512xf32>,
    } else {
    }
    %c0 = arith.constant 0 : index
    %c0_1 = arith.constant 0 : index
    %3 = vector.load %arg11[%c0, %c0_1] : memref<256x16xf32, #tpu.memory_space<vmem>>, vector<256x16xf32>
    %c0_2 = arith.constant 0 : index
    %c0_3 = arith.constant 0 : index
    %4 = vector.load %arg17[%c0_2, %c0_3] : memref<16x1024xf32, #tpu.memory_space<vmem>>, vector<16x1024xf32>
    %cst = arith.constant dense<0.000000e+00> : vector<256x1024xf32>
    %5 = tpu.matmul %3, %4, %cst {dimension_numbers = #tpu.dot_dimension_numbers<[1], [0], [0], [1], [0, 0, 1, 1], [], []>} : vector<256x16xf32>, vector<16x1024xf32>, vector<256x1024xf32> -> vector<256x1024xf32>
    %6 = vector.extract_strided_slice %5 {offsets = [0, 0], sizes = [256, 512], strides = [1, 1]} : vector<256x1024xf32> to vector<256x512xf32>
    %c0_4 = arith.constant 0 : index
    %c0_5 = arith.constant 0 : index
    %c0_6 = arith.constant 0 : index
    %c0_7 = arith.constant 0 : index
    %7 = vector.load %arg12[%c0_4, %c0_5, %c0_6, %c0_7] : memref<1x2x256x512xf32, #tpu.memory_space<vmem>>, vector<1x1x256x512xf32>
    %8 = vector.shape_cast %7 : vector<1x1x256x512xf32> to vector<256x512xf32>
    %9 = vector.shape_cast %6 : vector<256x512xf32> to vector<1x1x256x512xf32>
    tpu.vector_store %arg12[%c0_4, %c0_5, %c0_6, %c0_7], %9 {strides = array<i32>} : memref<1x2x256x512xf32, #tpu.memory_space<vmem>>, vector<1x1x256x512xf32>,
    %10 = vector.extract_strided_slice %5 {offsets = [0, 512], sizes = [256, 512], strides = [1, 1]} : vector<256x1024xf32> to vector<256x512xf32>
    %c0_8 = arith.constant 0 : index
    %c1 = arith.constant 1 : index
    %c0_9 = arith.constant 0 : index
    %c0_10 = arith.constant 0 : index
    %11 = vector.load %arg12[%c0_8, %c1, %c0_9, %c0_10] : memref<1x2x256x512xf32, #tpu.memory_space<vmem>>, vector<1x1x256x512xf32>
    %12 = vector.shape_cast %11 : vector<1x1x256x512xf32> to vector<256x512xf32>
    %13 = vector.shape_cast %10 : vector<256x512xf32> to vector<1x1x256x512xf32>
    tpu.vector_store %arg12[%c0_8, %c1, %c0_9, %c0_10], %13 {strides = array<i32>} : memref<1x2x256x512xf32, #tpu.memory_space<vmem>>, vector<1x1x256x512xf32>,
    return
  }
  func.func @transform_0(%arg0: i32, %arg1: i32) -> (i32, i32, i32) {
    %c0_i32 = arith.constant 0 : i32
    %c0_i32_0 = arith.constant 0 : i32
    %c0_i32_1 = arith.constant 0 : i32
    return %arg0, %c0_i32, %c0_i32_0 : i32, i32, i32
  }
  func.func @transform_1(%arg0: i32, %arg1: i32) -> (i32, i32) {
    %c0_i32 = arith.constant 0 : i32
    %c0_i32_0 = arith.constant 0 : i32
    %c0_i32_1 = arith.constant 0 : i32
    return %c0_i32, %c0_i32_0 : i32, i32
  }
  func.func @transform_2(%arg0: i32, %arg1: i32) -> (i32, i32) {
    %c0_i32 = arith.constant 0 : i32
    %c0_i32_0 = arith.constant 0 : i32
    %c0_i32_1 = arith.constant 0 : i32
    return %c0_i32, %c0_i32_0 : i32, i32
  }
  func.func @transform_3(%arg0: i32, %arg1: i32) -> (i32, i32) {
    %c0_i32 = arith.constant 0 : i32
    %c0_i32_0 = arith.constant 0 : i32
    %c0_i32_1 = arith.constant 0 : i32
    return %c0_i32, %c0_i32_0 : i32, i32
  }
  func.func @transform_4(%arg0: i32, %arg1: i32) -> (i32, i32) {
    %c0_i32 = arith.constant 0 : i32
    %c0_i32_0 = arith.constant 0 : i32
    %c0_i32_1 = arith.constant 0 : i32
    return %c0_i32, %c0_i32_0 : i32, i32
  }
  func.func @transform_5(%arg0: i32, %arg1: i32) -> (i32, i32) {
    %c0_i32 = arith.constant 0 : i32
    %c0_i32_0 = arith.constant 0 : i32
    %c0_i32_1 = arith.constant 0 : i32
    return %c0_i32, %c0_i32_0 : i32, i32
  }
  func.func @transform_6(%arg0: i32, %arg1: i32) -> (i32, i32) {
    %c0_i32 = arith.constant 0 : i32
    %c0_i32_0 = arith.constant 0 : i32
    %c0_i32_1 = arith.constant 0 : i32
    return %c0_i32, %c0_i32_0 : i32, i32
  }
  func.func @transform_7(%arg0: i32, %arg1: i32) -> (i32, i32) {
    %c0_i32 = arith.constant 0 : i32
    %c0_i32_0 = arith.constant 0 : i32
    %c0_i32_1 = arith.constant 0 : i32
    return %c0_i32, %c0_i32_0 : i32, i32
  }
  func.func @transform_8(%arg0: i32, %arg1: i32) -> (i32, i32) {
    %c0_i32 = arith.constant 0 : i32
    %c0_i32_0 = arith.constant 0 : i32
    %c0_i32_1 = arith.constant 0 : i32
    return %c0_i32, %c0_i32_0 : i32, i32
  }
  func.func @transform_9(%arg0: i32, %arg1: i32) -> (i32, i32) {
    %c0_i32 = arith.constant 0 : i32
    %c0_i32_0 = arith.constant 0 : i32
    return %arg1, %c0_i32 : i32, i32
  }
  func.func @transform_10(%arg0: i32, %arg1: i32) -> (i32, i32, i32, i32) {
    %c0_i32 = arith.constant 0 : i32
    %c0_i32_0 = arith.constant 0 : i32
    %c0_i32_1 = arith.constant 0 : i32
    return %arg0, %c0_i32, %arg1, %c0_i32_0 : i32, i32, i32, i32
  }
}

</mosaic_0001>

<bundles_post_ra>
// kernel: simple_cnn_forward.1
= control target key start
LH: loop header
LB: loop body
LE: loop exit
PB: predicated region body
PF: predicated region fallthrough
CT: control target
= control target key end

     0   :  { %s9660_s0 = inlined_call_operand.vmem [shape: f32[2,8,512], index: 0, kind: input, shape index: {}]   ;;  %s9661_s1 = inlined_call_operand.hbm [shape: f32[9,256], index: 1, kind: input, shape index: {}]   ;;  %s9662_s2 = inlined_call_operand.vmem [shape: f32[64,72], index: 2, kind: input, shape index: {}]   ;;  %s9663_s3 = inlined_call_operand.vmem [shape: f32[64,1], index: 3, kind: input, shape index: {}]   ;;  %s9664_s4 = inlined_call_operand.vmem [shape: f32[128,576], index: 4, kind: input, shape index: {}]   ;;  %s9665_s5 = inlined_call_operand.vmem [shape: f32[128,1], index: 5, kind: input, shape index: {}]   ;;  %s9666_s6 = inlined_call_operand.hbm [shape: f32[2,128], index: 6, kind: input, shape index: {}]   ;;  %s9667_s7 = inlined_call_operand.vmem [shape: f32[2,1], index: 7, kind: input, shape index: {}]   ;;  %s9668_s8 = inlined_call_operand.hbm [shape: f32[16,512], index: 8, kind: input, shape index: {}]   ;;  %s9669_s9 = inlined_call_operand.hbm [shape: f32[512,16], index: 9, kind: input, shape index: {}]   ;;  %s9670_s10 = inlined_call_operand.hbm [shape: f32[2,2,512,512], index: 10, kind: output, shape index: {}]  }
   0x1   :  { %9766 = sst [smem:[#allocation120_spill]] %s9660_s0 }
   0x2   :  { %9767 = sst [smem:[#allocation121_spill]] %s9661_s1 }
   0x3   :  { %9768 = sst [smem:[#allocation122_spill]] %s9662_s2 }
   0x4   :  { %9769 = sst [smem:[#allocation123_spill]] %s9663_s3 }
   0x5   :  { %9770 = sst [smem:[#allocation124_spill]] %s9664_s4 }
   0x6   :  { %9771 = sst [smem:[#allocation125_spill]] %s9665_s5 }
   0x7   :  { %9772 = sst [smem:[#allocation126_spill]] %s9666_s6 }
   0x8   :  { %9773 = sst [smem:[#allocation127_spill]] %s9667_s7 }
   0x9   :  { %9774 = sst [smem:[#allocation128_spill]] %s9668_s8 }
   0xa   :  { %9775 = sst [smem:[#allocation129_spill]] %s9670_s10 }
   0xb   :  { %15 = vsyncpa [#allocation8], 0 }
   0xc   :  { %16 = vsyncpa [#allocation11], 0 }
   0xd   :  { %17 = vsyncpa [#allocation14], 0 }
   0xe   :  { %19 = vsyncpa [#allocation14 + $0x1], 0 }
   0xf   :  { %20 = vsyncpa [#allocation9], 0 }
  0x10   :  { %22 = vsyncpa [#allocation9 + $0x1], 0  ;;  %s6349_s13 = smov 0   ;;  %s6351_s14 = smov 0  }
  0x11   :  { %s6353_s15 = smov 0   ;;  %s6355_s16 = smov 0  }
  0x12   :  { %s6357_s17 = smov 0   ;;  %s6359_s18 = smov 0  }
  0x13   :  { %s6361_s19 = smov 0   ;;  %s6363_s20 = smov 0  }
  0x14   :  { %s6365_s21 = smov 0   ;;  %s6367_s22 = smov 0  }
  0x15   :  { %s6369_s23 = smov 0  }
  0x16 LB: > { %9776 = sst [smem:[#allocation22_spill]] %s6219_s13  ;;  %s5402_s24 = sadd.s32 4294967295, %s6259_s23   ;;  %s6259_s23 = sphi %s6369_s23, %s28_s23   ;;  %s6255_s22 = sphi %s6367_s22, %s10195_s22   ;;  %s6251_s21 = sphi %s6365_s21, %s10194_s21   ;;  %s6247_s20 = sphi %s6363_s20, %s10193_s20   ;;  %s6243_s19 = sphi %s6361_s19, %s10192_s19   ;;  %s6239_s18 = sphi %s6359_s18, %s10191_s18   ;;  %s6235_s17 = sphi %s6357_s17, %s10190_s17   ;;  %s6231_s16 = sphi %s6355_s16, %s10189_s16   ;;  %s6227_s15 = sphi %s6353_s15, %s10188_s15   ;;  %s6223_s14 = sphi %s6351_s14, %s10187_s14   ;;  %s6219_s13 = sphi %s6349_s13, %s10186_s13  }
  0x17   : > { %s5403_s25 = sadd.s32 4294967294, %s6259_s23   ;;  %p254_p0 = scmp.ne.s32.totalorder %s6235_s17, %s6231_s16 }
  0x18   : > { %p6405_p1 = scmp.eq.s32.totalorder %s5402_s24, 0  ;;  %p279_p2 = scmp.ne.s32.totalorder %s6227_s15, %s6223_s14 }
  0x19   : > { %p280_p3 = scmp.eq.s32.totalorder %s5402_s24, 3  ;;  %p285_p5 = scmp.ne.s32.totalorder %s6223_s14, %s6219_s13 }
  0x1a   : > { %s9777_s26 = scalar_select %p6405_p1, 1, 0 }
  0x1b   : > { %p6413_p4 = por %p6405_p1, %p254_p0  ;;  %p6419_p6 = por %p280_p3, %p279_p2 }
  0x1c   : > { %p286_p7 = scmp.eq.s32.totalorder %s5403_s25, 3  ;;  %p5404_p8 = scmp.ge.s32.totalorder %s6259_s23, 1 }
  0x1d   : > { %s9778_s27 = scalar_select %p6413_p4, 1, 0 }
  0x1e   : > { %s9779_s28 = scalar_select %p6419_p6, 1, 0 }
  0x1f   : > { %p293_p9 = scmp.lt.s32.totalorder %s6259_s23, 5  ;;  %p6425_p10 = por %p286_p7, %p285_p5 }
  0x20   : > { %9780 = sst [smem:[#allocation23_spill]] %s9779_s28  ;;  %s6261_s11 = smov [#allocation10]  }
  0x21   : > { %s9781_s29 = scalar_select %p6425_p10, 1, 0 }
  0x22   : > { %p6429_p11 = pnand %p5404_p8, %p293_p9  ;;  %s331_s12 = sshll.u32 %s6261_s11, 4  ;;  %s332_s12 = int_to_ptr.vmem [resolvable:$true] %s331_s12 }
  0x23   : > { %9782 = sst [smem:[#allocation24_spill]] %s9781_s29  ;;  %s6262_s24 = smov [#allocation7]  }
  0x24   : > { %p5903_p12 = pneg %p6429_p11  ;;  %s305_s25 = sshll.u32 %s6262_s24, 4  ;;  %s306_s25 = int_to_ptr.vmem [resolvable:$true] %s305_s25 }
  0x25   : > { %s6062_s29 = scalar_lea.vmem %s332_s12, 32  ;;  %p6070_p7 = scmp.lt.s32.totalorder %s332_s12, %s332_s12 }
  0x26   : > { %p6437_p13 = pnand %p5903_p12, %p6405_p1  ;;  %p6063_p2 = scmp.ne.s32.totalorder %s332_s12, %s6062_s29 }
  0x27   : > { %p6071_p8 = scmp.lt.s32.totalorder %s6062_s29, %s6062_s29 }
  0x28   : > { %p6053_p0 = pneg %p6437_p13 }
  0x29   : > { %p6072_p9 = por %p6071_p8, %p6070_p7 }
  0x2a   : > { %p6065_p3 = pnand %p6063_p2, %p6053_p0 }
  0x2c   : > { %p6066_p5 = pneg %p6065_p3 }
  0x2e   : > { %p6073_p10 = pnand %p6072_p9, %p6066_p5 }
  0x30   : > { %6076 = shalt.err (!%p6073_p10)
}
  0x31   : > { %s9785_s6 = sld [smem:[#allocation126_spill]]  ;;  %s6088_s24 = scalar_lea.vmem %s306_s25, 512 }
  0x32   : > { %p6089_p12 = scmp.ne.s32.totalorder %s306_s25, %s6088_s24  ;;  %p6096_p3 = scmp.lt.s32.totalorder %s306_s25, %s306_s25 }
  0x33   : > { %p6097_p4 = scmp.lt.s32.totalorder %s6088_s24, %s6088_s24 }
  0x34   : > { %p6091_p6 = pnand %p6089_p12, %p6053_p0 }
  0x35   : > { %p6098_p1 = por %p6097_p4, %p6096_p3 }
  0x36   : > { %p6092_p2 = pneg %p6091_p6 }
  0x37   : > { %5909 = dma.hbm_to_vmem [thread:$0]  (!%p6437_p13), %s9785_s6, 32, %s332_s12, [#allocation11]  }
  0x38   : > { %p6099_p7 = pnand %p6098_p1, %p6092_p2 }
  0x3a   : > { %6102 = shalt.err (!%p6099_p7)
}
  0x3b   : > { %s6263_s29 = smov 256   ;;  %s6264_s10 = smov 16  }
  0x3c   : > { %s9786_s1 = sld [smem:[#allocation121_spill]]  ;;  %s6265_s12 = smov [#allocation12]  }
  0x3d   : > { %s344_s6 = sshll.u32 %s6265_s12, 4  ;;  %s345_s6 = int_to_ptr.vmem [resolvable:$true] %s344_s6 }
  0x3e   : > { %s6114_s28 = scalar_lea.vmem %s345_s6, 1024  ;;  %p6122_p1 = scmp.lt.s32.totalorder %s345_s6, %s345_s6 }
  0x3f   : > { %p6115_p10 = scmp.ne.s32.totalorder %s345_s6, %s6114_s28  ;;  %p6123_p5 = scmp.lt.s32.totalorder %s6114_s28, %s6114_s28 }
  0x41   : > { %p6117_p6 = pnand %p6115_p10, %p6053_p0  ;;  %p6124_p8 = por %p6123_p5, %p6122_p1 }
  0x42   : > { %5906 = dma.hbm_to_vmem [thread:$0]  (!%p6437_p13), %s9786_s1, 512, %s306_s25, [#allocation8], %s6263_s29, %s6263_s29, %s6264_s10  }
  0x43   : > { %p6118_p4 = pneg %p6117_p6 }
  0x45   : > { %p6125_p9 = pnand %p6124_p8, %p6118_p4 }
  0x47   : > { %6128 = shalt.err (!%p6125_p9)
}
  0x48   : > { %s6266_s24 = smov 512   ;;  %s6267_s10 = smov 32  }
  0x49   : > { %s9787_s8 = sld [smem:[#allocation128_spill]]  ;;  %s37_s28 = sadd.s32 1, %s6251_s21 }
  0x4a   : > { %s40_s13 = sadd.s32 1, %s6255_s22  ;;  %p38_p0 = scmp.ge.s32.totalorder %s37_s28, 2 }
  0x4b   : > { %s241_s11 = sadd.s32 1, %s6239_s18  ;;  %p248_p12 = scmp.ne.s32.totalorder %s6239_s18, %s6235_s17 }
  0x4c   : > { %p249_p2 = scmp.eq.s32.totalorder %s6259_s23, 0  ;;  %s10197_s28 = smov (%p38_p0, %s37_s28), 0 }
  0x4d   : > { %9788 = sst [smem:[#allocation25_spill]] %s10197_s28  ;;  %s10199_s13 = smov (!%p38_p0, %s40_s13), %s6255_s22 }
  0x4e   : > { %s238_s16 = ssub.s32 %s6251_s21, %s10197_s28  ;;  %p6478_p3 = por %p249_p2, %p248_p12 }
  0x4f   : > { %5912 = dma.hbm_to_vmem [thread:$0]  (!%p6437_p13), %s9787_s8, 1024, %s345_s6, [#allocation11], %s6266_s24, %s6266_s24, %s6267_s10  }
  0x50   : > { %p42_p13 = scmp.ge.s32.totalorder %s10199_s13, 2  ;;  %p239_p7 = scmp.eq.s32.totalorder %s238_s16, 0 }
  0x51   : > { %s269_s6 = sadd.s32 1, %s6227_s15  ;;  %p5924_p10 = scmp.lt.s32.totalorder %s6259_s23, 4 }
  0x52   : > { %s10201_s13 = smov (%p42_p13, %s10199_s13), 0  ;;  %s366_s25 = sand.u32 1, %s6239_s18  }
  0x53   : > { %s6487_s24 = scalar_select %p239_p7, %s6239_s18, %s241_s11  }
  0x54   : > { %s264_s10 = ssub.s32 %s6255_s22, %s10201_s13  ;;  %s5409_s1 = sshll.u32 %s366_s25, 8 }
  0x55   : > { %s266_s29 = sor.u32 %s264_s10, %s238_s16  ;;  %s5716_s8 = sshll.u32 %s6251_s21, 12 }
  0x56   : > { %p267_p6 = scmp.eq.s32.totalorder %s266_s29, 0  ;;  %s376_s4 = scalar_lea.hbm %s9669_s9, %s5716_s8 }
  0x57   : > { %s370_s2 = scalar_lea.vmem [#allocation13], %s5409_s1  ;;  %p6503_p4 = pnand %p5924_p10, %p6478_p3 }
  0x58   : > { %s6494_s28 = scalar_select %p267_p6, %s6227_s15, %s269_s6  }
  0x59   : > { %s377_s3 = sshll.u32 %s370_s2, 4  ;;  %s367_s16 = scalar_lea.sflag [#allocation14], %s366_s25  ;;  %s378_s3 = int_to_ptr.vmem [resolvable:$true] %s377_s3 }
  0x5a   : > { %p6131_p1 = pneg %p6503_p4  ;;  %s6142_s10 = scalar_lea.vmem %s378_s3, 4096 }
  0x5b   : > { %p6143_p5 = scmp.ne.s32.totalorder %s378_s3, %s6142_s10  ;;  %s6268_s6 = smov [#allocation13]  }
  0x5c   : > { %s6147_s5 = sshll.u32 %s6268_s6, 4  ;;  %s6148_s5 = int_to_ptr.vmem [resolvable:$false] %s6147_s5 }
  0x5d   : > { %p6145_p8 = pnand %p6143_p5, %p6131_p1  ;;  %s6149_s1 = scalar_lea.vmem %s6148_s5, 8192 }
  0x5e   : > { %p6150_p0 = scmp.lt.s32.totalorder %s378_s3, %s6148_s5  ;;  %p6151_p12 = scmp.lt.s32.totalorder %s6149_s1, %s6142_s10 }
  0x5f   : > { %p6146_p9 = pneg %p6145_p8 }
  0x60   : > { %p6152_p2 = por %p6151_p12, %p6150_p0 }
  0x62   : > { %p6153_p13 = pnand %p6152_p2, %p6146_p9 }
  0x64   : > { %6156 = shalt.err (!%p6153_p13)
}
  0x65   : > { %s6269_s2 = smov 128   ;;  %s6270_s7 = smov 8  }
  0x66   : > { %5916 = dma.hbm_to_vmem [thread:$0]  (!%p6503_p4), %s376_s4, 4096, %s378_s3, %s367_s16, %s6269_s2, %s6269_s2, %s6270_s7  }
  0x67   : > { %389 = sbr.rel (%p6429_p11) target bundleno = 2255 (0x8cf), region = 60  ;;  %p9791_p3 = scmp.ne.s32.totalorder (!%p6429_p11), %s9777_s26, 0 }
  0x6c   : > { %6202 = dma.done.wait (%p9791_p3), [#allocation8], 512  }
  0x6d   : > { %6204 = vsyncadd (%p9791_p3), [#allocation8], 4294966784 }
  0x6e   : > { %6206 = dma.done.wait (%p9791_p3), [#allocation11], 1056  }
  0x6f   : > { %6208 = vsyncadd (%p9791_p3), [#allocation11], 4294966240  ;;  %s403_s8 = sand.u32 1, %s6235_s17   ;;  %p9792_p11 = scmp.ne.s32.totalorder %s9778_s27, 0 }
  0x70   : > { %s5416_s12 = sshll.u32 %s403_s8, 8  ;;  %s404_s3 = scalar_lea.sflag [#allocation14], %s403_s8 }
  0x71   : > { %s6522_s4 = scalar_lea.vmem [#allocation13], %s5416_s12 }
  0x72   : > { %6210 = dma.done.wait (%p9792_p11), %s404_s3, 4096  }
  0x73   : > { %6212 = vsyncadd (%p9792_p11), %s404_s3, 4294963200  ;;  %s9684_s30 = sand.u32 1, %s6223_s14   ;;  %p449_p7 = scmp.lt.s32.totalorder %s6247_s20, 1 }
  0x74   : > { %s5417_s26 = sshll.u32 %s9684_s30, 11  ;;  %s9793_s0 = sld [smem:[#allocation120_spill]] }
  0x75   : > { %s450_s25 = scalar_select %p449_p7, %s6247_s20, 1 }
  0x76   : > { %s6536_s6 = scalar_lea.vmem [#allocation15], %s5417_s26  ;;  %p5420_p10 = scmp.ne.s32.totalorder %s6243_s19, 0 }
  0x77   : > { %s5717_s29 = sshll.u32 %s450_s25, 5 }
  0x78   : > { %459 = sbr.rel (%p5420_p10) target bundleno = 1786 (0x6fa), region = 80 }
  0x7a   : > { %s453_s10 = scalar_lea.vmem %s9793_s0, %s5717_s29 }
  0x7d   : > { %v6539_v0 = vld [vmem:[%s453_s10 + $0x10] sm:$0xff]  ;;  %v6541_v1 = vld [vmem:[%s453_s10 + $0x8] sm:$0xff]  ;;  %s9685_s27 = smov 111   ;;  %v703_v2 = vld [vmem:[%s453_s10 + $0x18] sm:$0xff]  ;;  %v6272_v3 = vmov 0   ;;  %s9689_s5 = smov 112   ;;  %v471_v22 = vlaneseq }
  0x7e   : > { %723 = vrot.lane.b32.xlu0 %v6539_v0, %s9685_s27  ;;  %721 = vrot.lane.b32.xlu1 %v6541_v1, %s9685_s27  ;;  %s9687_s1 = smov 113   ;;  %s9691_s2 = smov 127   ;;  %v561_v4 = vld [vmem:[%s453_s10] sm:$0xff]  ;;  %v9704_v5 = vmov 0.0   ;;  %v6610_v14 = vld [vmem:[#allocation4 + $0xe8] sm:$0xff]  ;;  %v6612_v15 = vld [vmem:[#allocation4 + $0x18] sm:$0xff] }
  0x7f   : > { %6049 = vset.pattern.permute.xlu0 %v6272_v3  ;;  %6050 = vset.pattern.permute.xlu1 %v6272_v3  ;;  %s6276_s7 = smov 1   ;;  %s6277_s8 = smov 15   ;;  %v6618_v16 = vld [vmem:[#allocation4 + $0x98] sm:$0xff]  ;;  %v6620_v17 = vld [vmem:[#allocation4 + $0x40] sm:$0xff]  ;;  %v6626_v18 = vld [vmem:[#allocation4 + $0x88] sm:$0xff]  ;;  %v6654_v24 = vshrl.u32 %v471_v22, 7 }
  0x80   : > { %899 = vmatprep.mubr.f32.mxu0 %v9704_v5  ;;  %s6279_s12 = smov 16   ;;  %s6280_s3 = smov 17   ;;  %v6628_v19 = vld [vmem:[#allocation4 + $0x38] sm:$0xff]  ;;  %v6634_v20 = vld [vmem:[#allocation4 + $0x70] sm:$0xff]  ;;  %v461_v26 = vld [vmem:[#allocation7 + $0x8] sm:$0xff]  ;;  %v9797_v38 = vmov 0 }
  0x81   : > { %s9794_s29 = sld [smem:[#allocation123_spill]]  ;;  %v6636_v21 = vld [vmem:[#allocation4 + $0xb0] sm:$0xff]  ;;  %v463_v23 = vld [vmem:[#allocation7 + $0x18] sm:$0x1]  ;;  %9795 = vst [vmem:[#allocation26_spill] sm:$0xff] %v6654_v24  ;;  %v6661_v27 = vsub.s32 0, %v6654_v24 }
  0x82   : > { %725 = vrot.lane.b32.xlu0 %v703_v2, %s9685_s27  ;;  %688 = vrot.lane.b32.xlu1 %v6539_v0, %s9689_s5  ;;  %v462_v25 = vld [vmem:[#allocation7 + $0x10] sm:$0x1]  ;;  %vm705_vm0 = vcmp.gt.f32.partialorder %v463_v23, 0.0  ;;  %v460_v28 = vld [vmem:[#allocation7] sm:$0xff]  ;;  %vm468_vm2 = vcmp.gt.f32.partialorder %v461_v26, 0.0  ;;  %v675_v32 = vsub.s32 7, %v6654_v24 }
  0x83   : > { %vm704_vm1 = vcmp.gt.f32.partialorder %v462_v25, 0.0  ;;  %9796 = vst [vmem:[#allocation27_spill] sm:$0xff] %v6661_v27  ;;  %v707_v29 = vsel %vm705_vm0, 1, %v6272_v3  ;;  %vm467_vm3 = vcmp.gt.f32.partialorder %v460_v28, 0.0  ;;  %v6673_v36 = vsel %vm468_vm2, 1, %v6272_v3  ;;  %s9815_s27 = smov 127  }
  0x84   : > { %v706_v30 = vsel %vm704_vm1, 1, %v6272_v3  ;;  %v715_v31 = vrot.slane %v707_v29, %v6661_v27  ;;  %v6676_v37 = vsel %vm467_vm3, 1, %v6272_v3  ;;  %vm9698_vm5 = vcmask 908288   ;;  %v6816_v23 = vld [vmem:[#allocation4 + $0x48] sm:$0xff]  ;;  %s9821_s26 = sld [smem:[#allocation122_spill]]  ;;  %s9874_s25 = smov 113  }
  0x85   : > { %v711_v35 = vrot.slane %v706_v30, %v6661_v27  ;;  %v6687_v39 = vrot.slane %v6673_v36, %v675_v32  ;;  %v644_v40 = vsub.s32 6, %v6654_v24  ;;  %v9801_v43 = vmov 0  ;;  %v6827_v30 = vld [vmem:[#allocation4 + $0x58] sm:$0xff]  ;;  %s9885_s11 = sld [smem:[#allocation124_spill]] }
  0x86   : > { %690 = vrot.lane.b32.xlu0 %v703_v2, %s9689_s5  ;;  %686 = vrot.lane.b32.xlu1 %v6541_v1, %s9689_s5  ;;  %vm6682_vm4 = vcmp.eq.s32.totalorder %v715_v31, 1  ;;  %v6695_v44 = vrot.slane %v6676_v37, %v675_v32  ;;  %vm9697_vm7 = vcmask 916480   ;;  %vm661_vm10 = vcmask 924672   ;;  %v6835_v32 = vld [vmem:[#allocation4 + $0x80] sm:$0xff]  ;;  %s9816_s5 = smov 112  }
  0x87   : > { %v769_v6 = vld [vmem:[%s9794_s29 + $0x38] sm:$0xff]  ;;  %v768_v7 = vld [vmem:[%s9794_s29 + $0x30] sm:$0xff]  ;;  %v766_v8 = vld [vmem:[%s9794_s29 + $0x20] sm:$0xff]  ;;  %v9798_v38 = vsel %vm6682_vm4, 4294967295, %v9797_v38  ;;  %9800 = vst [vmem:[#allocation29_spill] sm:$0xff] %v6687_v39  ;;  %vm6690_vm6 = vcmp.eq.s32.totalorder %v711_v35, 1  ;;  %v6709_v47 = vrot.slane %v6673_v36, %v644_v40  ;;  %v6724_v52 = vrot.slane %v6676_v37, %v644_v40 }
  0x88   : > { %v767_v9 = vld [vmem:[%s9794_s29 + $0x28] sm:$0xff]  ;;  %v764_v10 = vld [vmem:[%s9794_s29 + $0x10] sm:$0xff]  ;;  %v765_v11 = vld [vmem:[%s9794_s29 + $0x18] sm:$0xff]  ;;  %9799 = vst [vmem:[#allocation28_spill] sm:$0xff] %v9798_v38  ;;  %v9802_v43 = vsel %vm6690_vm6, 4294967295, %v9801_v43  ;;  %vm9696_vm8 = vcmp.eq.s32.totalorder %v6687_v39, 1  ;;  %v478_v40 = vrot.slane %v6673_v36, %v6661_v27 }
  0x89   : > { %v762_v12 = vld [vmem:[%s9794_s29] sm:$0xff]  ;;  %v763_v13 = vld [vmem:[%s9794_s29 + $0x8] sm:$0xff]  ;;  %9803 = vst [vmem:[#allocation30_spill] sm:$0xff] %v9802_v43  ;;  %9804 = vst [vmem:[#allocation31_spill] sm:$0xff] %v6695_v44  ;;  %vm9695_vm9 = vcmp.eq.s32.totalorder %v6695_v44, 1  ;;  %vm9694_vm11 = vcmp.eq.s32.totalorder %v6709_v47, 1 }
  0x8a   : > { %659 = vrot.lane.b32.xlu1 %v703_v2, %s9687_s1  ;;  %657 = vrot.lane.b32.xlu0 %v6539_v0, %s9687_s1  ;;  %9805 = vst [vmem:[#allocation32_spill] sm:$0xff] %v6709_v47  ;;  %9806 = vst [vmem:[#allocation33_spill] sm:$0xff] %v6724_v52  ;;  %v613_v53 = vsub.s32 5, %v6654_v24  ;;  %v596_v57 = vsub.s32 4, %v6654_v24  ;;  %vm9693_vm12 = vcmp.eq.s32.totalorder %v6724_v52, 1  ;;  %v566_v59 = vsub.s32 3, %v6654_v24 }
  0x8b   : > { %vm630_vm13 = vcmask 1039360   ;;  %vm583_vm2 = vcmask 7168  }
  0x8c   : > { %v6737_v58 = vrot.slane %v6673_v36, %v613_v53  ;;  %v6741_v62 = vrot.slane %v6676_v37, %v613_v53  ;;  %v6752_v3 = vrot.slane %v6676_v37, %v596_v57 }
  0x8e   : > { %655 = vrot.lane.b32.xlu0 %v6541_v1, %s9687_s1  ;;  %626 = vrot.lane.b32.xlu1 %v6539_v0, %s9691_s2  ;;  %9807 = vst [vmem:[#allocation34_spill] sm:$0xff] %v6737_v58  ;;  %9808 = vst [vmem:[#allocation35_spill] sm:$0xff] %v6741_v62  ;;  %vm620_vm14 = vcmp.eq.s32.totalorder %v6737_v58, 1  ;;  %vm619_vm15 = vcmp.eq.s32.totalorder %v6741_v62, 1  ;;  %vm9699_vm1 = vcmp.eq.s32.totalorder %v6752_v3, 1  ;;  %s9903_s1 = sld [smem:[#allocation125_spill]] }
  0x8f   : > { %9810 = vst [vmem:[#allocation37_spill] sm:$0xff] %v6752_v3 }
  0x92   : > { %628 = vrot.lane.b32.xlu0 %v703_v2, %s9691_s2  ;;  %624 = vrot.lane.b32.xlu1 %v6541_v1, %s9691_s2  ;;  %v6745_v2 = vrot.slane %v6673_v36, %v596_v57  ;;  %v738_v57 = vld [vmem:[%s9821_s26 + $0x10] sm:$0xff]  ;;  %s6282_s2 = smov 96  }
  0x94   : > { %9809 = vst [vmem:[#allocation36_spill] sm:$0xff] %v6745_v2  ;;  %vm9700_vm0 = vcmp.eq.s32.totalorder %v6745_v2, 1 }
  0x96   : > { %581 = vrot.lane.b32.xlu1 %v6539_v0, %s6276_s7  ;;  %579 = vrot.lane.b32.xlu0 %v6541_v1, %s6276_s7 }
  0x9a   : > { %577 = vrot.lane.b32.xlu0 %v561_v4, %s6276_s7  ;;  %548 = vrot.lane.b32.xlu1 %v6541_v1, %s6277_s8 }
  0x9e   : > { %550 = vrot.lane.b32.xlu0 %v6539_v0, %s6277_s8  ;;  %546 = vrot.lane.b32.xlu1 %v561_v4, %s6277_s8 }
  0xa2   : > { %519 = vrot.lane.b32.xlu1 %v6539_v0, %s6279_s12  ;;  %517 = vrot.lane.b32.xlu0 %v6541_v1, %s6279_s12 }
  0xa6   : > { %515 = vrot.lane.b32.xlu0 %v561_v4, %s6279_s12  ;;  %486 = vrot.lane.b32.xlu1 %v6541_v1, %s6280_s3 }
  0xaa   : > { %488 = vrot.lane.b32.xlu0 %v6539_v0, %s6280_s3  ;;  %484 = vrot.lane.b32.xlu1 %v561_v4, %s6280_s3  ;;  %v6758_v4 = vrot.slane %v6673_v36, %v566_v59 }
  0xac   : > { %9811 = vst [vmem:[#allocation38_spill] sm:$0xff] %v6758_v4  ;;  %vm573_vm3 = vcmp.eq.s32.totalorder %v6758_v4, 1 }
  0xae   : > { %807 = vperm.xlu0 %6049, %v769_v6   ;;  %802 = vperm.xlu1 %6050, %v768_v7  }
  0xb2   : > { %792 = vperm.xlu0 %6049, %v766_v8   ;;  %797 = vperm.xlu1 %6050, %v767_v9  }
  0xb6   : > { %782 = vperm.xlu0 %6049, %v764_v10   ;;  %787 = vperm.xlu1 %6050, %v765_v11   ;;  %v6775_v10 = vrot.slane %v6676_v37, %v566_v59  ;;  %v535_v11 = vsub.s32 2, %v6654_v24  ;;  %v739_v59 = vld [vmem:[%s9821_s26 + $0x18] sm:$0xff] }
  0xb8   : > { %9812 = vst [vmem:[#allocation39_spill] sm:$0xff] %v6775_v10 }
  0xba   : > { %772 = vperm.xlu0 %6049, %v762_v12   ;;  %777 = vperm.xlu1 %6050, %v763_v13  }
  0xbe   : > { %1224 = vrot.lane.b32.xlu0 %v6610_v14, %s6279_s12  ;;  %1230 = vrot.lane.b32.xlu1 %v6612_v15, %s6279_s12 }
  0xc2   : > { %1212 = vrot.lane.b32.xlu0 %v6618_v16, %s6279_s12  ;;  %1218 = vrot.lane.b32.xlu1 %v6620_v17, %s6279_s12 }
  0xc6   : > { %1200 = vrot.lane.b32.xlu0 %v6626_v18, %s6279_s12  ;;  %1206 = vrot.lane.b32.xlu1 %v6628_v19, %s6279_s12 }
  0xca   : > { %1188 = vrot.lane.b32.xlu0 %v6634_v20, %s6279_s12  ;;  %1194 = vrot.lane.b32.xlu1 %v6636_v21, %s6279_s12 }
  0xce   : > { %1064 = vrot.lane.b32.xlu0 %v6610_v14, %s6280_s3  ;;  %1070 = vrot.lane.b32.xlu1 %v6612_v15, %s6280_s3 }
  0xd2   : > { %1052 = vrot.lane.b32.xlu0 %v6618_v16, %s6280_s3  ;;  %1058 = vrot.lane.b32.xlu1 %v6620_v17, %s6280_s3 }
  0xd6   : > { %1040 = vrot.lane.b32.xlu0 %v6626_v18, %s6280_s3  ;;  %1046 = vrot.lane.b32.xlu1 %v6628_v19, %s6280_s3 }
  0xda   : > { %1028 = vrot.lane.b32.xlu0 %v6634_v20, %s6280_s3  ;;  %1034 = vrot.lane.b32.xlu1 %v6636_v21, %s6280_s3 }
  0xde   : > { %1544 = vrot.lane.b32.xlu0 %v6610_v14, %s6276_s7  ;;  %1550 = vrot.lane.b32.xlu1 %v6612_v15, %s6276_s7 }
  0xe2   : > { %1532 = vrot.lane.b32.xlu0 %v6618_v16, %s6276_s7  ;;  %1538 = vrot.lane.b32.xlu1 %v6620_v17, %s6276_s7 }
  0xe6   : > { %1520 = vrot.lane.b32.xlu0 %v6626_v18, %s6276_s7  ;;  %1526 = vrot.lane.b32.xlu1 %v6628_v19, %s6276_s7 }
  0xea   : > { %1508 = vrot.lane.b32.xlu0 %v6634_v20, %s6276_s7  ;;  %1514 = vrot.lane.b32.xlu1 %v6636_v21, %s6276_s7 }
  0xee   : > { %1384 = vrot.lane.b32.xlu0 %v6610_v14, %s6277_s8  ;;  %1390 = vrot.lane.b32.xlu1 %v6612_v15, %s6277_s8  ;;  %v6791_v15 = vld [vmem:[#allocation4 + $0xf8] sm:$0xff] }
  0xf0   : > { %v724_v33 = vpop.permute.xlu0 %723  ;;  %v722_v34 = vpop.permute.xlu1 %721 }
  0xf1   : > { %v728_v46 = vsel %vm9698_vm5, %v722_v34, %v724_v33 }
  0xf2   : > { %1372 = vrot.lane.b32.xlu0 %v6618_v16, %s6277_s8  ;;  %1378 = vrot.lane.b32.xlu1 %v6620_v17, %s6277_s8  ;;  %v6798_v16 = vld [vmem:[#allocation4 + $0x60] sm:$0xff] }
  0xf4   : > { %v726_v41 = vpop.permute.xlu0 %725  ;;  %v689_v42 = vpop.permute.xlu1 %688 }
  0xf5   : > { %v729_v45 = vsel %vm9698_vm5, %v724_v33, %v726_v41  ;;  %v6847_v41 = vld [vmem:[#allocation4 + $0x28] sm:$0xff] }
  0xf6   : > { %5719 = vmatprep.subr.msk.mxu0 %vm6682_vm4, %v729_v45  ;;  %1360 = vrot.lane.b32.xlu0 %v6626_v18, %s6277_s8 }
  0xf7   : > { %5720 = vmatpush1.msk.msra.mxu0 %vm6690_vm6, %v728_v46  ;;  %1366 = vrot.lane.b32.xlu1 %v6628_v19, %s6277_s8  ;;  %v6801_v19 = vrot.slane %v6676_v37, %v535_v11  ;;  %v474_v46 = vrot.slane %v6676_v37, %v6661_v27 }
  0xf8   : > { %v691_v48 = vpop.permute.xlu0 %690  ;;  %v687_v49 = vpop.permute.xlu1 %686 }
  0xf9   : > { %v694_v50 = vsel %vm9697_vm7, %v689_v42, %v691_v48  ;;  %v693_v51 = vsel %vm9697_vm7, %v687_v49, %v689_v42  ;;  %9814 = vst [vmem:[#allocation41_spill] sm:$0xff] %v6801_v19  ;;  %vm521_vm7 = vcmask 130048   ;;  %v6862_v49 = vld [vmem:[#allocation4 + $0xa0] sm:$0xff] }
  0xfa   : > { %5721 = vmatprep.subr.msk.mxu0 %vm9696_vm8, %v694_v50  ;;  %1348 = vrot.lane.b32.xlu0 %v6634_v20, %s6277_s8  ;;  %vm9701_vm8 = vcmp.eq.s32.totalorder %v6801_v19, 1 }
  0xfb   : > { %5722 = vmatpush1.msk.msra.mxu0 %vm9695_vm9, %v693_v51  ;;  %1354 = vrot.lane.b32.xlu1 %v6636_v21, %s6277_s8  ;;  %v6810_v21 = vld [vmem:[#allocation4 + $0x50] sm:$0xff] }
  0xfc   : > { %v660_v54 = vpop.permute.xlu1 %659  ;;  %v658_v55 = vpop.permute.xlu0 %657 }
  0xfd   : > { %v663_v56 = vsel %vm661_vm10, %v658_v55, %v660_v54 }
  0xfe   : > { %5723 = vmatprep.subr.msk.mxu0 %vm9694_vm11, %v663_v56  ;;  %1750 = vrot.lane.b32.xlu0 %v6791_v15, %s9815_s27  ;;  %vm9703_vm11 = vcmask 121856   ;;  %v737_v56 = vld [vmem:[%s9821_s26 + $0x8] sm:$0xff] }
  0xff   : > { %1762 = vrot.lane.b32.xlu1 %v6798_v16, %s9815_s27 }
 0x100   : > { %v656_v60 = vpop.permute.xlu0 %655  ;;  %v627_v61 = vpop.permute.xlu1 %626 }
 0x101   : > { %v662_v63 = vsel %vm661_vm10, %v656_v60, %v658_v55  ;;  %v736_v55 = vld [vmem:[%s9821_s26] sm:$0xff] }
 0x102   : > { %5724 = vmatpush1.msk.msra.mxu0 %vm9693_vm12, %v662_v63  ;;  %vm572_vm12 = vcmp.eq.s32.totalorder %v6775_v10, 1  ;;  %1738 = vrot.lane.b32.xlu0 %v6810_v21, %s9815_s27  ;;  %v740_v60 = vld [vmem:[%s9821_s26 + $0x20] sm:$0xff]  ;;  %v742_v63 = vld [vmem:[%s9821_s26 + $0x30] sm:$0xff] }
 0x103   : > { %1756 = vrot.lane.b32.xlu1 %v6816_v23, %s9815_s27 }
 0x104   : > { %v629_v6 = vpop.permute.xlu0 %628  ;;  %v625_v7 = vpop.permute.xlu1 %624 }
 0x105   : > { %v632_v8 = vsel %vm630_vm13, %v627_v61, %v629_v6  ;;  %v631_v9 = vsel %vm630_vm13, %v625_v7, %v627_v61  ;;  %v741_v61 = vld [vmem:[%s9821_s26 + $0x28] sm:$0xff]  ;;  %v743_v6 = vld [vmem:[%s9821_s26 + $0x38] sm:$0xff] }
 0x106   : > { %5725 = vmatprep.subr.msk.mxu0 %vm620_vm14, %v632_v8  ;;  %1726 = vrot.lane.b32.xlu0 %v6827_v30, %s9815_s27 }
 0x107   : > { %5726 = vmatpush1.msk.msra.mxu0 %vm619_vm15, %v631_v9  ;;  %1744 = vrot.lane.b32.xlu1 %v6835_v32, %s9815_s27 }
 0x108   : > { %v582_v12 = vpop.permute.xlu1 %581  ;;  %v580_v13 = vpop.permute.xlu0 %579  ;;  %5727 = vmatprep.subr.msk.mxu0 %vm9700_vm0, %v6539_v0  ;;  %v6795_v0 = vrot.slane %v6673_v36, %v535_v11  ;;  %vm490_vm0 = vcmask 138240  }
 0x109   : > { %5728 = vmatpush1.msk.msra.mxu0 %vm9699_vm1, %v6541_v1  ;;  %v585_v14 = vsel %vm583_vm2, %v580_v13, %v582_v12  ;;  %v504_v1 = vsub.s32 1, %v6654_v24 }
 0x10a   : > { %5729 = vmatprep.subr.msk.mxu0 %vm573_vm3, %v585_v14  ;;  %9813 = vst [vmem:[#allocation40_spill] sm:$0xff] %v6795_v0  ;;  %vm9702_vm9 = vcmp.eq.s32.totalorder %v6795_v0, 1  ;;  %2082 = vrot.lane.b32.xlu0 %v6798_v16, %s9816_s5 }
 0x10b   : > { %v6814_v22 = vrot.slane %v6673_v36, %v504_v1  ;;  %v6833_v31 = vrot.slane %v6676_v37, %v504_v1  ;;  %1732 = vrot.lane.b32.xlu1 %v6847_v41, %s9815_s27 }
 0x10c   : > { %v578_v17 = vpop.permute.xlu0 %577  ;;  %v549_v18 = vpop.permute.xlu1 %548 }
 0x10d   : > { %v584_v20 = vsel %vm583_vm2, %v578_v17, %v580_v13  ;;  %vm511_vm5 = vcmp.eq.s32.totalorder %v6814_v22, 1  ;;  %vm510_vm1 = vcmp.eq.s32.totalorder %v6833_v31, 1  ;;  %v2544_v31 = vld [vmem:[%s9903_s1 + $0x60] sm:$0xff] }
 0x10e   : > { %5730 = vmatpush1.msk.msra.mxu0 %vm572_vm12, %v584_v20  ;;  %2070 = vrot.lane.b32.xlu0 %v6791_v15, %s9816_s5 }
 0x10f   : > { %1720 = vrot.lane.b32.xlu1 %v6862_v49, %s9815_s27 }
 0x110   : > { %v551_v25 = vpop.permute.xlu0 %550  ;;  %v547_v26 = vpop.permute.xlu1 %546 }
 0x111   : > { %v554_v28 = vsel %vm9703_vm11, %v549_v18, %v551_v25  ;;  %v553_v29 = vsel %vm9703_vm11, %v547_v26, %v549_v18  ;;  %vm810_vm11 = vcmask 588800  }
 0x112   : > { %5731 = vmatprep.subr.msk.mxu0 %vm9702_vm9, %v554_v28  ;;  %vm6864_vm9 = vcmp.eq.s32.totalorder %v474_v46, 1  ;;  %2058 = vrot.lane.b32.xlu0 %v6810_v21, %s9816_s5 }
 0x113   : > { %5732 = vmatpush1.msk.msra.mxu0 %vm9701_vm8, %v553_v29  ;;  %vm6858_vm8 = vcmp.eq.s32.totalorder %v478_v40, 1  ;;  %2076 = vrot.lane.b32.xlu1 %v6816_v23, %s9816_s5 }
 0x114   : > { %v520_v33 = vpop.permute.xlu1 %519  ;;  %v518_v34 = vpop.permute.xlu0 %517 }
 0x115   : > { %v523_v35 = vsel %vm521_vm7, %v518_v34, %v520_v33 }
 0x116   : > { %5733 = vmatprep.subr.msk.mxu0 %vm511_vm5, %v523_v35 }
 0x117   : > { %2064 = vrot.lane.b32.xlu1 %v6835_v32, %s9816_s5 }
 0x118   : > { %v516_v42 = vpop.permute.xlu0 %515  ;;  %v487_v45 = vpop.permute.xlu1 %486 }
 0x119   : > { %v522_v48 = vsel %vm521_vm7, %v516_v42, %v518_v34 }
 0x11a   : > { %5734 = vmatpush1.msk.msra.mxu0 %vm510_vm1, %v522_v48 }
 0x11b   : > { %2052 = vrot.lane.b32.xlu1 %v6847_v41, %s9816_s5 }
 0x11c   : > { %v489_v50 = vpop.permute.xlu0 %488  ;;  %v485_v37 = vpop.permute.xlu1 %484 }
 0x11d   : > { %v492_v53 = vsel %vm490_vm0, %v487_v45, %v489_v50  ;;  %v491_v54 = vsel %vm490_vm0, %v485_v37, %v487_v45 }
 0x11e   : > { %5735 = vmatprep.subr.msk.mxu0 %vm6858_vm8, %v492_v53 }
 0x11f   : > { %5736 = vmatpush1.msk.msra.mxu0 %vm6864_vm9, %v491_v54 }
 0x120   : > { %5421 = vmatmul.mubr.msk.f32.vlgmr.msra.gmra.mxu0 %vm810_vm11, %v736_v55 }
 0x121   : > { %905 = vmatprep.mubr.f32.mxu0 %v9704_v5 }
 0x124   : > { %5422 = vmatmul.mubr.msk.f32.gmra.mxu0 %vm810_vm11, %v737_v56 }
 0x125   : > { %911 = vmatprep.mubr.f32.mxu0 %v9704_v5 }
 0x128   : > { %5423 = vmatmul.mubr.msk.f32.gmra.mxu0 %vm810_vm11, %v738_v57 }
 0x129   : > { %917 = vmatprep.mubr.f32.mxu0 %v9704_v5  ;;  %v6925_v7 = vpop.permute.xlu1 %802  ;;  %v6929_v9 = vpop.permute.xlu0 %807 }
 0x12c   : > { %5424 = vmatmul.mubr.msk.f32.gmra.mxu0 %vm810_vm11, %v739_v59 }
 0x12d   : > { %923 = vmatprep.mubr.f32.mxu0 %v9704_v5  ;;  %v6927_v8 = vpop.permute.xlu1 %797  ;;  %v793_v12 = vpop.permute.xlu0 %792 }
 0x130   : > { %5425 = vmatmul.mubr.msk.f32.gmra.mxu0 %vm810_vm11, %v740_v60 }
 0x131   : > { %929 = vmatprep.mubr.f32.mxu0 %v9704_v5  ;;  %v788_v11 = vpop.permute.xlu1 %787  ;;  %v783_v14 = vpop.permute.xlu0 %782 }
 0x134   : > { %5426 = vmatmul.mubr.msk.f32.gmra.mxu0 %vm810_vm11, %v741_v61 }
 0x135   : > { %935 = vmatprep.mubr.f32.mxu0 %v9704_v5  ;;  %v778_v13 = vpop.permute.xlu1 %777  ;;  %v773_v17 = vpop.permute.xlu0 %772 }
 0x138   : > { %5427 = vmatmul.mubr.msk.f32.gmra.mxu0 %vm810_vm11, %v742_v63 }
 0x139   : > { %941 = vmatprep.mubr.f32.mxu0 %v9704_v5  ;;  %v6931_v1 = vpop.permute.xlu1 %1230  ;;  %v6935_v20 = vpop.permute.xlu0 %1224 }
 0x13c   : > { %5428 = vmatmul.mubr.msk.f32.gmra.mxu0 %vm810_vm11, %v743_v6 }
 0x13d   : > { %v6933_v18 = vpop.permute.xlu1 %1218  ;;  %v6939_v26 = vpop.permute.xlu0 %1212 }
 0x141   : > { %v6937_v25 = vpop.permute.xlu1 %1206  ;;  %v6943_v29 = vpop.permute.xlu0 %1200 }
 0x145   : > { %v6941_v28 = vpop.permute.xlu1 %1194  ;;  %v6954_v37 = vpop.permute.xlu0 %1188 }
 0x149   : > { %v6945_v35 = vpop.permute.xlu1 %1070 }
 0x14d   : > { %v6961_v56 = vpop.permute.xlu1 %1058 }
 0x1e0   : > { %v901_v33 = vpop.f32.mrf.mxu0 }
 0x1e1   : > { %v902_v34 = vadd.f32 %v901_v33, %v773_v17 }
 0x1e2   : > { %v903_v40 = vpop.f32.mrf.mxu0 }
 0x1e3   : > { %v6947_v42 = vmax.f32 %v902_v34, 0.0  ;;  %v904_v45 = vadd.f32 %v903_v40, %v773_v17  ;;  %v6980_v40 = vpop.permute.xlu1 %1046 }
 0x1e4   : > { %v907_v46 = vpop.f32.mrf.mxu0 }
 0x1e5   : > { %964 = vst [vmem:[#allocation4 + $0xc0] sm:$0xff] %v6947_v42  ;;  %v6950_v48 = vmax.f32 %v904_v45, 0.0  ;;  %v908_v50 = vadd.f32 %v907_v46, %v778_v13  ;;  %1190 = vrot.lane.b32.xlu0 %v6947_v42, %s6279_s12 }
 0x1e6   : > { %v909_v53 = vpop.f32.mrf.mxu0 }
 0x1e7   : > { %965 = vst [vmem:[#allocation4 + $0x8] sm:$0xff] %v6950_v48  ;;  %v910_v54 = vadd.f32 %v909_v53, %v778_v13  ;;  %v6957_v55 = vmax.f32 %v908_v50, 0.0  ;;  %1192 = vrot.lane.b32.xlu1 %v6950_v48, %s6279_s12  ;;  %v6973_v13 = vpop.permute.xlu0 %1064 }
 0x1e8   : > { %v913_v57 = vpop.f32.mrf.mxu0 }
 0x1e9   : > { %v914_v59 = vadd.f32 %v913_v57, %v783_v14  ;;  %v6963_v60 = vmax.f32 %v910_v54, 0.0  ;;  %966 = vst [vmem:[#allocation4 + $0x78] sm:$0xff] %v6957_v55  ;;  %1030 = vrot.lane.b32.xlu0 %v6947_v42, %s6280_s3 }
 0x1ea   : > { %v915_v61 = vpop.f32.mrf.mxu0 }
 0x1eb   : > { %v6968_v63 = vmax.f32 %v914_v59, 0.0  ;;  %v916_v6 = vadd.f32 %v915_v61, %v783_v14  ;;  %967 = vst [vmem:[#allocation4 + $0x30] sm:$0xff] %v6963_v60  ;;  %1032 = vrot.lane.b32.xlu1 %v6950_v48, %s6280_s3  ;;  %v6992_v57 = vpop.permute.xlu0 %1052 }
 0x1ec   : > { %v919_v17 = vpop.f32.mrf.mxu0 }
 0x1ed   : > { %968 = vst [vmem:[#allocation4 + $0xa8] sm:$0xff] %v6968_v63  ;;  %v6976_v33 = vmax.f32 %v916_v6, 0.0  ;;  %v920_v34 = vadd.f32 %v919_v17, %v788_v11  ;;  %1510 = vrot.lane.b32.xlu0 %v6947_v42, %s6276_s7  ;;  %v6999_v6 = vpop.permute.xlu1 %1034 }
 0x1ee   : > { %v921_v45 = vpop.f32.mrf.mxu0 }
 0x1ef   : > { %969 = vst [vmem:[#allocation4 + $0xd0] sm:$0xff] %v6976_v33  ;;  %v6983_v14 = vmax.f32 %v920_v34, 0.0  ;;  %v922_v46 = vadd.f32 %v921_v45, %v788_v11  ;;  %1512 = vrot.lane.b32.xlu1 %v6950_v48, %s6276_s7 }
 0x1f0   : > { %v925_v50 = vpop.f32.mrf.mxu0 }
 0x1f1   : > { %970 = vst [vmem:[#allocation4 + $0x68] sm:$0xff] %v6983_v14  ;;  %v6988_v53 = vmax.f32 %v922_v46, 0.0  ;;  %v926_v54 = vadd.f32 %v925_v50, %v793_v12  ;;  %1350 = vrot.lane.b32.xlu0 %v6947_v42, %s6277_s8  ;;  %v7021_v5 = vpop.permute.xlu1 %1550 }
 0x1f2   : > { %v927_v59 = vpop.f32.mrf.mxu0  ;;  %9822 = vst [vmem:[#allocation42_spill] sm:$0xff] %v7021_v5 }
 0x1f3   : > { %971 = vst [vmem:[#allocation4 + $0x90] sm:$0xff] %v6988_v53  ;;  %v6995_v61 = vmax.f32 %v926_v54, 0.0  ;;  %v928_v11 = vadd.f32 %v927_v59, %v793_v12  ;;  %1352 = vrot.lane.b32.xlu1 %v6950_v48, %s6277_s8  ;;  %v7013_v54 = vpop.permute.xlu0 %1040 }
 0x1f4   : > { %v931_v17 = vpop.f32.mrf.mxu0 }
 0x1f5   : > { %972 = vst [vmem:[#allocation4] sm:$0xff] %v6995_v61  ;;  %v7002_v34 = vmax.f32 %v928_v11, 0.0  ;;  %v932_v45 = vadd.f32 %v931_v17, %v6927_v8  ;;  %1716 = vrot.lane.b32.xlu0 %v6947_v42, %s9815_s27 }
 0x1f6   : > { %v933_v46 = vpop.f32.mrf.mxu0 }
 0x1f7   : > { %973 = vst [vmem:[#allocation4 + $0x20] sm:$0xff] %v7002_v34  ;;  %v7008_v50 = vmax.f32 %v932_v45, 0.0  ;;  %v934_v12 = vadd.f32 %v933_v46, %v6927_v8  ;;  %1196 = vrot.lane.b32.xlu1 %v6957_v55, %s6279_s12  ;;  %v7035_v24 = vpop.permute.xlu0 %1028 }
 0x1f8   : > { %v937_v59 = vpop.f32.mrf.mxu0 }
 0x1f9   : > { %974 = vst [vmem:[#allocation4 + $0xb8] sm:$0xff] %v7008_v50  ;;  %v7016_v11 = vmax.f32 %v934_v12, 0.0  ;;  %v938_v17 = vadd.f32 %v937_v59, %v6925_v7  ;;  %1718 = vrot.lane.b32.xlu0 %v6950_v48, %s9815_s27 }
 0x1fa   : > { %v939_v45 = vpop.f32.mrf.mxu0 }
 0x1fb   : > { %975 = vst [vmem:[#allocation4 + $0xe0] sm:$0xff] %v7016_v11  ;;  %v7024_v8 = vmax.f32 %v938_v17, 0.0  ;;  %v940_v46 = vadd.f32 %v939_v45, %v6925_v7  ;;  %1036 = vrot.lane.b32.xlu1 %v6957_v55, %s6280_s3  ;;  %v7043_v45 = vpop.permute.xlu1 %1538 }
 0x1fc   : > { %v943_v27 = vpop.f32.mrf.mxu0  ;;  %9823 = vst [vmem:[#allocation43_spill] sm:$0xff] %v7043_v45 }
 0x1fd   : > { %976 = vst [vmem:[#allocation4 + $0xc8] sm:$0xff] %v7024_v8  ;;  %v7030_v12 = vmax.f32 %v940_v46, 0.0  ;;  %v944_v59 = vadd.f32 %v943_v27, %v6929_v9  ;;  %1198 = vrot.lane.b32.xlu0 %v6963_v60, %s6279_s12  ;;  %v7053_v46 = vpop.permute.xlu0 %1544 }
 0x1fe   : > { %v945_v52 = vpop.f32.mrf.mxu0  ;;  %9824 = vst [vmem:[#allocation44_spill] sm:$0xff] %v7053_v46 }
 0x1ff   : > { %977 = vst [vmem:[#allocation4 + $0xd8] sm:$0xff] %v7030_v12  ;;  %v7038_v17 = vmax.f32 %v944_v59, 0.0  ;;  %v946_v7 = vadd.f32 %v945_v52, %v6929_v9  ;;  %1516 = vrot.lane.b32.xlu1 %v6957_v55, %s6276_s7  ;;  %v7057_v52 = vpop.permute.xlu1 %1526 }
 0x200   : > { %9825 = vst [vmem:[#allocation45_spill] sm:$0xff] %v7057_v52 }
 0x201   : > { %978 = vst [vmem:[#allocation4 + $0x10] sm:$0xff] %v7038_v17  ;;  %v7046_v27 = vmax.f32 %v946_v7, 0.0  ;;  %1038 = vrot.lane.b32.xlu0 %v6963_v60, %s6280_s3  ;;  %v7063_v9 = vpop.permute.xlu0 %1532 }
 0x202   : > { %9826 = vst [vmem:[#allocation46_spill] sm:$0xff] %v7063_v9 }
 0x203   : > { %979 = vst [vmem:[#allocation4 + $0xf0] sm:$0xff] %v7046_v27  ;;  %1356 = vrot.lane.b32.xlu1 %v6957_v55, %s6277_s8  ;;  %v7067_v59 = vpop.permute.xlu1 %1514 }
 0x204   : > { %9827 = vst [vmem:[#allocation47_spill] sm:$0xff] %v7067_v59 }
 0x205   : > { %1518 = vrot.lane.b32.xlu0 %v6963_v60, %s6276_s7  ;;  %v7073_v7 = vpop.permute.xlu0 %1520 }
 0x206   : > { %9828 = vst [vmem:[#allocation48_spill] sm:$0xff] %v7073_v7 }
 0x207   : > { %1722 = vrot.lane.b32.xlu1 %v6957_v55, %s9815_s27  ;;  %v7077_v47 = vpop.permute.xlu1 %1390 }
 0x208   : > { %9829 = vst [vmem:[#allocation49_spill] sm:$0xff] %v7077_v47 }
 0x209   : > { %1358 = vrot.lane.b32.xlu0 %v6963_v60, %s6277_s8  ;;  %v7083_v44 = vpop.permute.xlu0 %1508 }
 0x20a   : > { %9830 = vst [vmem:[#allocation50_spill] sm:$0xff] %v7083_v44 }
 0x20b   : > { %1724 = vrot.lane.b32.xlu1 %v6963_v60, %s9815_s27  ;;  %v7087_v39 = vpop.permute.xlu1 %1378 }
 0x20c   : > { %9831 = vst [vmem:[#allocation51_spill] sm:$0xff] %v7087_v39 }
 0x20d   : > { %1202 = vrot.lane.b32.xlu0 %v6968_v63, %s6279_s12  ;;  %v7093_v43 = vpop.permute.xlu0 %1384 }
 0x20e   : > { %9832 = vst [vmem:[#allocation52_spill] sm:$0xff] %v7093_v43 }
 0x20f   : > { %1204 = vrot.lane.b32.xlu1 %v6976_v33, %s6279_s12  ;;  %v7097_v38 = vpop.permute.xlu1 %1366 }
 0x210   : > { %9833 = vst [vmem:[#allocation53_spill] sm:$0xff] %v7097_v38 }
 0x211   : > { %1042 = vrot.lane.b32.xlu0 %v6968_v63, %s6280_s3  ;;  %v7103_v3 = vpop.permute.xlu0 %1372 }
 0x212   : > { %9834 = vst [vmem:[#allocation54_spill] sm:$0xff] %v7103_v3 }
 0x213   : > { %1044 = vrot.lane.b32.xlu1 %v6976_v33, %s6280_s3  ;;  %v7107_v2 = vpop.permute.xlu1 %1354 }
 0x214   : > { %9835 = vst [vmem:[#allocation55_spill] sm:$0xff] %v7107_v2 }
 0x215   : > { %1522 = vrot.lane.b32.xlu0 %v6968_v63, %s6276_s7  ;;  %v7113_v38 = vpop.permute.xlu0 %1360 }
 0x216   : > { %9836 = vst [vmem:[#allocation56_spill] sm:$0xff] %v7113_v38 }
 0x217   : > { %1524 = vrot.lane.b32.xlu1 %v6976_v33, %s6276_s7  ;;  %v7117_v39 = vpop.permute.xlu1 %1762 }
 0x218   : > { %9837 = vst [vmem:[#allocation57_spill] sm:$0xff] %v7117_v39 }
 0x219   : > { %1362 = vrot.lane.b32.xlu0 %v6968_v63, %s6277_s8  ;;  %v7123_v2 = vpop.permute.xlu0 %1348 }
 0x21a   : > { %9838 = vst [vmem:[#allocation58_spill] sm:$0xff] %v7123_v2 }
 0x21b   : > { %1364 = vrot.lane.b32.xlu1 %v6976_v33, %s6277_s8  ;;  %v7127_v3 = vpop.permute.xlu1 %1756 }
 0x21c   : > { %9839 = vst [vmem:[#allocation59_spill] sm:$0xff] %v7127_v3 }
 0x21d   : > { %1728 = vrot.lane.b32.xlu0 %v6968_v63, %s9815_s27  ;;  %v7133_v38 = vpop.permute.xlu0 %1750 }
 0x21e   : > { %9840 = vst [vmem:[#allocation60_spill] sm:$0xff] %v7133_v38 }
 0x21f   : > { %1208 = vrot.lane.b32.xlu1 %v6983_v14, %s6279_s12  ;;  %v7137_v43 = vpop.permute.xlu1 %1744 }
 0x220   : > { %9841 = vst [vmem:[#allocation61_spill] sm:$0xff] %v7137_v43 }
 0x221   : > { %1730 = vrot.lane.b32.xlu0 %v6976_v33, %s9815_s27  ;;  %v7143_v2 = vpop.permute.xlu0 %1738 }
 0x222   : > { %9842 = vst [vmem:[#allocation62_spill] sm:$0xff] %v7143_v2 }
 0x223   : > { %1048 = vrot.lane.b32.xlu1 %v6983_v14, %s6280_s3  ;;  %v7147_v19 = vpop.permute.xlu1 %1732 }
 0x224   : > { %9843 = vst [vmem:[#allocation63_spill] sm:$0xff] %v7147_v19 }
 0x225   : > { %2050 = vrot.lane.b32.xlu0 %v6976_v33, %s9816_s5  ;;  %v7153_v43 = vpop.permute.xlu0 %1726 }
 0x226   : > { %9844 = vst [vmem:[#allocation64_spill] sm:$0xff] %v7153_v43 }
 0x227   : > { %1528 = vrot.lane.b32.xlu1 %v6983_v14, %s6276_s7  ;;  %v7157_v47 = vpop.permute.xlu1 %1720 }
 0x228   : > { %9845 = vst [vmem:[#allocation65_spill] sm:$0xff] %v7157_v47 }
 0x229   : > { %1210 = vrot.lane.b32.xlu0 %v6988_v53, %s6279_s12  ;;  %v7163_v19 = vpop.permute.xlu0 %2082 }
 0x22a   : > { %9846 = vst [vmem:[#allocation66_spill] sm:$0xff] %v7163_v19 }
 0x22b   : > { %1368 = vrot.lane.b32.xlu1 %v6983_v14, %s6277_s8  ;;  %v7167_v2 = vpop.permute.xlu1 %2076 }
 0x22c   : > { %9847 = vst [vmem:[#allocation67_spill] sm:$0xff] %v7167_v2 }
 0x22d   : > { %1050 = vrot.lane.b32.xlu0 %v6988_v53, %s6280_s3  ;;  %v7173_v47 = vpop.permute.xlu0 %2070 }
 0x22e   : > { %9848 = vst [vmem:[#allocation68_spill] sm:$0xff] %v7173_v47 }
 0x22f   : > { %1734 = vrot.lane.b32.xlu1 %v6983_v14, %s9815_s27  ;;  %v7177_v43 = vpop.permute.xlu1 %2064 }
 0x230   : > { %9849 = vst [vmem:[#allocation69_spill] sm:$0xff] %v7177_v43 }
 0x231   : > { %1530 = vrot.lane.b32.xlu0 %v6988_v53, %s6276_s7  ;;  %v7183_v2 = vpop.permute.xlu0 %2058 }
 0x232   : > { %9850 = vst [vmem:[#allocation70_spill] sm:$0xff] %v7183_v2 }
 0x233   : > { %2054 = vrot.lane.b32.xlu1 %v6983_v14, %s9816_s5  ;;  %v7187_v19 = vpop.permute.xlu1 %2052 }
 0x234   : > { %9851 = vst [vmem:[#allocation71_spill] sm:$0xff] %v7187_v19 }
 0x235   : > { %1370 = vrot.lane.b32.xlu0 %v6988_v53, %s6277_s8 }
 0x237   : > { %1736 = vrot.lane.b32.xlu1 %v6988_v53, %s9815_s27 }
 0x239   : > { %1214 = vrot.lane.b32.xlu0 %v6995_v61, %s6279_s12 }
 0x23b   : > { %2056 = vrot.lane.b32.xlu1 %v6988_v53, %s9816_s5 }
 0x23d   : > { %1054 = vrot.lane.b32.xlu0 %v6995_v61, %s6280_s3 }
 0x23f   : > { %1216 = vrot.lane.b32.xlu1 %v7002_v34, %s6279_s12 }
 0x241   : > { %1534 = vrot.lane.b32.xlu0 %v6995_v61, %s6276_s7 }
 0x243   : > { %1056 = vrot.lane.b32.xlu1 %v7002_v34, %s6280_s3 }
 0x245   : > { %1374 = vrot.lane.b32.xlu0 %v6995_v61, %s6277_s8 }
 0x247   : > { %1536 = vrot.lane.b32.xlu1 %v7002_v34, %s6276_s7 }
 0x249   : > { %1740 = vrot.lane.b32.xlu0 %v6995_v61, %s9815_s27 }
 0x24b   : > { %1376 = vrot.lane.b32.xlu1 %v7002_v34, %s6277_s8 }
 0x24d   : > { %2060 = vrot.lane.b32.xlu0 %v6995_v61, %s9816_s5 }
 0x24f   : > { %1220 = vrot.lane.b32.xlu1 %v7008_v50, %s6279_s12 }
 0x251   : > { %1742 = vrot.lane.b32.xlu0 %v7002_v34, %s9815_s27 }
 0x253   : > { %1060 = vrot.lane.b32.xlu1 %v7008_v50, %s6280_s3 }
 0x255   : > { %2062 = vrot.lane.b32.xlu0 %v7002_v34, %s9816_s5 }
 0x257   : > { %1540 = vrot.lane.b32.xlu1 %v7008_v50, %s6276_s7  ;;  %v7193_v43 = vpop.permute.xlu0 %1190 }
 0x259   : > { %v7195_v47 = vpop.permute.xlu1 %1192  ;;  %1222 = vrot.lane.b32.xlu0 %v7016_v11, %s6279_s12 }
 0x25b   : > { %1380 = vrot.lane.b32.xlu1 %v7008_v50, %s6277_s8  ;;  %v7201_v2 = vpop.permute.xlu0 %1030 }
 0x25d   : > { %v7203_v38 = vpop.permute.xlu1 %1032  ;;  %1062 = vrot.lane.b32.xlu0 %v7016_v11, %s6280_s3 }
 0x25f   : > { %1746 = vrot.lane.b32.xlu1 %v7008_v50, %s9815_s27  ;;  %v7209_v19 = vpop.permute.xlu0 %1510 }
 0x260   : > { %9852 = vst [vmem:[#allocation72_spill] sm:$0xff] %v7209_v19 }
 0x261   : > { %v7211_v0 = vpop.permute.xlu1 %1512  ;;  %1542 = vrot.lane.b32.xlu0 %v7016_v11, %s6276_s7 }
 0x262   : > { %9853 = vst [vmem:[#allocation73_spill] sm:$0xff] %v7211_v0 }
 0x263   : > { %2066 = vrot.lane.b32.xlu1 %v7008_v50, %s9816_s5  ;;  %v7217_v44 = vpop.permute.xlu0 %1350 }
 0x264   : > { %9854 = vst [vmem:[#allocation74_spill] sm:$0xff] %v7217_v44 }
 0x265   : > { %v7219_v3 = vpop.permute.xlu1 %1352  ;;  %1382 = vrot.lane.b32.xlu0 %v7016_v11, %s6277_s8 }
 0x266   : > { %9855 = vst [vmem:[#allocation75_spill] sm:$0xff] %v7219_v3 }
 0x267   : > { %1748 = vrot.lane.b32.xlu1 %v7016_v11, %s9815_s27  ;;  %v7225_v62 = vpop.permute.xlu0 %1716 }
 0x268   : > { %9856 = vst [vmem:[#allocation76_spill] sm:$0xff] %v7225_v62 }
 0x269   : > { %v7227_v58 = vpop.permute.xlu1 %1196  ;;  %1226 = vrot.lane.b32.xlu0 %v7024_v8, %s6279_s12 }
 0x26b   : > { %2068 = vrot.lane.b32.xlu1 %v7016_v11, %s9816_s5  ;;  %v7233_v19 = vpop.permute.xlu0 %1718 }
 0x26c   : > { %9857 = vst [vmem:[#allocation77_spill] sm:$0xff] %v7233_v19 }
 0x26d   : > { %v7235_v44 = vpop.permute.xlu1 %1036  ;;  %1066 = vrot.lane.b32.xlu0 %v7024_v8, %s6280_s3 }
 0x26f   : > { %1228 = vrot.lane.b32.xlu1 %v7030_v12, %s6279_s12  ;;  %v7241_v3 = vpop.permute.xlu0 %1198 }
 0x271   : > { %v7243_v62 = vpop.permute.xlu1 %1516  ;;  %1546 = vrot.lane.b32.xlu0 %v7024_v8, %s6276_s7 }
 0x272   : > { %9858 = vst [vmem:[#allocation78_spill] sm:$0xff] %v7243_v62 }
 0x273   : > { %1068 = vrot.lane.b32.xlu1 %v7030_v12, %s6280_s3  ;;  %v7249_v0 = vpop.permute.xlu0 %1038 }
 0x275   : > { %v7251_v19 = vpop.permute.xlu1 %1356  ;;  %1386 = vrot.lane.b32.xlu0 %v7024_v8, %s6277_s8 }
 0x276   : > { %9859 = vst [vmem:[#allocation79_spill] sm:$0xff] %v7251_v19 }
 0x277   : > { %1548 = vrot.lane.b32.xlu1 %v7030_v12, %s6276_s7  ;;  %v7257_v59 = vpop.permute.xlu0 %1518 }
 0x278   : > { %9860 = vst [vmem:[#allocation80_spill] sm:$0xff] %v7257_v59 }
 0x279   : > { %v7259_v39 = vpop.permute.xlu1 %1722  ;;  %1752 = vrot.lane.b32.xlu0 %v7024_v8, %s9815_s27 }
 0x27a   : > { %9861 = vst [vmem:[#allocation81_spill] sm:$0xff] %v7259_v39 }
 0x27b   : > { %1388 = vrot.lane.b32.xlu1 %v7030_v12, %s6277_s8  ;;  %v7265_v62 = vpop.permute.xlu0 %1358 }
 0x27c   : > { %9862 = vst [vmem:[#allocation82_spill] sm:$0xff] %v7265_v62 }
 0x27d   : > { %v7267_v7 = vpop.permute.xlu1 %1724  ;;  %2072 = vrot.lane.b32.xlu0 %v7024_v8, %s9816_s5 }
 0x27e   : > { %9863 = vst [vmem:[#allocation83_spill] sm:$0xff] %v7267_v7 }
 0x27f   : > { %1232 = vrot.lane.b32.xlu1 %v7038_v17, %s6279_s12  ;;  %v7273_v19 = vpop.permute.xlu0 %1202 }
 0x281   : > { %v7275_v59 = vpop.permute.xlu1 %1204  ;;  %1754 = vrot.lane.b32.xlu0 %v7030_v12, %s9815_s27 }
 0x283   : > { %1072 = vrot.lane.b32.xlu1 %v7038_v17, %s6280_s3  ;;  %v7281_v39 = vpop.permute.xlu0 %1042 }
 0x285   : > { %v7283_v62 = vpop.permute.xlu1 %1044  ;;  %2074 = vrot.lane.b32.xlu0 %v7030_v12, %s9816_s5 }
 0x287   : > { %1552 = vrot.lane.b32.xlu1 %v7038_v17, %s6276_s7  ;;  %v7289_v7 = vpop.permute.xlu0 %1522 }
 0x288   : > { %9864 = vst [vmem:[#allocation84_spill] sm:$0xff] %v7289_v7 }
 0x289   : > { %v7291_v52 = vpop.permute.xlu1 %1524  ;;  %1234 = vrot.lane.b32.xlu0 %v7046_v27, %s6279_s12 }
 0x28a   : > { %9865 = vst [vmem:[#allocation85_spill] sm:$0xff] %v7291_v52 }
 0x28b   : > { %1392 = vrot.lane.b32.xlu1 %v7038_v17, %s6277_s8  ;;  %v7297_v9 = vpop.permute.xlu0 %1362 }
 0x28c   : > { %9866 = vst [vmem:[#allocation86_spill] sm:$0xff] %v7297_v9 }
 0x28d   : > { %v7299_v45 = vpop.permute.xlu1 %1364  ;;  %2048 = vrot.lane.b32.xlu0 %v6968_v63, %s9816_s5 }
 0x28e   : > { %9867 = vst [vmem:[#allocation87_spill] sm:$0xff] %v7299_v45 }
 0x28f   : > { %1758 = vrot.lane.b32.xlu1 %v7038_v17, %s9815_s27  ;;  %v7305_v46 = vpop.permute.xlu0 %1728 }
 0x290   : > { %9868 = vst [vmem:[#allocation88_spill] sm:$0xff] %v7305_v46 }
 0x291   : > { %v7307_v7 = vpop.permute.xlu1 %1208  ;;  %2046 = vrot.lane.b32.xlu0 %v6827_v30, %s9816_s5 }
 0x293   : > { %2078 = vrot.lane.b32.xlu1 %v7038_v17, %s9816_s5  ;;  %v7313_v52 = vpop.permute.xlu0 %1730 }
 0x294   : > { %9869 = vst [vmem:[#allocation89_spill] sm:$0xff] %v7313_v52 }
 0x295   : > { %v7315_v9 = vpop.permute.xlu1 %1048  ;;  %2038 = vrot.lane.b32.xlu0 %v6950_v48, %s9816_s5 }
 0x297   : > { %2044 = vrot.lane.b32.xlu1 %v6963_v60, %s9816_s5  ;;  %v7321_v45 = vpop.permute.xlu0 %2050 }
 0x298   : > { %9870 = vst [vmem:[#allocation90_spill] sm:$0xff] %v7321_v45 }
 0x299   : > { %v7323_v46 = vpop.permute.xlu1 %1528  ;;  %1074 = vrot.lane.b32.xlu0 %v7046_v27, %s6280_s3  ;;  %s9879_s3 = smov 111  }
 0x29a   : > { %9871 = vst [vmem:[#allocation91_spill] sm:$0xff] %v7323_v46 }
 0x29b   : > { %2042 = vrot.lane.b32.xlu1 %v6957_v55, %s9816_s5  ;;  %v7329_v10 = vpop.permute.xlu0 %1210 }
 0x29d   : > { %v7331_v52 = vpop.permute.xlu1 %1368  ;;  %2036 = vrot.lane.b32.xlu0 %v6947_v42, %s9816_s5 }
 0x29e   : > { %9872 = vst [vmem:[#allocation92_spill] sm:$0xff] %v7331_v52 }
 0x29f   : > { %2040 = vrot.lane.b32.xlu1 %v6862_v49, %s9816_s5  ;;  %v7337_v48 = vpop.permute.xlu0 %1050 }
 0x2a1   : > { %v7339_v45 = vpop.permute.xlu1 %1734  ;;  %1922 = vrot.lane.b32.xlu0 %v6798_v16, %s9874_s25 }
 0x2a2   : > { %9873 = vst [vmem:[#allocation93_spill] sm:$0xff] %v7339_v45 }
 0x2a3   : > { %1918 = vrot.lane.b32.xlu1 %v7038_v17, %s9874_s25  ;;  %v7345_v46 = vpop.permute.xlu0 %1530 }
 0x2a4   : > { %9875 = vst [vmem:[#allocation94_spill] sm:$0xff] %v7345_v46 }
 0x2a5   : > { %v7347_v5 = vpop.permute.xlu1 %2054  ;;  %1914 = vrot.lane.b32.xlu0 %v7030_v12, %s9874_s25 }
 0x2a6   : > { %9876 = vst [vmem:[#allocation95_spill] sm:$0xff] %v7347_v5 }
 0x2a7   : > { %1916 = vrot.lane.b32.xlu1 %v6816_v23, %s9874_s25  ;;  %v7353_v49 = vpop.permute.xlu0 %1370 }
 0x2a8   : > { %9877 = vst [vmem:[#allocation96_spill] sm:$0xff] %v7353_v49 }
 0x2a9   : > { %v7355_v42 = vpop.permute.xlu1 %1736  ;;  %1554 = vrot.lane.b32.xlu0 %v7046_v27, %s6276_s7  ;;  %s6284_s7 = smov 80  }
 0x2aa   : > { %9878 = vst [vmem:[#allocation97_spill] sm:$0xff] %v7355_v42 }
 0x2ab   : > { %2242 = vrot.lane.b32.xlu1 %v6798_v16, %s9879_s3  ;;  %v7361_v52 = vpop.permute.xlu0 %1214 }
 0x2ad   : > { %v7363_v45 = vpop.permute.xlu1 %2056  ;;  %1912 = vrot.lane.b32.xlu0 %v7024_v8, %s9874_s25 }
 0x2ae   : > { %9880 = vst [vmem:[#allocation98_spill] sm:$0xff] %v7363_v45 }
 0x2af   : > { %2238 = vrot.lane.b32.xlu1 %v7038_v17, %s9879_s3  ;;  %v7369_v5 = vpop.permute.xlu0 %1054 }
 0x2b1   : > { %v7371_v49 = vpop.permute.xlu1 %1216  ;;  %1394 = vrot.lane.b32.xlu0 %v7046_v27, %s6277_s8  ;;  %s9915_s8 = sld [smem:[#allocation127_spill]] }
 0x2b3   : > { %2080 = vrot.lane.b32.xlu1 %v7046_v27, %s9816_s5  ;;  %v7377_v16 = vpop.permute.xlu0 %1534 }
 0x2b4   : > { %9881 = vst [vmem:[#allocation99_spill] sm:$0xff] %v7377_v16  ;;  %v2309_v16 = vld [vmem:[%s9885_s11 + $0x8] sm:$0xff] }
 0x2b5   : > { %v7379_v42 = vpop.permute.xlu1 %1056  ;;  %1760 = vrot.lane.b32.xlu0 %v7046_v27, %s9815_s27  ;;  %2741 = vmatprep.mubr.f32.mxu1 %v2309_v16 }
 0x2b7   : > { %1920 = vrot.lane.b32.xlu1 %v7046_v27, %s9874_s25  ;;  %v7385_v17 = vpop.permute.xlu0 %1374 }
 0x2b8   : > { %9882 = vst [vmem:[#allocation100_spill] sm:$0xff] %v7385_v17 }
 0x2b9   : > { %v7387_v45 = vpop.permute.xlu1 %1536  ;;  %2240 = vrot.lane.b32.xlu0 %v7046_v27, %s9879_s3 }
 0x2ba   : > { %9883 = vst [vmem:[#allocation101_spill] sm:$0xff] %v7387_v45 }
 0x2bb   : > { %1910 = vrot.lane.b32.xlu1 %v6791_v15, %s9874_s25  ;;  %v7393_v46 = vpop.permute.xlu0 %1740 }
 0x2bc   : > { %9884 = vst [vmem:[#allocation102_spill] sm:$0xff] %v7393_v46 }
 0x2bd   : > { %v7398_v4 = vpop.permute.xlu1 %1376  ;;  %1908 = vrot.lane.b32.xlu0 %v7016_v11, %s9874_s25 }
 0x2be   : > { %9886 = vst [vmem:[#allocation103_spill] sm:$0xff] %v7398_v4 }
 0x2bf   : > { %2236 = vrot.lane.b32.xlu1 %v6816_v23, %s9879_s3  ;;  %v7404_v17 = vpop.permute.xlu0 %2060 }
 0x2c0   : > { %9887 = vst [vmem:[#allocation104_spill] sm:$0xff] %v7404_v17 }
 0x2c1   : > { %v7406_v27 = vpop.permute.xlu1 %1220  ;;  %2234 = vrot.lane.b32.xlu0 %v7030_v12, %s9879_s3 }
 0x2c3   : > { %2232 = vrot.lane.b32.xlu1 %v7024_v8, %s9879_s3  ;;  %v7412_v46 = vpop.permute.xlu0 %1742 }
 0x2c4   : > { %9888 = vst [vmem:[#allocation105_spill] sm:$0xff] %v7412_v46 }
 0x2c5   : > { %v7414_v4 = vpop.permute.xlu1 %1060  ;;  %1906 = vrot.lane.b32.xlu0 %v7008_v50, %s9874_s25 }
 0x2c7   : > { %1904 = vrot.lane.b32.xlu1 %v6835_v32, %s9874_s25  ;;  %v7420_v23 = vpop.permute.xlu0 %2062 }
 0x2c8   : > { %9889 = vst [vmem:[#allocation106_spill] sm:$0xff] %v7420_v23 }
 0x2c9   : > { %v7422_v16 = vpop.permute.xlu1 %1540  ;;  %1902 = vrot.lane.b32.xlu0 %v7002_v34, %s9874_s25 }
 0x2ca   : > { %9890 = vst [vmem:[#allocation107_spill] sm:$0xff] %v7422_v16 }
 0x2cb   : > { %2230 = vrot.lane.b32.xlu1 %v6791_v15, %s9879_s3  ;;  %v7428_v8 = vpop.permute.xlu0 %1222 }
 0x2cd   : > { %v7430_v12 = vpop.permute.xlu1 %1380  ;;  %2228 = vrot.lane.b32.xlu0 %v7016_v11, %s9879_s3 }
 0x2ce   : > { %9891 = vst [vmem:[#allocation108_spill] sm:$0xff] %v7430_v12 }
 0x2cf   : > { %2226 = vrot.lane.b32.xlu1 %v7008_v50, %s9879_s3  ;;  %v7436_v17 = vpop.permute.xlu0 %1062 }
 0x2d1   : > { %v7438_v23 = vpop.permute.xlu1 %1746  ;;  %1900 = vrot.lane.b32.xlu0 %v6995_v61, %s9874_s25 }
 0x2d2   : > { %9892 = vst [vmem:[#allocation109_spill] sm:$0xff] %v7438_v23 }
 0x2d3   : > { %1898 = vrot.lane.b32.xlu1 %v6810_v21, %s9874_s25  ;;  %v7444_v15 = vpop.permute.xlu0 %1542 }
 0x2d5   : > { %v7446_v46 = vpop.permute.xlu1 %2066  ;;  %1896 = vrot.lane.b32.xlu0 %v6988_v53, %s9874_s25 }
 0x2d6   : > { %9893 = vst [vmem:[#allocation110_spill] sm:$0xff] %v7446_v46 }
 0x2d7   : > { %2224 = vrot.lane.b32.xlu1 %v6835_v32, %s9879_s3  ;;  %v7452_v50 = vpop.permute.xlu0 %1382 }
 0x2d8   : > { %9894 = vst [vmem:[#allocation111_spill] sm:$0xff] %v7452_v50 }
 0x2d9   : > { %v7454_v11 = vpop.permute.xlu1 %1748  ;;  %2222 = vrot.lane.b32.xlu0 %v7002_v34, %s9879_s3 }
 0x2da   : > { %9895 = vst [vmem:[#allocation112_spill] sm:$0xff] %v7454_v11 }
 0x2db   : > { %2220 = vrot.lane.b32.xlu1 %v6995_v61, %s9879_s3  ;;  %v1227_v12 = vpop.permute.xlu0 %1226 }
 0x2dd   : > { %v7460_v23 = vpop.permute.xlu1 %2068  ;;  %1894 = vrot.lane.b32.xlu0 %v6983_v14, %s9874_s25 }
 0x2de   : > { %9896 = vst [vmem:[#allocation113_spill] sm:$0xff] %v7460_v23 }
 0x2df   : > { %1892 = vrot.lane.b32.xlu1 %v6847_v41, %s9874_s25  ;;  %v7466_v32 = vpop.permute.xlu0 %1066 }
 0x2e1   : > { %v1229_v46 = vpop.permute.xlu1 %1228  ;;  %1890 = vrot.lane.b32.xlu0 %v6976_v33, %s9874_s25 }
 0x2e3   : > { %2218 = vrot.lane.b32.xlu1 %v6810_v21, %s9879_s3  ;;  %v7472_v34 = vpop.permute.xlu0 %1546 }
 0x2e5   : > { %v7474_v61 = vpop.permute.xlu1 %1068  ;;  %2216 = vrot.lane.b32.xlu0 %v6988_v53, %s9879_s3 }
 0x2e6   : > { %v1089_v22 = vsel %vm490_vm0, %v7466_v32, %v7474_v61  ;;  %v1087_v61 = vsel %vm490_vm0, %v7414_v4, %v7436_v17  ;;  %v1085_v17 = vsel %vm490_vm0, %v7369_v5, %v7379_v42  ;;  %v2539_v42 = vld [vmem:[%s9903_s1 + $0x38] sm:$0xff] }
 0x2e7   : > { %2214 = vrot.lane.b32.xlu1 %v6983_v14, %s9879_s3  ;;  %v7480_v23 = vpop.permute.xlu0 %1386 }
 0x2e8   : > { %9897 = vst [vmem:[#allocation114_spill] sm:$0xff] %v7480_v23  ;;  %v1830_v23 = vld [vmem:[#allocation4 + $0xa0] sm:$0xff] }
 0x2e9   : > { %v7482_v50 = vpop.permute.xlu1 %1548  ;;  %1888 = vrot.lane.b32.xlu0 %v6968_v63, %s9874_s25 }
 0x2eb   : > { %1886 = vrot.lane.b32.xlu1 %v6827_v30, %s9874_s25  ;;  %v7488_v21 = vpop.permute.xlu0 %1752 }
 0x2ec   : > { %9898 = vst [vmem:[#allocation115_spill] sm:$0xff] %v7488_v21 }
 0x2ed   : > { %v7490_v11 = vpop.permute.xlu1 %1388  ;;  %1884 = vrot.lane.b32.xlu0 %v6963_v60, %s9874_s25 }
 0x2ee   : > { %9899 = vst [vmem:[#allocation116_spill] sm:$0xff] %v7490_v11 }
 0x2ef   : > { %2212 = vrot.lane.b32.xlu1 %v6847_v41, %s9879_s3  ;;  %v7496_v14 = vpop.permute.xlu0 %2072  ;;  %v2311_v41 = vld [vmem:[%s9885_s11 + $0x18] sm:$0xff] }
 0x2f0   : > { %9900 = vst [vmem:[#allocation117_spill] sm:$0xff] %v7496_v14  ;;  %2902 = vmatprep.mubr.f32.mxu0 %v2311_v41 }
 0x2f1   : > { %v1233_v53 = vpop.permute.xlu1 %1232  ;;  %2210 = vrot.lane.b32.xlu0 %v6976_v33, %s9879_s3  ;;  %v7514_v33 = vld [vmem:[#allocation4 + $0x8] sm:$0xff] }
 0x2f2   : > { %v1250_v41 = vsel %vm521_vm7, %v6931_v1, %v1233_v53  ;;  %v1247_v1 = vsel %vm521_vm7, %v7406_v27, %v7428_v8 }
 0x2f3   : > { %2208 = vrot.lane.b32.xlu1 %v6968_v63, %s9879_s3  ;;  %v7502_v30 = vpop.permute.xlu0 %1754  ;;  %v2153_v63 = vld [vmem:[#allocation4 + $0x58] sm:$0xff] }
 0x2f4   : > { %9901 = vst [vmem:[#allocation118_spill] sm:$0xff] %v7502_v30 }
 0x2f5   : > { %v7504_v21 = vpop.permute.xlu1 %1072  ;;  %1882 = vrot.lane.b32.xlu0 %v6957_v55, %s9874_s25 }
 0x2f7   : > { %1880 = vrot.lane.b32.xlu1 %v1830_v23, %s9874_s25  ;;  %v7512_v14 = vpop.permute.xlu0 %2074 }
 0x2f8   : > { %9902 = vst [vmem:[#allocation119_spill] sm:$0xff] %v7512_v14  ;;  %v1249_v14 = vsel %vm521_vm7, %v1227_v12, %v1229_v46 }
 0x2f9   : > { %v7516_v11 = vpop.permute.xlu1 %1552  ;;  %1878 = vrot.lane.b32.xlu0 %v7514_v33, %s9874_s25 }
 0x2fb   : > { %2206 = vrot.lane.b32.xlu1 %v2153_v63, %s9879_s3  ;;  %v1235_v30 = vpop.permute.xlu0 %1234 }
 0x2fc   : > { %v1251_v45 = vsel %vm521_vm7, %v1233_v53, %v1235_v30 }
 0x2fd   : > { %v7522_v16 = vpop.permute.xlu1 %1392  ;;  %2204 = vrot.lane.b32.xlu0 %v6963_v60, %s9879_s3  ;;  %5737 = vmatprep.subr.msk.mxu1 %vm511_vm5, %v1251_v45  ;;  %v1248_v60 = vsel %vm521_vm7, %v6935_v20, %v1227_v12  ;;  %v7546_v45 = vld [vmem:[#allocation4 + $0xc0] sm:$0xff]  ;;  %v1246_v20 = vsel %vm521_vm7, %v6933_v18, %v7406_v27  ;;  %v1244_v12 = vsel %vm521_vm7, %v6939_v26, %v7361_v52 }
 0x2fe   : > { %5738 = vmatpush1.msk.msra.mxu1 %vm510_vm1, %v1250_v41  ;;  %v1243_v18 = vsel %vm521_vm7, %v7307_v7, %v7329_v10  ;;  %v1242_v26 = vsel %vm521_vm7, %v6937_v25, %v7307_v7  ;;  %v1241_v10 = vsel %vm521_vm7, %v7273_v19, %v7275_v59  ;;  %v1239_v25 = vsel %vm521_vm7, %v7227_v58, %v7241_v3  ;;  %v2545_v59 = vld [vmem:[%s9903_s1 + $0x68] sm:$0xff] }
 0x2ff   : > { %2202 = vrot.lane.b32.xlu1 %v6957_v55, %s9879_s3  ;;  %5739 = vmatprep.subr.msk.mxu1 %vm511_vm5, %v1249_v14  ;;  %v7537_v30 = vpop.permute.xlu0 %2048  ;;  %v1245_v55 = vsel %vm521_vm7, %v7361_v52, %v7371_v49  ;;  %v2547_v49 = vld [vmem:[%s9903_s1 + $0x78] sm:$0xff]  ;;  %v1237_v3 = vsel %vm521_vm7, %v7193_v43, %v7195_v47 }
 0x300   : > { %5740 = vmatpush1.msk.msra.mxu1 %vm510_vm1, %v1248_v60  ;;  %v2543_v47 = vld [vmem:[%s9903_s1 + $0x58] sm:$0xff] }
 0x301   : > { %v7548_v46 = vpop.permute.xlu1 %1758  ;;  %1876 = vrot.lane.b32.xlu0 %v7546_v45, %s9874_s25  ;;  %5741 = vmatprep.subr.msk.mxu1 %vm511_vm5, %v1247_v1  ;;  %s6283_s25 = smov 64  }
 0x302   : > { %5742 = vmatpush1.msk.msra.mxu1 %vm510_vm1, %v1246_v20 }
 0x303   : > { %2200 = vrot.lane.b32.xlu1 %v1830_v23, %s9879_s3  ;;  %5743 = vmatprep.subr.msk.mxu1 %vm511_vm5, %v1245_v55  ;;  %v7565_v8 = vpop.permute.xlu0 %2046  ;;  %v1240_v23 = vsel %vm521_vm7, %v6943_v29, %v7273_v19  ;;  %v1238_v19 = vsel %vm521_vm7, %v6941_v28, %v7227_v58  ;;  %v2546_v29 = vld [vmem:[%s9903_s1 + $0x70] sm:$0xff]  ;;  %v1236_v58 = vsel %vm521_vm7, %v6954_v37, %v7193_v43 }
 0x304   : > { %5744 = vmatpush1.msk.msra.mxu1 %vm510_vm1, %v1244_v12  ;;  %v1090_v43 = vsel %vm490_vm0, %v6945_v35, %v7504_v21  ;;  %v1088_v35 = vsel %vm490_vm0, %v6973_v13, %v7466_v32  ;;  %v1086_v13 = vsel %vm490_vm0, %v6961_v56, %v7414_v4  ;;  %v2542_v32 = vld [vmem:[%s9903_s1 + $0x50] sm:$0xff]  ;;  %v1084_v4 = vsel %vm490_vm0, %v6992_v57, %v7369_v5  ;;  %v2535_v12 = vld [vmem:[%s9903_s1 + $0x18] sm:$0xff] }
 0x305   : > { %v7578_v27 = vpop.permute.xlu1 %2078  ;;  %2198 = vrot.lane.b32.xlu0 %v7514_v33, %s9879_s3  ;;  %5745 = vmatprep.subr.msk.mxu1 %vm511_vm5, %v1243_v18  ;;  %v1083_v56 = vsel %vm490_vm0, %v7315_v9, %v7337_v48  ;;  %v1082_v5 = vsel %vm490_vm0, %v6980_v40, %v7315_v9  ;;  %v1081_v57 = vsel %vm490_vm0, %v7281_v39, %v7283_v62  ;;  %v2540_v48 = vld [vmem:[%s9903_s1 + $0x40] sm:$0xff]  ;;  %v2537_v9 = vld [vmem:[%s9903_s1 + $0x28] sm:$0xff]  ;;  %v2538_v55 = vld [vmem:[%s9903_s1 + $0x30] sm:$0xff] }
 0x306   : > { %5746 = vmatpush1.msk.msra.mxu1 %vm510_vm1, %v1242_v26  ;;  %v1080_v40 = vsel %vm490_vm0, %v7013_v54, %v7281_v39  ;;  %v1079_v62 = vsel %vm490_vm0, %v7235_v44, %v7249_v0  ;;  %v1078_v39 = vsel %vm490_vm0, %v6999_v6, %v7235_v44  ;;  %v1077_v0 = vsel %vm490_vm0, %v7201_v2, %v7203_v38  ;;  %v2536_v26 = vld [vmem:[%s9903_s1 + $0x20] sm:$0xff] }
 0x307   : > { %2625 = vperm.xlu1 %6050, %v2547_v49   ;;  %5747 = vmatprep.subr.msk.mxu1 %vm511_vm5, %v1241_v10  ;;  %v7594_v52 = vpop.permute.xlu0 %2038  ;;  %v1076_v38 = vsel %vm490_vm0, %v7035_v24, %v7201_v2  ;;  %v9905_v49 = vld [vmem:[#allocation42_spill] sm:$0xff]  ;;  %v1569_v2 = vsel %vm583_vm2, %v7472_v34, %v7482_v50 }
 0x308   : > { %5748 = vmatpush1.msk.msra.mxu1 %vm510_vm1, %v1240_v23  ;;  %v1570_v24 = vsel %vm583_vm2, %v9905_v49, %v7516_v11  ;;  %v9907_v23 = vld [vmem:[#allocation44_spill] sm:$0xff] }
 0x309   : > { %v7607_v7 = vpop.permute.xlu1 %2044  ;;  %2196 = vrot.lane.b32.xlu0 %v7546_v45, %s9879_s3  ;;  %5749 = vmatprep.subr.msk.mxu1 %vm511_vm5, %v1239_v25  ;;  %v9908_v25 = vld [vmem:[#allocation107_spill] sm:$0xff]  ;;  %s6286_s3 = smov 48  }
 0x30a   : > { %5750 = vmatpush1.msk.msra.mxu1 %vm510_vm1, %v1238_v19  ;;  %v1567_v50 = vsel %vm583_vm2, %v9908_v25, %v7444_v15 }
 0x30b   : > { %2615 = vperm.xlu1 %6050, %v2545_v59   ;;  %5751 = vmatprep.subr.msk.mxu1 %vm511_vm5, %v1237_v3  ;;  %v1075_v14 = vpop.permute.xlu0 %1074  ;;  %v2533_v59 = vld [vmem:[%s9903_s1 + $0x8] sm:$0xff]  ;;  %vm9932_vm5 = vcmask 121856  }
 0x30c   : > { %v1091_v28 = vsel %vm490_vm0, %v7504_v21, %v1075_v14  ;;  %5752 = vmatpush1.msk.msra.mxu1 %vm510_vm1, %v1236_v58  ;;  %v2541_v21 = vld [vmem:[%s9903_s1 + $0x48] sm:$0xff]  ;;  %v2534_v58 = vld [vmem:[%s9903_s1 + $0x10] sm:$0xff]  ;;  %vm9942_vm11 = vmmov %vm9932_vm5 }
 0x30d   : > { %v7636_v53 = vpop.permute.xlu1 %2042  ;;  %2620 = vperm.xlu0 %6049, %v2546_v29   ;;  %5753 = vmatprep.subr.msk.mxu1 %vm6858_vm8, %v1091_v28  ;;  %v9909_v3 = vld [vmem:[#allocation43_spill] sm:$0xff]  ;;  %v9910_v29 = vld [vmem:[#allocation101_spill] sm:$0xff]  ;;  %vm9949_vm1 = vmmov %vm9932_vm5 }
 0x30e   : > { %5754 = vmatpush1.msk.msra.mxu1 %vm6864_vm9, %v1090_v43  ;;  %v9911_v14 = vld [vmem:[#allocation99_spill] sm:$0xff] }
 0x30f   : > { %2605 = vperm.xlu1 %6050, %v2543_v47   ;;  %5755 = vmatprep.subr.msk.mxu1 %vm6858_vm8, %v1089_v22  ;;  %v7653_v37 = vpop.permute.xlu0 %2036  ;;  %v1565_v15 = vsel %vm583_vm2, %v9911_v14, %v9910_v29  ;;  %v9912_v47 = vld [vmem:[#allocation46_spill] sm:$0xff]  ;;  %v9933_v29 = vld [vmem:[#allocation40_spill] sm:$0xff] }
 0x310   : > { %5756 = vmatpush1.msk.msra.mxu1 %vm6864_vm9, %v1088_v35  ;;  %v1564_v43 = vsel %vm583_vm2, %v9912_v47, %v9911_v14  ;;  %v9913_v22 = vld [vmem:[#allocation94_spill] sm:$0xff]  ;;  %v9935_v14 = vld [vmem:[#allocation60_spill] sm:$0xff] }
 0x311   : > { %v7666_v63 = vpop.permute.xlu1 %2040  ;;  %2610 = vperm.xlu0 %6049, %v2544_v31   ;;  %5757 = vmatprep.subr.msk.mxu1 %vm6858_vm8, %v1087_v61  ;;  %v9914_v31 = vld [vmem:[#allocation91_spill] sm:$0xff]  ;;  %v3193_v61 = vld [vmem:[%s9915_s8] sm:$0x3]  ;;  %s6285_s8 = smov 32  }
 0x312   : > { %5758 = vmatpush1.msk.msra.mxu1 %vm6864_vm9, %v1086_v13  ;;  %v1563_v35 = vsel %vm583_vm2, %v9914_v31, %v9913_v22  ;;  %v9916_v13 = vld [vmem:[#allocation45_spill] sm:$0xff]  ;;  %v9940_v22 = vld [vmem:[#allocation116_spill] sm:$0xff] }
 0x313   : > { %2595 = vperm.xlu1 %6050, %v2541_v21   ;;  %5759 = vmatprep.subr.msk.mxu1 %vm6858_vm8, %v1085_v17  ;;  %v7683_v41 = vpop.permute.xlu0 %1922  ;;  %v1562_v17 = vsel %vm583_vm2, %v9916_v13, %v9914_v31  ;;  %v9941_v31 = vld [vmem:[#allocation114_spill] sm:$0xff]  ;;  %v9947_v13 = vld [vmem:[#allocation105_spill] sm:$0xff] }
 0x314   : > { %5760 = vmatpush1.msk.msra.mxu1 %vm6864_vm9, %v1084_v4  ;;  %v9918_v4 = vld [vmem:[#allocation84_spill] sm:$0xff] }
 0x315   : > { %v7696_v60 = vpop.permute.xlu1 %1918  ;;  %2600 = vperm.xlu0 %6049, %v2542_v32   ;;  %5761 = vmatprep.subr.msk.mxu1 %vm6858_vm8, %v1083_v56  ;;  %v9917_v32 = vld [vmem:[#allocation85_spill] sm:$0xff] }
 0x316   : > { %5762 = vmatpush1.msk.msra.mxu1 %vm6864_vm9, %v1082_v5  ;;  %v1561_v56 = vsel %vm583_vm2, %v9918_v4, %v9917_v32 }
 0x317   : > { %2585 = vperm.xlu1 %6050, %v2539_v42   ;;  %5763 = vmatprep.subr.msk.mxu1 %vm6858_vm8, %v1081_v57  ;;  %v7713_v1 = vpop.permute.xlu0 %1914  ;;  %v2532_v42 = vld [vmem:[%s9903_s1] sm:$0xff]  ;;  %v9919_v57 = vld [vmem:[#allocation48_spill] sm:$0xff] }
 0x318   : > { %5764 = vmatpush1.msk.msra.mxu1 %vm6864_vm9, %v1080_v40  ;;  %v9920_v40 = vld [vmem:[#allocation80_spill] sm:$0xff] }
 0x319   : > { %v1917_v20 = vpop.permute.xlu1 %1916  ;;  %2590 = vperm.xlu0 %6049, %v2540_v48   ;;  %5765 = vmatprep.subr.msk.mxu1 %vm6858_vm8, %v1079_v62  ;;  %v1560_v48 = vsel %vm583_vm2, %v9919_v57, %v9918_v4  ;;  %v9921_v62 = vld [vmem:[#allocation78_spill] sm:$0xff]  ;;  %v9948_v4 = vld [vmem:[#allocation52_spill] sm:$0xff]  ;;  %v9951_v57 = vld [vmem:[#allocation111_spill] sm:$0xff] }
 0x31a   : > { %v7736_v54 = vsel %vm661_vm10, %v7713_v1, %v1917_v20  ;;  %5766 = vmatpush1.msk.msra.mxu1 %vm6864_vm9, %v1078_v39  ;;  %v9922_v39 = vld [vmem:[#allocation57_spill] sm:$0xff] }
 0x31b   : > { %2575 = vperm.xlu1 %6050, %v2537_v9   ;;  %5767 = vmatprep.subr.msk.mxu1 %vm6858_vm8, %v1077_v0  ;;  %v1555_v44 = vpop.permute.xlu0 %1554  ;;  %v1559_v9 = vsel %vm583_vm2, %v9921_v62, %v9920_v40  ;;  %vm9934_vm8 = vcmp.eq.s32.totalorder %v9933_v29, 1 }
 0x31c   : > { %v1571_v6 = vsel %vm583_vm2, %v7516_v11, %v1555_v44  ;;  %5768 = vmatpush1.msk.msra.mxu1 %vm6864_vm9, %v1076_v38  ;;  %v1568_v11 = vsel %vm583_vm2, %v9907_v23, %v7472_v34  ;;  %v1566_v34 = vsel %vm583_vm2, %v9909_v3, %v9908_v25  ;;  %v9923_v44 = vld [vmem:[#allocation47_spill] sm:$0xff]  ;;  %v9930_v25 = vld [vmem:[#allocation50_spill] sm:$0xff]  ;;  %vm9938_vm9 = vmmov %vm9932_vm5 }
 0x31d   : > { %v7755_v18 = vpop.permute.xlu1 %2242  ;;  %2580 = vperm.xlu0 %6049, %v2538_v55   ;;  %5769 = vmatprep.subr.msk.mxu1 %vm573_vm3, %v1571_v6  ;;  %v1558_v38 = vsel %vm583_vm2, %v9923_v44, %v9921_v62  ;;  %v9924_v6 = vld [vmem:[#allocation73_spill] sm:$0xff]  ;;  %vm9945_vm0 = vmmov %vm9934_vm8 }
 0x31e   : > { %5770 = vmatpush2.msk.msra.mxu1 %vm572_vm12, %v1570_v24  ;;  %v1634_v24 = vld [vmem:[#allocation4 + $0x10] sm:$0xff] }
 0x31f   : > { %2565 = vperm.xlu1 %6050, %v2535_v12   ;;  %5771 = vmatprep.subr.msk.mxu1 %vm573_vm3, %v1569_v2  ;;  %v7772_v10 = vpop.permute.xlu0 %1912  ;;  %v9925_v12 = vld [vmem:[#allocation72_spill] sm:$0xff]  ;;  %v9928_v2 = vld [vmem:[#allocation59_spill] sm:$0xff] }
 0x320   : > { %5772 = vmatpush2.msk.msra.mxu1 %vm572_vm12, %v1568_v11 }
 0x321   : > { %v7785_v19 = vpop.permute.xlu1 %2238  ;;  %2570 = vperm.xlu0 %6049, %v2536_v26   ;;  %5773 = vmatprep.subr.msk.mxu1 %vm573_vm3, %v1567_v50  ;;  %v9929_v26 = vld [vmem:[#allocation118_spill] sm:$0xff]  ;;  %v1556_v50 = vsel %vm583_vm2, %v9930_v25, %v9925_v12 }
 0x322   : > { %5774 = vmatpush2.msk.msra.mxu1 %vm572_vm12, %v1566_v34  ;;  %v1777_v23 = vsel %vm630_vm13, %v9929_v26, %v9928_v2 }
 0x323   : > { %2555 = vperm.xlu1 %6050, %v2533_v59   ;;  %5775 = vmatprep.subr.msk.mxu1 %vm573_vm3, %v1565_v15  ;;  %v1395_v28 = vpop.permute.xlu0 %1394  ;;  %v9931_v59 = vld [vmem:[#allocation115_spill] sm:$0xff]  ;;  %v9936_v15 = vld [vmem:[#allocation112_spill] sm:$0xff] }
 0x324   : > { %5776 = vmatpush2.msk.msra.mxu1 %vm572_vm12, %v1564_v43  ;;  %v1776_v3 = vsel %vm630_vm13, %v9931_v59, %v9929_v26  ;;  %v1411_v34 = vsel %vm9932_vm5, %v7522_v16, %v1395_v28  ;;  %v9937_v28 = vld [vmem:[#allocation49_spill] sm:$0xff]  ;;  %vm9955_vm5 = vmmov %vm9945_vm0  ;;  %v9966_v26 = vld [vmem:[#allocation63_spill] sm:$0xff] }
 0x325   : > { %v7813_v21 = vpop.permute.xlu1 %2080  ;;  %2560 = vperm.xlu0 %6049, %v2534_v58   ;;  %5777 = vmatprep.subr.msk.mxu1 %vm573_vm3, %v1563_v35  ;;  %v1775_v58 = vsel %vm630_vm13, %v9936_v15, %v9935_v14  ;;  %v1410_v47 = vsel %vm9938_vm9, %v9937_v28, %v7522_v16  ;;  %v9939_v43 = vld [vmem:[#allocation109_spill] sm:$0xff]  ;;  %v1409_v35 = vsel %vm9942_vm11, %v9941_v31, %v9940_v22  ;;  %vm9963_vm9 = vmmov %vm9949_vm1  ;;  %v9968_v59 = vld [vmem:[#allocation54_spill] sm:$0xff] }
 0x326   : > { %5778 = vmatpush2.msk.msra.mxu1 %vm572_vm12, %v1562_v17  ;;  %v1774_v51 = vsel %vm630_vm13, %v9939_v43, %v9936_v15  ;;  %v9946_v16 = vld [vmem:[#allocation61_spill] sm:$0xff]  ;;  %v9971_v15 = vld [vmem:[#allocation96_spill] sm:$0xff] }
 0x327   : > { %3196 = vperm.xlu1 %6050, %v3193_v61   ;;  %5779 = vmatprep.subr.msk.mxu1 %vm573_vm3, %v1561_v56  ;;  %v1761_v5 = vpop.permute.xlu0 %1760  ;;  %v9943_v61 = vld [vmem:[#allocation41_spill] sm:$0xff]  ;;  %v1773_v17 = vsel %vm630_vm13, %v9947_v13, %v9946_v16  ;;  %v1408_v56 = vsel %vm9949_vm1, %v9948_v4, %v9941_v31  ;;  %v9976_v43 = vld [vmem:[#allocation64_spill] sm:$0xff]  ;;  %v9982_v4 = vld [vmem:[#allocation86_spill] sm:$0xff] }
 0x328   : > { %v1778_v20 = vsel %vm630_vm13, %v7548_v46, %v1761_v5  ;;  %v1779_v0 = vsel %vm630_vm13, %v1761_v5, %v9922_v39  ;;  %5780 = vmatpush2.msk.msra.mxu1 %vm572_vm12, %v1560_v48  ;;  %v1557_v46 = vsel %vm583_vm2, %v9925_v12, %v9924_v6  ;;  %v9952_v48 = vld [vmem:[#allocation108_spill] sm:$0xff]  ;;  %vm9953_vm2 = vmmov %vm9949_vm1  ;;  %v9961_v12 = vld [vmem:[#allocation103_spill] sm:$0xff] }
 0x329   : > { %v7842_v55 = vpop.permute.xlu1 %1920  ;;  %2550 = vperm.xlu0 %6049, %v2532_v42   ;;  %5781 = vmatprep.subr.msk.mxu1 %vm573_vm3, %v1559_v9  ;;  %v9950_v42 = vld [vmem:[#allocation102_spill] sm:$0xff]  ;;  %v1407_v40 = vsel %vm9953_vm2, %v9952_v48, %v9951_v57  ;;  %v9978_v31 = vld [vmem:[#allocation53_spill] sm:$0xff] }
 0x32a   : > { %5801 = vmatprep.subr.msk.mxu0 %vm620_vm14, %v1779_v0  ;;  %5782 = vmatpush2.msk.msra.mxu1 %vm572_vm12, %v1558_v38  ;;  %v1772_v5 = vsel %vm630_vm13, %v9950_v42, %v9947_v13  ;;  %v9956_v9 = vld [vmem:[#allocation62_spill] sm:$0xff]  ;;  %v9958_v0 = vld [vmem:[#allocation51_spill] sm:$0xff]  ;;  %v9960_v38 = vld [vmem:[#allocation93_spill] sm:$0xff] }
 0x32b   : > { %5802 = vmatpush1.msk.msra.mxu0 %vm619_vm15, %v1778_v20  ;;  %5783 = vmatprep.subr.msk.mxu1 %vm573_vm3, %v1557_v46  ;;  %v7863_v11 = vpop.permute.xlu0 %2240  ;;  %v9957_v20 = vld [vmem:[#allocation97_spill] sm:$0xff]  ;;  %v9962_v46 = vld [vmem:[#allocation100_spill] sm:$0xff] }
 0x32c   : > { %5803 = vmatprep.subr.msk.mxu0 %vm620_vm14, %v1777_v23  ;;  %5784 = vmatpush2.msk.msra.mxu1 %vm572_vm12, %v1556_v50  ;;  %vm9944_vm12 = vcmp.eq.s32.totalorder %v9943_v61, 1  ;;  %v1771_v39 = vsel %vm630_vm13, %v9957_v20, %v9956_v9  ;;  %v1770_v6 = vsel %vm630_vm13, %v9960_v38, %v9957_v20  ;;  %v1405_v2 = vsel %vm9963_vm9, %v9962_v46, %v9961_v12  ;;  %v9967_v23 = vld [vmem:[#allocation89_spill] sm:$0xff]  ;;  %v9990_v20 = vld [vmem:[#allocation76_spill] sm:$0xff] }
 0x32d   : > { %5804 = vmatpush1.msk.msra.mxu0 %vm619_vm15, %v1776_v3  ;;  %v7879_v36 = vpop.permute.xlu1 %1910  ;;  %5785 = vmatprep.subr.msk.mxu1 %vm9934_vm8, %v1411_v34  ;;  %vm9954_vm3 = vmmov %vm9944_vm12  ;;  %v1769_v25 = vsel %vm630_vm13, %v9967_v23, %v9966_v26  ;;  %v9970_v34 = vld [vmem:[#allocation88_spill] sm:$0xff]  ;;  %v9980_v16 = vld [vmem:[#allocation81_spill] sm:$0xff] }
 0x32e   : > { %5805 = vmatprep.subr.msk.mxu0 %vm620_vm14, %v1775_v58  ;;  %5786 = vmatpush2.msk.msra.mxu1 %vm9944_vm12, %v1410_v47  ;;  %vm9959_vm8 = vmmov %vm9949_vm1  ;;  %v1768_v14 = vsel %vm630_vm13, %v9970_v34, %v9967_v23  ;;  %v9972_v58 = vld [vmem:[#allocation92_spill] sm:$0xff]  ;;  %v9986_v42 = vld [vmem:[#allocation65_spill] sm:$0xff] }
 0x32f   : > { %5806 = vmatpush1.msk.msra.mxu0 %vm619_vm15, %v1774_v51  ;;  %5787 = vmatprep.subr.msk.mxu1 %vm9945_vm0, %v1409_v35  ;;  %v7906_v32 = vpop.permute.xlu0 %1908  ;;  %v1406_v44 = vsel %vm9959_vm8, %v9958_v0, %v9952_v48  ;;  %vm9964_vm11 = vmmov %vm9954_vm3  ;;  %v9977_v51 = vld [vmem:[#allocation83_spill] sm:$0xff]  ;;  %v9991_v0 = vld [vmem:[#allocation82_spill] sm:$0xff] }
 0x330   : > { %5807 = vmatprep.subr.msk.mxu0 %vm620_vm14, %v1773_v17  ;;  %5788 = vmatpush2.msk.msra.mxu1 %vm9954_vm3, %v1408_v56  ;;  %vm9965_vm12 = vmmov %vm9945_vm0  ;;  %v1767_v22 = vsel %vm630_vm13, %v9977_v51, %v9976_v43  ;;  %v1766_v13 = vsel %vm630_vm13, %v9980_v16, %v9977_v51  ;;  %v9981_v17 = vld [vmem:[#allocation87_spill] sm:$0xff]  ;;  %v9998_v23 = vld [vmem:[#allocation74_spill] sm:$0xff] }
 0x331   : > { %5808 = vmatpush1.msk.msra.mxu0 %vm619_vm15, %v1772_v5  ;;  %v7923_v62 = vpop.permute.xlu1 %2236  ;;  %5789 = vmatprep.subr.msk.mxu1 %vm9955_vm5, %v1407_v40  ;;  %vm9969_vm0 = vmmov %vm9949_vm1  ;;  %v9987_v5 = vld [vmem:[#allocation77_spill] sm:$0xff]  ;;  %v9988_v40 = vld [vmem:[#allocation56_spill] sm:$0xff] }
 0x332   : > { %5809 = vmatprep.subr.msk.mxu0 %vm620_vm14, %v1771_v39  ;;  %5790 = vmatpush2.msk.msra.mxu1 %vm9964_vm11, %v1406_v44  ;;  %v1404_v3 = vsel %vm9969_vm0, %v9968_v59, %v9962_v46  ;;  %vm9973_vm1 = vmmov %vm9969_vm0  ;;  %v1765_v57 = vsel %vm630_vm13, %v9987_v5, %v9986_v42  ;;  %v1764_v39 = vsel %vm630_vm13, %v9990_v20, %v9987_v5  ;;  %v9992_v44 = vld [vmem:[#allocation79_spill] sm:$0xff]  ;;  %v2308_v59 = vld [vmem:[%s9885_s11] sm:$0xff] }
 0x333   : > { %5810 = vmatpush1.msk.msra.mxu0 %vm619_vm15, %v1770_v6  ;;  %5791 = vmatprep.subr.msk.mxu1 %vm9965_vm12, %v1405_v2  ;;  %v7950_v50 = vpop.permute.xlu0 %2234  ;;  %v1403_v28 = vsel %vm9973_vm1, %v9972_v58, %v9971_v15  ;;  %vm9974_vm2 = vmmov %vm9954_vm3  ;;  %v1399_v38 = vsel %vm9969_vm0, %v9992_v44, %v9991_v0  ;;  %v1635_v12 = vld [vmem:[#allocation4 + $0xf0] sm:$0xff]  ;;  %v1633_v34 = vld [vmem:[#allocation4 + $0xd8] sm:$0xff] }
 0x334   : > { %5811 = vmatprep.subr.msk.mxu0 %vm620_vm14, %v1769_v25  ;;  %5792 = vmatpush2.msk.msra.mxu1 %vm9974_vm2, %v1404_v3  ;;  %vm9975_vm3 = vmmov %vm9955_vm5  ;;  %v9995_v46 = vld [vmem:[#allocation55_spill] sm:$0xff]  ;;  %v10000_v25 = vld [vmem:[#allocation36_spill] sm:$0xff] }
 0x335   : > { %5812 = vmatpush1.msk.msra.mxu0 %vm619_vm15, %v1768_v14  ;;  %v2233_v47 = vpop.permute.xlu1 %2232  ;;  %5793 = vmatprep.subr.msk.mxu1 %vm9975_vm3, %v1403_v28  ;;  %vm9979_vm5 = vmmov %vm9969_vm0  ;;  %v9997_v26 = vld [vmem:[#allocation75_spill] sm:$0xff]  ;;  %v10003_v3 = vld [vmem:[#allocation37_spill] sm:$0xff] }
 0x336   : > { %v1402_v35 = vsel %vm9979_vm5, %v9978_v31, %v9972_v58  ;;  %vm9983_vm8 = vmmov %vm9969_vm0  ;;  %5813 = vmatprep.subr.msk.mxu0 %vm620_vm14, %v1767_v22  ;;  %v10006_v15 = vld [vmem:[#allocation58_spill] sm:$0xff]  ;;  %v1630_v31 = vld [vmem:[#allocation4 + $0xb8] sm:$0xff] }
 0x337   : > { %v1401_v56 = vsel %vm9983_vm8, %v9982_v4, %v9981_v17  ;;  %vm9984_vm9 = vmmov %vm9974_vm2  ;;  %5814 = vmatpush1.msk.msra.mxu0 %vm619_vm15, %v1766_v13  ;;  %v7992_v48 = vpop.permute.xlu0 %1906  ;;  %v1632_v28 = vld [vmem:[#allocation4 + $0xc8] sm:$0xff]  ;;  %v1631_v51 = vld [vmem:[#allocation4 + $0xe0] sm:$0xff] }
 0x338   : > { %5794 = vmatpush2.msk.msra.mxu1 %vm9984_vm9, %v1402_v35  ;;  %vm9985_vm11 = vmmov %vm9975_vm3  ;;  %5815 = vmatprep.subr.msk.mxu0 %vm620_vm14, %v1765_v57  ;;  %vm10001_vm14 = vcmp.eq.s32.totalorder %v10000_v25, 1  ;;  %v1628_v17 = vld [vmem:[#allocation4] sm:$0xff]  ;;  %v1627_v42 = vld [vmem:[#allocation4 + $0x90] sm:$0xff] }
 0x339   : > { %5795 = vmatprep.subr.msk.mxu1 %vm9985_vm11, %v1401_v56  ;;  %vm9989_vm12 = vmmov %vm9969_vm0  ;;  %5816 = vmatpush1.msk.msra.mxu0 %vm619_vm15, %v1764_v39  ;;  %v8009_v6 = vpop.permute.xlu1 %1904  ;;  %vm10004_vm15 = vcmp.eq.s32.totalorder %v10003_v3, 1  ;;  %v2319_v57 = vld [vmem:[%s9885_s11 + $0x58] sm:$0xff]  ;;  %v1624_v20 = vld [vmem:[#allocation4 + $0xa8] sm:$0xff] }
 0x33a   : > { %v1400_v9 = vsel %vm9989_vm12, %v9988_v40, %v9982_v4  ;;  %vm9993_vm1 = vmmov %vm9974_vm2  ;;  %5817 = vmatprep.subr.msk.mxu0 %vm10001_vm14, %v1635_v12  ;;  %v1625_v40 = vld [vmem:[#allocation4 + $0xd0] sm:$0xff]  ;;  %v2324_v0 = vld [vmem:[%s9885_s11 + $0x80] sm:$0xff] }
 0x33b   : > { %5796 = vmatpush2.msk.msra.mxu1 %vm9993_vm1, %v1400_v9  ;;  %vm9994_vm2 = vmmov %vm9975_vm3  ;;  %5818 = vmatpush1.msk.msra.mxu0 %vm10004_vm15, %v1634_v24  ;;  %v8030_v14 = vpop.permute.xlu0 %1902  ;;  %v2318_v9 = vld [vmem:[%s9885_s11 + $0x50] sm:$0xff]  ;;  %v10034_v25 = vld [vmem:[#allocation29_spill] sm:$0xff] }
 0x33c   : > { %5797 = vmatprep.subr.msk.mxu1 %vm9994_vm2, %v1399_v38  ;;  %vm9996_vm13 = vmmov %vm9969_vm0  ;;  %v1622_v38 = vld [vmem:[#allocation4 + $0x78] sm:$0xff]  ;;  %v2326_v61 = vld [vmem:[%s9885_s11 + $0x90] sm:$0xff] }
 0x33d   : > { %v1398_v2 = vsel %vm9996_vm13, %v9995_v46, %v9992_v44  ;;  %vm9999_vm3 = vmmov %vm9969_vm0  ;;  %v2231_v29 = vpop.permute.xlu1 %2230  ;;  %v1623_v44 = vld [vmem:[#allocation4 + $0x30] sm:$0xff]  ;;  %v2323_v46 = vld [vmem:[%s9885_s11 + $0x78] sm:$0xff] }
 0x33e   : > { %v1397_v49 = vsel %vm9999_vm3, %v9998_v23, %v9997_v26  ;;  %vm10002_vm5 = vmmov %vm9993_vm1  ;;  %v2329_v26 = vld [vmem:[%s9885_s11 + $0xa8] sm:$0xff]  ;;  %v2330_v16 = vld [vmem:[%s9885_s11 + $0xb0] sm:$0xff] }
 0x33f   : > { %5798 = vmatpush2.msk.msra.mxu1 %vm10002_vm5, %v1398_v2  ;;  %vm10005_vm8 = vmmov %vm9994_vm2 }
 0x340   : > { %5799 = vmatprep.subr.msk.mxu1 %vm10005_vm8, %v1397_v49  ;;  %vm10007_vm9 = vmmov %vm9969_vm0  ;;  %vm10010_vm0 = vcmask 908288  }
 0x341   : > { %v1396_v58 = vsel %vm10007_vm9, %v10006_v15, %v9998_v23  ;;  %vm10008_vm11 = vmmov %vm10001_vm14  ;;  %v2259_v43 = vsel %vm10010_vm0, %v7863_v11, %v7755_v18  ;;  %v2314_v18 = vld [vmem:[%s9885_s11 + $0x30] sm:$0xff]  ;;  %v2227_v56 = vpop.permute.xlu1 %2226  ;;  %v10030_v23 = vld [vmem:[#allocation66_spill] sm:$0xff] }
 0x342   : > { %5819 = vmatprep.subr.msk.mxu0 %vm10008_vm11, %v1633_v34  ;;  %vm10009_vm12 = vmmov %vm9993_vm1  ;;  %v10038_v34 = vld [vmem:[#allocation67_spill] sm:$0xff] }
 0x343   : > { %5800 = vmatpush2.msk.msra.mxu1 %vm10009_vm12, %v1396_v58  ;;  %vm10011_vm1 = vmmov %vm10004_vm15  ;;  %v10039_v15 = vld [vmem:[#allocation119_spill] sm:$0xff] }
 0x344   : > { %5820 = vmatpush1.msk.msra.mxu0 %vm10011_vm1, %v1632_v28  ;;  %2742 = vmatmul.mubr.f32.vlgmr.msra.gmra.mxu1 %v2308_v59  ;;  %vm10012_vm2 = vmmov %vm10010_vm0  ;;  %v10036_v59 = vld [vmem:[#allocation31_spill] sm:$0xff] }
 0x345   : > { %v2258_v22 = vsel %vm10012_vm2, %v7785_v19, %v7863_v11  ;;  %vm10013_vm13 = vmmov %vm10008_vm11  ;;  %5865 = vmatprep.subr.msk.mxu1 %vm6682_vm4, %v2259_v43  ;;  %v1629_v19 = vld [vmem:[#allocation4 + $0x20] sm:$0xff]  ;;  %v2229_v11 = vpop.permute.xlu0 %2228  ;;  %2747 = vmatprep.mubr.f32.mxu1 %v2314_v18  ;;  %v8094_v39 = vpop.permute.xlu1 %1898 }
 0x346   : > { %5821 = vmatprep.subr.msk.mxu0 %vm10013_vm13, %v1631_v51  ;;  %vm10015_vm3 = vmmov %vm10010_vm0  ;;  %5866 = vmatpush1.msk.msra.mxu1 %vm6690_vm6, %v2258_v22  ;;  %v10048_v51 = vld [vmem:[#allocation113_spill] sm:$0xff]  ;;  %v10050_v18 = vld [vmem:[#allocation110_spill] sm:$0xff] }
 0x347   : > { %v2257_v35 = vsel %vm10015_vm3, %v7950_v50, %v7923_v62  ;;  %vm10016_vm14 = vmmov %vm10011_vm1  ;;  %v2313_v62 = vld [vmem:[%s9885_s11 + $0x28] sm:$0xff] }
 0x348   : > { %5822 = vmatpush1.msk.msra.mxu0 %vm10016_vm14, %v1630_v31  ;;  %vm10018_vm5 = vmmov %vm10008_vm11  ;;  %5867 = vmatprep.subr.msk.mxu1 %vm6682_vm4, %v2257_v35  ;;  %v2334_v31 = vld [vmem:[%s9885_s11 + $0xd0] sm:$0xff] }
 0x349   : > { %5823 = vmatprep.subr.msk.mxu0 %vm10018_vm5, %v1629_v19  ;;  %vm10019_vm15 = vmmov %vm10010_vm0  ;;  %2748 = vmatmul.mubr.f32.gmra.mxu1 %v2313_v62  ;;  %v2225_v2 = vpop.permute.xlu1 %2224  ;;  %v2333_v62 = vld [vmem:[%s9885_s11 + $0xc8] sm:$0xff] }
 0x34a   : > { %v2255_v13 = vsel %vm10019_vm15, %v2229_v11, %v2231_v29  ;;  %vm10020_vm8 = vmmov %vm10010_vm0  ;;  %2753 = vmatprep.mubr.f32.mxu1 %v2319_v57  ;;  %v10047_v29 = vld [vmem:[#allocation68_spill] sm:$0xff]  ;;  %v10061_v57 = vld [vmem:[#allocation70_spill] sm:$0xff] }
 0x34b   : > { %v2256_v4 = vsel %vm10020_vm8, %v2233_v47, %v7950_v50  ;;  %vm10021_vm9 = vmmov %vm10011_vm1  ;;  %v1626_v50 = vld [vmem:[#allocation4 + $0x68] sm:$0xff]  ;;  %v8083_v47 = vpop.permute.xlu0 %1900 }
 0x34c   : > { %5824 = vmatpush1.msk.msra.mxu0 %vm10021_vm9, %v1628_v17  ;;  %5868 = vmatpush1.msk.msra.mxu1 %vm6690_vm6, %v2256_v4  ;;  %vm10022_vm11 = vmmov %vm10010_vm0  ;;  %vm10035_vm9 = vcmp.eq.s32.totalorder %v10034_v25, 1  ;;  %v10057_v4 = vld [vmem:[#allocation104_spill] sm:$0xff] }
 0x34d   : > { %v2254_v5 = vsel %vm10022_vm11, %v2227_v56, %v2229_v11  ;;  %vm10023_vm12 = vmmov %vm10018_vm5  ;;  %5869 = vmatprep.subr.msk.mxu1 %vm6682_vm4, %v2255_v13  ;;  %2754 = vmatmul.mubr.f32.gmra.mxu1 %v2318_v9  ;;  %vm10037_vm11 = vcmp.eq.s32.totalorder %v10036_v59, 1  ;;  %v2221_v3 = vpop.permute.xlu1 %2220  ;;  %v10054_v11 = vld [vmem:[#allocation69_spill] sm:$0xff]  ;;  %v10055_v13 = vld [vmem:[#allocation106_spill] sm:$0xff]  ;;  %v1936_v59 = vsel %vm661_vm10, %v7772_v10, %v7713_v1  ;;  %v1934_v1 = vsel %vm661_vm10, %v7992_v48, %v7906_v32 }
 0x34e   : > { %5825 = vmatprep.subr.msk.mxu0 %vm10023_vm12, %v1627_v42  ;;  %vm10024_vm0 = vmmov %vm10011_vm1  ;;  %5870 = vmatpush1.msk.msra.mxu1 %vm6690_vm6, %v2254_v5  ;;  %v2339_v5 = vld [vmem:[%s9885_s11 + $0xf8] sm:$0xff]  ;;  %v10063_v9 = vld [vmem:[#allocation95_spill] sm:$0xff]  ;;  %v1933_v10 = vsel %vm661_vm10, %v8030_v14, %v8009_v6 }
 0x34f   : > { %5826 = vmatpush1.msk.msra.mxu0 %vm10024_vm0, %v1626_v50  ;;  %vm10025_vm1 = vmmov %vm10018_vm5  ;;  %v8103_v12 = vpop.permute.xlu0 %1896  ;;  %2759 = vmatprep.mubr.f32.mxu1 %v2324_v0  ;;  %vm10031_vm5 = vcmask 916480   ;;  %v10062_v50 = vld [vmem:[#allocation98_spill] sm:$0xff]  ;;  %v10082_v25 = vld [vmem:[#allocation32_spill] sm:$0xff] }
 0x350   : > { %5827 = vmatprep.subr.msk.mxu0 %vm10025_vm1, %v1625_v40  ;;  %vm10026_vm2 = vmmov %vm10024_vm0  ;;  %v2099_v49 = vsel %vm10031_vm5, %v7813_v21, %v10030_v23  ;;  %v2359_v6 = vld [vmem:[%s9885_s11 + $0x198] sm:$0xff] }
 0x351   : > { %5828 = vmatpush1.msk.msra.mxu0 %vm10026_vm2, %v1624_v20  ;;  %vm10027_vm13 = vmmov %vm10025_vm1  ;;  %2760 = vmatmul.mubr.f32.gmra.mxu1 %v2323_v46  ;;  %v8174_v42 = vpop.permute.xlu1 %1892 }
 0x352   : > { %5829 = vmatprep.subr.msk.mxu0 %vm10027_vm13, %v1623_v44  ;;  %vm10028_vm3 = vmmov %vm10024_vm0  ;;  %2765 = vmatprep.mubr.f32.mxu1 %v2329_v26  ;;  %v10067_v44 = vld [vmem:[#allocation71_spill] sm:$0xff] }
 0x353   : > { %5830 = vmatpush1.msk.msra.mxu0 %vm10028_vm3, %v1622_v38  ;;  %vm10029_vm14 = vmmov %vm10025_vm1  ;;  %v10068_v38 = vld [vmem:[#allocation90_spill] sm:$0xff] }
 0x354   : > { %5831 = vmatprep.subr.msk.mxu0 %vm10029_vm14, %v7514_v33  ;;  %vm10032_vm15 = vmmov %vm10024_vm0  ;;  %v2223_v33 = vpop.permute.xlu0 %2222  ;;  %vm10041_vm0 = vcmask 908288  }
 0x355   : > { %5832 = vmatpush1.msk.msra.mxu0 %vm10032_vm15, %v7546_v45  ;;  %vm10033_vm8 = vmmov %vm10031_vm5  ;;  %v2253_v28 = vsel %vm10041_vm0, %v2223_v33, %v2225_v2  ;;  %v2328_v45 = vld [vmem:[%s9885_s11 + $0xa0] sm:$0xff]  ;;  %v2338_v2 = vld [vmem:[%s9885_s11 + $0xf0] sm:$0xff]  ;;  %v2219_v23 = vpop.permute.xlu1 %2218 }
 0x356   : > { %v2098_v24 = vsel %vm10033_vm8, %v7578_v27, %v7813_v21  ;;  %5833 = vmatprep.subr.msk.mxu0 %vm10035_vm9, %v2099_v49  ;;  %vm10040_vm12 = vmmov %vm10031_vm5  ;;  %v10042_v27 = vld [vmem:[#allocation117_spill] sm:$0xff]  ;;  %5871 = vmatprep.subr.msk.mxu1 %vm6682_vm4, %v2253_v28 }
 0x357   : > { %5834 = vmatpush2.msk.msra.mxu0 %vm10037_vm11, %v2098_v24  ;;  %v2097_v58 = vsel %vm10040_vm12, %v10039_v15, %v10038_v34  ;;  %vm10043_vm1 = vmmov %vm10031_vm5  ;;  %2766 = vmatmul.mubr.f32.gmra.mxu1 %v2328_v45  ;;  %v2344_v49 = vld [vmem:[%s9885_s11 + $0x120] sm:$0xff] }
 0x358   : > { %v2096_v21 = vsel %vm10043_vm1, %v10042_v27, %v10039_v15  ;;  %vm10044_vm2 = vmmov %vm10035_vm9  ;;  %v8157_v19 = vpop.permute.xlu0 %1894  ;;  %2771 = vmatprep.mubr.f32.mxu1 %v2334_v31  ;;  %v2091_v40 = vsel %vm10043_vm1, %v10062_v50, %v10061_v57  ;;  %v10084_v45 = vld [vmem:[#allocation33_spill] sm:$0xff]  ;;  %v1935_v27 = vsel %vm661_vm10, %v7906_v32, %v7879_v36  ;;  %v2353_v36 = vld [vmem:[%s9885_s11 + $0x168] sm:$0xff]  ;;  %v1932_v32 = vsel %vm661_vm10, %v8083_v47, %v8030_v14 }
 0x359   : > { %5835 = vmatprep.subr.msk.mxu0 %vm10044_vm2, %v2097_v58  ;;  %vm10045_vm13 = vmmov %vm10037_vm11 }
 0x35a   : > { %5836 = vmatpush2.msk.msra.mxu0 %vm10045_vm13, %v2096_v21  ;;  %vm10046_vm3 = vmmov %vm10041_vm0  ;;  %v1931_v21 = vsel %vm661_vm10, %v8103_v12, %v8094_v39 }
 0x35b   : > { %v2252_v43 = vsel %vm10046_vm3, %v2221_v3, %v2223_v33  ;;  %vm10049_vm14 = vmmov %vm10043_vm1  ;;  %2772 = vmatmul.mubr.f32.gmra.mxu1 %v2333_v62  ;;  %v1930_v3 = vsel %vm661_vm10, %v8157_v19, %v8103_v12  ;;  %v2363_v19 = vld [vmem:[%s9885_s11 + $0x1b8] sm:$0xff] }
 0x35c   : > { %v2095_v22 = vsel %vm10049_vm14, %v10048_v51, %v10047_v29  ;;  %vm10051_vm5 = vmmov %vm10043_vm1  ;;  %5872 = vmatpush1.msk.msra.mxu1 %vm6690_vm6, %v2252_v43  ;;  %v8189_v0 = vpop.permute.xlu0 %1890  ;;  %2777 = vmatprep.mubr.f32.mxu1 %v2339_v5  ;;  %v2358_v43 = vld [vmem:[%s9885_s11 + $0x190] sm:$0xff] }
 0x35d   : > { %v2094_v35 = vsel %vm10051_vm5, %v10050_v18, %v10048_v51  ;;  %vm10052_vm15 = vmmov %vm10044_vm2  ;;  %v1929_v47 = vsel %vm661_vm10, %v8189_v0, %v8174_v42  ;;  %v2364_v51 = vld [vmem:[%s9885_s11 + $0x1c0] sm:$0xff]  ;;  %v2374_v42 = vld [vmem:[%s9885_s11 + $0x210] sm:$0xff] }
 0x35e   : > { %5837 = vmatprep.subr.msk.mxu0 %vm10052_vm15, %v2095_v22  ;;  %vm10053_vm8 = vmmov %vm10037_vm11 }
 0x35f   : > { %5838 = vmatpush2.msk.msra.mxu0 %vm10053_vm8, %v2094_v35  ;;  %vm10056_vm9 = vmmov %vm10043_vm1  ;;  %2778 = vmatmul.mubr.f32.gmra.mxu1 %v2338_v2  ;;  %v2316_v2 = vld [vmem:[%s9885_s11 + $0x40] sm:$0xff] }
 0x360   : > { %v2093_v17 = vsel %vm10056_vm9, %v10055_v13, %v10054_v11  ;;  %vm10058_vm11 = vmmov %vm10043_vm1  ;;  %2783 = vmatprep.mubr.f32.mxu1 %v2344_v49 }
 0x361   : > { %v2092_v56 = vsel %vm10058_vm11, %v10057_v4, %v10055_v13  ;;  %vm10059_vm12 = vmmov %vm10044_vm2  ;;  %v2369_v13 = vld [vmem:[%s9885_s11 + $0x1e8] sm:$0xff]  ;;  %v2368_v4 = vld [vmem:[%s9885_s11 + $0x1e0] sm:$0xff] }
 0x362   : > { %5839 = vmatprep.subr.msk.mxu0 %vm10059_vm12, %v2093_v17  ;;  %vm10060_vm0 = vmmov %vm10053_vm8 }
 0x363   : > { %5840 = vmatpush2.msk.msra.mxu0 %vm10060_vm0, %v2092_v56  ;;  %vm10064_vm2 = vmmov %vm10043_vm1 }
 0x364   : > { %v2090_v20 = vsel %vm10064_vm2, %v10063_v9, %v10062_v50  ;;  %vm10065_vm13 = vmmov %vm10059_vm12  ;;  %vm10077_vm2 = vcmask 908288   ;;  %v2373_v50 = vld [vmem:[%s9885_s11 + $0x208] sm:$0xff]  ;;  %v2379_v9 = vld [vmem:[%s9885_s11 + $0x238] sm:$0xff] }
 0x365   : > { %5841 = vmatprep.subr.msk.mxu0 %vm10065_vm13, %v2091_v40  ;;  %vm10066_vm3 = vmmov %vm10060_vm0 }
 0x366   : > { %5842 = vmatpush2.msk.msra.mxu0 %vm10066_vm3, %v2090_v20  ;;  %vm10069_vm14 = vmmov %vm10043_vm1 }
 0x367   : > { %v2089_v46 = vsel %vm10069_vm14, %v10068_v38, %v10067_v44  ;;  %vm10070_vm5 = vmmov %vm10043_vm1  ;;  %v2310_v44 = vld [vmem:[%s9885_s11 + $0x10] sm:$0xff] }
 0x368   : > { %v2088_v26 = vsel %vm10070_vm5, %v7537_v30, %v10068_v38  ;;  %vm10071_vm15 = vmmov %vm10059_vm12  ;;  %v2217_v30 = vpop.permute.xlu0 %2216 }
 0x369   : > { %5843 = vmatprep.subr.msk.mxu0 %vm10071_vm15, %v2089_v46  ;;  %vm10072_vm8 = vmmov %vm10060_vm0  ;;  %v2251_v15 = vsel %vm10077_vm2, %v2217_v30, %v2219_v23  ;;  %vm10083_vm15 = vcmp.eq.s32.totalorder %v10082_v25, 1  ;;  %v2378_v46 = vld [vmem:[%s9885_s11 + $0x230] sm:$0xff]  ;;  %v2384_v23 = vld [vmem:[%s9885_s11 + $0x260] sm:$0xff] }
 0x36a   : > { %5844 = vmatpush2.msk.msra.mxu0 %vm10072_vm8, %v2088_v26  ;;  %vm10073_vm9 = vmmov %vm10043_vm1  ;;  %5873 = vmatprep.subr.msk.mxu1 %vm6682_vm4, %v2251_v15  ;;  %vm10085_vm8 = vcmp.eq.s32.totalorder %v10084_v45, 1  ;;  %v2322_v25 = vld [vmem:[%s9885_s11 + $0x70] sm:$0xff]  ;;  %v2335_v45 = vld [vmem:[%s9885_s11 + $0xd8] sm:$0xff] }
 0x36b   : > { %v2087_v24 = vsel %vm10073_vm9, %v7607_v7, %v7565_v8  ;;  %vm10074_vm11 = vmmov %vm10043_vm1  ;;  %v2343_v8 = vld [vmem:[%s9885_s11 + $0x118] sm:$0xff] }
 0x36c   : > { %v2086_v33 = vsel %vm10074_vm11, %v7636_v53, %v7607_v7  ;;  %5845 = vmatprep.subr.msk.mxu0 %vm10059_vm12, %v2087_v24  ;;  %vm10075_vm0 = vmmov %vm10043_vm1  ;;  %v2215_v53 = vpop.permute.xlu1 %2214  ;;  %2784 = vmatmul.mubr.f32.gmra.mxu1 %v2343_v8  ;;  %v1889_v28 = vpop.permute.xlu0 %1888  ;;  %v2315_v24 = vld [vmem:[%s9885_s11 + $0x38] sm:$0xff]  ;;  %v2320_v8 = vld [vmem:[%s9885_s11 + $0x60] sm:$0xff] }
 0x36d   : > { %v2085_v34 = vsel %vm10075_vm0, %v7594_v52, %v7666_v63  ;;  %vm10076_vm1 = vmmov %vm10066_vm3  ;;  %v1939_v63 = vsel %vm661_vm10, %v7842_v55, %v7683_v41  ;;  %v2348_v41 = vld [vmem:[%s9885_s11 + $0x140] sm:$0xff]  ;;  %v1928_v12 = vsel %vm661_vm10, %v1889_v28, %v8189_v0 }
 0x36e   : > { %5846 = vmatpush2.msk.msra.mxu0 %vm10076_vm1, %v2086_v33  ;;  %vm10078_vm13 = vmmov %vm10075_vm0  ;;  %v2336_v28 = vld [vmem:[%s9885_s11 + $0xe0] sm:$0xff] }
 0x36f   : > { %v2084_v7 = vsel %vm10078_vm13, %v7653_v37, %v7594_v52  ;;  %vm10079_vm3 = vmmov %vm10059_vm12  ;;  %v2349_v52 = vld [vmem:[%s9885_s11 + $0x148] sm:$0xff]  ;;  %v1938_v37 = vsel %vm661_vm10, %v7696_v60, %v7842_v55  ;;  %v2354_v55 = vld [vmem:[%s9885_s11 + $0x170] sm:$0xff] }
 0x370   : > { %5847 = vmatprep.subr.msk.mxu0 %vm10079_vm3, %v2085_v34  ;;  %vm10080_vm14 = vmmov %vm10076_vm1  ;;  %2789 = vmatprep.mubr.f32.mxu1 %v2349_v52  ;;  %v1887_v60 = vpop.permute.xlu1 %1886  ;;  %v2321_v34 = vld [vmem:[%s9885_s11 + $0x68] sm:$0xff] }
 0x371   : > { %5848 = vmatpush2.msk.msra.mxu0 %vm10080_vm14, %v2084_v7  ;;  %vm10081_vm5 = vmmov %vm10077_vm2  ;;  %2790 = vmatmul.mubr.f32.gmra.mxu1 %v2348_v41  ;;  %v2317_v52 = vld [vmem:[%s9885_s11 + $0x48] sm:$0xff]  ;;  %v2327_v41 = vld [vmem:[%s9885_s11 + $0x98] sm:$0xff] }
 0x372   : > { %v2250_v58 = vsel %vm10081_vm5, %v2215_v53, %v2217_v30  ;;  %5849 = vmatprep.subr.msk.mxu0 %vm10083_vm15, %v1939_v63  ;;  %vm10086_vm9 = vmmov %vm10083_vm15  ;;  %2795 = vmatprep.mubr.f32.mxu1 %v2354_v55  ;;  %v2383_v30 = vld [vmem:[%s9885_s11 + $0x258] sm:$0xff]  ;;  %v10105_v53 = vmov 0.0   ;;  %v2312_v63 = vld [vmem:[%s9885_s11 + $0x20] sm:$0xff] }
 0x373   : > { %5850 = vmatpush2.msk.msra.mxu0 %vm10085_vm8, %v1938_v37  ;;  %5874 = vmatpush1.msk.msra.mxu1 %vm6690_vm6, %v2250_v58  ;;  %vm10087_vm11 = vmmov %vm10085_vm8  ;;  %v2325_v58 = vld [vmem:[%s9885_s11 + $0x88] sm:$0xff]  ;;  %v2331_v37 = vld [vmem:[%s9885_s11 + $0xb8] sm:$0xff] }
 0x374   : > { %5851 = vmatprep.subr.msk.mxu0 %vm10086_vm9, %v7736_v54  ;;  %vm10088_vm12 = vmmov %vm10086_vm9  ;;  %v1885_v54 = vpop.permute.xlu0 %1884  ;;  %v2213_v48 = vpop.permute.xlu1 %2212  ;;  %v2332_v55 = vld [vmem:[%s9885_s11 + $0xc0] sm:$0xff] }
 0x375   : > { %5852 = vmatpush2.msk.msra.mxu0 %vm10087_vm11, %v1936_v59  ;;  %vm10089_vm0 = vmmov %vm10085_vm8  ;;  %2796 = vmatmul.mubr.f32.gmra.mxu1 %v2353_v36  ;;  %v1927_v22 = vsel %vm661_vm10, %v1885_v54, %v1887_v60  ;;  %v2341_v59 = vld [vmem:[%s9885_s11 + $0x108] sm:$0xff]  ;;  %v2340_v60 = vld [vmem:[%s9885_s11 + $0x100] sm:$0xff] }
 0x376   : > { %5853 = vmatprep.subr.msk.mxu0 %vm10088_vm12, %v1935_v27  ;;  %vm10090_vm1 = vmmov %vm10086_vm9  ;;  %2801 = vmatprep.mubr.f32.mxu1 %v2359_v6  ;;  %v2346_v27 = vld [vmem:[%s9885_s11 + $0x130] sm:$0xff]  ;;  %v2355_v6 = vld [vmem:[%s9885_s11 + $0x178] sm:$0xff] }
 0x377   : > { %5854 = vmatpush2.msk.msra.mxu0 %vm10089_vm0, %v1934_v1  ;;  %vm10091_vm2 = vmmov %vm10089_vm0  ;;  %v2345_v1 = vld [vmem:[%s9885_s11 + $0x128] sm:$0xff]  ;;  %v2350_v36 = vld [vmem:[%s9885_s11 + $0x150] sm:$0xff] }
 0x378   : > { %5855 = vmatprep.subr.msk.mxu0 %vm10090_vm1, %v1933_v10  ;;  %vm10092_vm13 = vmmov %vm10090_vm1  ;;  %v2211_v14 = vpop.permute.xlu0 %2210  ;;  %v2209_v29 = vpop.permute.xlu1 %2208  ;;  %v2351_v10 = vld [vmem:[%s9885_s11 + $0x158] sm:$0xff] }
 0x379   : > { %5856 = vmatpush2.msk.msra.mxu0 %vm10091_vm2, %v1932_v32  ;;  %vm10093_vm3 = vmmov %vm10089_vm0  ;;  %2802 = vmatmul.mubr.f32.gmra.mxu1 %v2358_v43  ;;  %v2342_v32 = vld [vmem:[%s9885_s11 + $0x110] sm:$0xff]  ;;  %v2365_v43 = vld [vmem:[%s9885_s11 + $0x1c8] sm:$0xff] }
 0x37a   : > { %5857 = vmatprep.subr.msk.mxu0 %vm10092_vm13, %v1931_v21  ;;  %vm10094_vm14 = vmmov %vm10081_vm5  ;;  %2807 = vmatprep.mubr.f32.mxu1 %v2364_v51  ;;  %v2347_v21 = vld [vmem:[%s9885_s11 + $0x138] sm:$0xff]  ;;  %v2370_v51 = vld [vmem:[%s9885_s11 + $0x1f0] sm:$0xff] }
 0x37b   : > { %5858 = vmatpush2.msk.msra.mxu0 %vm10093_vm3, %v1930_v3  ;;  %v2249_v39 = vsel %vm10094_vm14, %v2211_v14, %v2213_v48  ;;  %vm10095_vm5 = vmmov %vm10090_vm1  ;;  %vm2628_vm3 = vcmask 523264   ;;  %v2356_v48 = vld [vmem:[%s9885_s11 + $0x180] sm:$0xff]  ;;  %v2361_v3 = vld [vmem:[%s9885_s11 + $0x1a8] sm:$0xff] }
 0x37c   : > { %5859 = vmatprep.subr.msk.mxu0 %vm10095_vm5, %v1929_v47  ;;  %5875 = vmatprep.subr.msk.mxu1 %vm6682_vm4, %v2249_v39  ;;  %vm10096_vm15 = vmmov %vm10089_vm0  ;;  %v1883_v18 = vpop.permute.xlu0 %1882  ;;  %v1881_v11 = vpop.permute.xlu1 %1880  ;;  %v2352_v47 = vld [vmem:[%s9885_s11 + $0x160] sm:$0xff]  ;;  %v2366_v39 = vld [vmem:[%s9885_s11 + $0x1d0] sm:$0xff] }
 0x37d   : > { %5860 = vmatpush2.msk.msra.mxu0 %vm10096_vm15, %v1928_v12  ;;  %vm10097_vm8 = vmmov %vm10094_vm14  ;;  %v1926_v35 = vsel %vm661_vm10, %v1883_v18, %v1885_v54  ;;  %2808 = vmatmul.mubr.f32.gmra.mxu1 %v2363_v19  ;;  %v2337_v54 = vld [vmem:[%s9885_s11 + $0xe8] sm:$0xff]  ;;  %v2375_v18 = vld [vmem:[%s9885_s11 + $0x218] sm:$0xff] }
 0x37e   : > { %v2248_v31 = vsel %vm10097_vm8, %v2209_v29, %v2211_v14  ;;  %vm10098_vm9 = vmmov %vm10090_vm1  ;;  %2813 = vmatprep.mubr.f32.mxu1 %v2369_v13  ;;  %v2360_v14 = vld [vmem:[%s9885_s11 + $0x1a0] sm:$0xff]  ;;  %v2357_v12 = vld [vmem:[%s9885_s11 + $0x188] sm:$0xff] }
 0x37f   : > { %5861 = vmatprep.subr.msk.mxu0 %vm10098_vm9, %v1927_v22  ;;  %5876 = vmatpush1.msk.msra.mxu1 %vm6690_vm6, %v2248_v31  ;;  %vm10099_vm11 = vmmov %vm10089_vm0  ;;  %v2371_v29 = vld [vmem:[%s9885_s11 + $0x1f8] sm:$0xff]  ;;  %v2362_v22 = vld [vmem:[%s9885_s11 + $0x1b0] sm:$0xff] }
 0x380   : > { %5862 = vmatpush2.msk.msra.mxu0 %vm10099_vm11, %v1926_v35  ;;  %v1879_v17 = vpop.permute.xlu0 %1878  ;;  %v2207_v56 = vpop.permute.xlu1 %2206  ;;  %vm10100_vm12 = vmmov %vm10090_vm1  ;;  %v2376_v31 = vld [vmem:[%s9885_s11 + $0x220] sm:$0xff]  ;;  %v2367_v35 = vld [vmem:[%s9885_s11 + $0x1d8] sm:$0xff] }
 0x381   : > { %v1925_v62 = vsel %vm661_vm10, %v1879_v17, %v1881_v11  ;;  %2814 = vmatmul.mubr.f32.gmra.mxu1 %v2368_v4  ;;  %vm10101_vm0 = vmmov %vm10097_vm8  ;;  %v2381_v19 = vld [vmem:[%s9885_s11 + $0x248] sm:$0xff]  ;;  %v2380_v11 = vld [vmem:[%s9885_s11 + $0x240] sm:$0xff] }
 0x382   : > { %5863 = vmatprep.subr.msk.mxu0 %vm10100_vm12, %v1925_v62  ;;  %2819 = vmatprep.mubr.f32.mxu1 %v2374_v42  ;;  %vm10102_vm1 = vmmov %vm10101_vm0  ;;  %v2372_v13 = vld [vmem:[%s9885_s11 + $0x200] sm:$0xff]  ;;  %v2385_v62 = vld [vmem:[%s9885_s11 + $0x268] sm:$0xff] }
 0x383   : > { %vm10104_vm13 = vmmov %vm10101_vm0  ;;  %v2377_v4 = vld [vmem:[%s9885_s11 + $0x228] sm:$0xff]  ;;  %v2387_v42 = vld [vmem:[%s9885_s11 + $0x278] sm:$0xff] }
 0x384   : > { %v2205_v5 = vpop.permute.xlu0 %2204  ;;  %v2203_v40 = vpop.permute.xlu1 %2202 }
 0x385   : > { %v2247_v57 = vsel %vm10101_vm0, %v2205_v5, %v2207_v56  ;;  %v2246_v20 = vsel %vm10102_vm1, %v2203_v40, %v2205_v5  ;;  %2820 = vmatmul.mubr.f32.gmra.mxu1 %v2373_v50  ;;  %v2382_v56 = vld [vmem:[%s9885_s11 + $0x250] sm:$0xff] }
 0x386   : > { %5877 = vmatprep.subr.msk.mxu1 %vm6682_vm4, %v2247_v57  ;;  %2825 = vmatprep.mubr.f32.mxu1 %v2379_v9 }
 0x387   : > { %5878 = vmatpush1.msk.msra.mxu1 %vm6690_vm6, %v2246_v20 }
 0x388   : > { %v1877_v0 = vpop.permute.xlu0 %1876  ;;  %v2201_v26 = vpop.permute.xlu1 %2200 }
 0x389   : > { %v1924_v38 = vsel %vm661_vm10, %v1877_v0, %v1879_v17  ;;  %2826 = vmatmul.mubr.f32.gmra.mxu1 %v2378_v46  ;;  %vm10103_vm10 = vmmov %vm10101_vm0  ;;  %v2386_v17 = vld [vmem:[%s9885_s11 + $0x270] sm:$0xff] }
 0x38a   : > { %5864 = vmatpush2.msk.msra.mxu0 %vm10091_vm2, %v1924_v38  ;;  %2831 = vmatprep.mubr.f32.mxu1 %v2384_v23 }
 0x38b   : > { %2903 = vmatmul.mubr.f32.vlgmr.msra.gmra.mxu0 %v2310_v44 }
 0x38c   : > { %v2199_v49 = vpop.permute.xlu0 %2198  ;;  %2908 = vmatprep.mubr.f32.mxu0 %v2316_v2  ;;  %v8551_v46 = vpop.permute.xlu1 %2625 }
 0x38d   : > { %v2245_v33 = vsel %vm10103_vm10, %v2199_v49, %v2201_v26  ;;  %2832 = vmatmul.mubr.f32.gmra.mxu1 %v2383_v30 }
 0x38e   : > { %5879 = vmatprep.subr.msk.mxu1 %vm6682_vm4, %v2245_v33  ;;  %3063 = vmatprep.mubr.f32.mxu1 %v10105_v53  ;;  %vm3295_vm4 = vcmask 122880  }
 0x38f   : > { %2909 = vmatmul.mubr.f32.gmra.mxu0 %v2315_v24 }
 0x390   : > { %v2197_v15 = vpop.permute.xlu0 %2196  ;;  %2914 = vmatprep.mubr.f32.mxu0 %v2321_v34  ;;  %v8561_v24 = vpop.permute.xlu1 %2615 }
 0x391   : > { %v2244_v7 = vsel %vm10104_vm13, %v2197_v15, %v2199_v49 }
 0x392   : > { %5880 = vmatpush1.msk.msra.mxu1 %vm6690_vm6, %v2244_v7 }
 0x393   : > { %2915 = vmatmul.mubr.f32.gmra.mxu0 %v2320_v8  ;;  %5429 = vmatmul.mubr.msk.f32.vlgmr.msra.gmra.mxu1 %vm2628_vm3, %v2312_v63 }
 0x394   : > { %2920 = vmatprep.mubr.f32.mxu0 %v2326_v61  ;;  %3069 = vmatprep.mubr.f32.mxu1 %v10105_v53  ;;  %v8547_v0 = vpop.permute.xlu0 %2620  ;;  %v8571_v8 = vpop.permute.xlu1 %2605 }
 0x397   : > { %2921 = vmatmul.mubr.f32.gmra.mxu0 %v2325_v58  ;;  %5430 = vmatmul.mubr.msk.f32.gmra.mxu1 %vm2628_vm3, %v2317_v52 }
 0x398   : > { %2926 = vmatprep.mubr.f32.mxu0 %v2331_v37  ;;  %3075 = vmatprep.mubr.f32.mxu1 %v10105_v53  ;;  %v8555_v26 = vpop.permute.xlu0 %2610  ;;  %v8581_v52 = vpop.permute.xlu1 %2595 }
 0x39b   : > { %2927 = vmatmul.mubr.f32.gmra.mxu0 %v2330_v16  ;;  %5431 = vmatmul.mubr.msk.f32.gmra.mxu1 %vm2628_vm3, %v2322_v25 }
 0x39c   : > { %2932 = vmatprep.mubr.f32.mxu0 %v2336_v28  ;;  %3081 = vmatprep.mubr.f32.mxu1 %v10105_v53  ;;  %v8565_v30 = vpop.permute.xlu0 %2600 }
 0x39f   : > { %2933 = vmatmul.mubr.f32.gmra.mxu0 %v2335_v45  ;;  %5432 = vmatmul.mubr.msk.f32.gmra.mxu1 %vm2628_vm3, %v2327_v41  ;;  %v8591_v45 = vpop.permute.xlu1 %2585 }
 0x3a0   : > { %2938 = vmatprep.mubr.f32.mxu0 %v2341_v59  ;;  %3087 = vmatprep.mubr.f32.mxu1 %v10105_v53  ;;  %v8575_v63 = vpop.permute.xlu0 %2590 }
 0x3a3   : > { %2939 = vmatmul.mubr.f32.gmra.mxu0 %v2340_v60  ;;  %5433 = vmatmul.mubr.msk.f32.gmra.mxu1 %vm2628_vm3, %v2332_v55 }
 0x3a4   : > { %2944 = vmatprep.mubr.f32.mxu0 %v2346_v27  ;;  %3093 = vmatprep.mubr.f32.mxu1 %v10105_v53  ;;  %v8585_v16 = vpop.permute.xlu0 %2580  ;;  %v8599_v27 = vpop.permute.xlu1 %2575 }
 0x3a5   : > { %10111 = vst [vmem:[#allocation43_spill] sm:$0xff] %v8585_v16  ;;  %10112 = vst [vmem:[#allocation101_spill] sm:$0xff] %v8599_v27 }
 0x3a7   : > { %2945 = vmatmul.mubr.f32.gmra.mxu0 %v2345_v1  ;;  %5434 = vmatmul.mubr.msk.f32.gmra.mxu1 %vm2628_vm3, %v2337_v54 }
 0x3a8   : > { %2950 = vmatprep.mubr.f32.mxu0 %v2351_v10  ;;  %3099 = vmatprep.mubr.f32.mxu1 %v10105_v53  ;;  %v2571_v59 = vpop.permute.xlu0 %2570 }
 0x3ab   : > { %2951 = vmatmul.mubr.f32.gmra.mxu0 %v2350_v36  ;;  %5435 = vmatmul.mubr.msk.f32.gmra.mxu1 %vm2628_vm3, %v2342_v32  ;;  %v2566_v32 = vpop.permute.xlu1 %2565 }
 0x3ac   : > { %2956 = vmatprep.mubr.f32.mxu0 %v2356_v48  ;;  %3105 = vmatprep.mubr.f32.mxu1 %v10105_v53  ;;  %v2561_v54 = vpop.permute.xlu0 %2560 }
 0x3af   : > { %2957 = vmatmul.mubr.f32.gmra.mxu0 %v2355_v6  ;;  %5436 = vmatmul.mubr.msk.f32.gmra.mxu1 %vm2628_vm3, %v2347_v21 }
 0x3b0   : > { %2962 = vmatprep.mubr.f32.mxu0 %v2361_v3  ;;  %3111 = vmatprep.mubr.f32.mxu1 %v10105_v53  ;;  %v2551_v6 = vpop.permute.xlu0 %2550 }
 0x3b3   : > { %2963 = vmatmul.mubr.f32.gmra.mxu0 %v2360_v14  ;;  %5437 = vmatmul.mubr.msk.f32.gmra.mxu1 %vm2628_vm3, %v2352_v47 }
 0x3b4   : > { %2968 = vmatprep.mubr.f32.mxu0 %v2366_v39  ;;  %3117 = vmatprep.mubr.f32.mxu1 %v10105_v53 }
 0x3b7   : > { %2969 = vmatmul.mubr.f32.gmra.mxu0 %v2365_v43  ;;  %5438 = vmatmul.mubr.msk.f32.gmra.mxu1 %vm2628_vm3, %v2357_v12  ;;  %v2556_v12 = vpop.permute.xlu1 %2555 }
 0x3b8   : > { %2974 = vmatprep.mubr.f32.mxu0 %v2371_v29  ;;  %3123 = vmatprep.mubr.f32.mxu1 %v10105_v53 }
 0x3bb   : > { %2975 = vmatmul.mubr.f32.gmra.mxu0 %v2370_v51  ;;  %5439 = vmatmul.mubr.msk.f32.gmra.mxu1 %vm2628_vm3, %v2362_v22 }
 0x3bc   : > { %2980 = vmatprep.mubr.f32.mxu0 %v2376_v31  ;;  %3129 = vmatprep.mubr.f32.mxu1 %v10105_v53 }
 0x3bf   : > { %2981 = vmatmul.mubr.f32.gmra.mxu0 %v2375_v18  ;;  %5440 = vmatmul.mubr.msk.f32.gmra.mxu1 %vm2628_vm3, %v2367_v35 }
 0x3c0   : > { %2986 = vmatprep.mubr.f32.mxu0 %v2381_v19  ;;  %3135 = vmatprep.mubr.f32.mxu1 %v10105_v53 }
 0x3c3   : > { %2987 = vmatmul.mubr.f32.gmra.mxu0 %v2380_v11  ;;  %5441 = vmatmul.mubr.msk.f32.gmra.mxu1 %vm2628_vm3, %v2372_v13 }
 0x3c4   : > { %2992 = vmatprep.mubr.f32.mxu0 %v2386_v17  ;;  %3141 = vmatprep.mubr.f32.mxu1 %v10105_v53 }
 0x3c7   : > { %2993 = vmatmul.mubr.f32.gmra.mxu0 %v2385_v62  ;;  %5442 = vmatmul.mubr.msk.f32.gmra.mxu1 %vm2628_vm3, %v2377_v4 }
 0x3c8   : > { %3263 = vmatprep.mubr.f32.mxu0 %v10105_v53  ;;  %3147 = vmatprep.mubr.f32.mxu1 %v10105_v53 }
 0x3cb   : > { %5443 = vmatmul.mubr.msk.f32.gmra.mxu1 %vm2628_vm3, %v2382_v56 }
 0x3cc   : > { %3153 = vmatprep.mubr.f32.mxu1 %v10105_v53 }
 0x3cf   : > { %5444 = vmatmul.mubr.msk.f32.gmra.mxu1 %vm2628_vm3, %v2387_v42 }
 0x404   : > { %v2743_v5 = vpop.f32.mrf.mxu1 }
 0x405   : > { %v2744_v21 = vadd.f32 %v2743_v5, %v2551_v6 }
 0x406   : > { %v2745_v57 = vpop.f32.mrf.mxu1 }
 0x407   : > { %v2746_v47 = vadd.f32 %v2745_v57, %v2551_v6 }
 0x409   : > { %v2749_v50 = vpop.f32.mrf.mxu1 }
 0x40a   : > { %v2750_v51 = vadd.f32 %v2749_v50, %v2556_v12 }
 0x40b   : > { %v2751_v40 = vpop.f32.mrf.mxu1 }
 0x40c   : > { %v2752_v35 = vadd.f32 %v2751_v40, %v2556_v12 }
 0x40d   : > { %v2755_v9 = vpop.f32.mrf.mxu1 }
 0x40e   : > { %v2756_v17 = vadd.f32 %v2755_v9, %v2561_v54 }
 0x40f   : > { %v2757_v20 = vpop.f32.mrf.mxu1 }
 0x410   : > { %v2758_v42 = vadd.f32 %v2757_v20, %v2561_v54 }
 0x411   : > { %v2761_v44 = vpop.f32.mrf.mxu1 }
 0x413   : > { %v8549_v38 = vpop.f32.mrf.mxu1 }
 0x414   : > { %v2764_v12 = vadd.f32 %v8549_v38, %v2566_v32 }
 0x417   : > { %v8553_v2 = vpop.f32.mrf.mxu1 }
 0x418   : > { %v2768_v20 = vadd.f32 %v8553_v2, %v2571_v59 }
 0x419   : > { %v8557_v23 = vpop.f32.mrf.mxu1 }
 0x41b   : > { %v8559_v49 = vpop.f32.mrf.mxu1 }
 0x41c   : > { %10106 = vst [vmem:[#allocation38_spill] sm:$0xff] %v8559_v49 }
 0x41d   : > { %v8563_v33 = vpop.f32.mrf.mxu1 }
 0x41e   : > { %10107 = vst [vmem:[#allocation42_spill] sm:$0xff] %v8563_v33 }
 0x41f   : > { %v8567_v34 = vpop.f32.mrf.mxu1 }
 0x420   : > { %10108 = vst [vmem:[#allocation39_spill] sm:$0xff] %v8567_v34 }
 0x421   : > { %v8569_v15 = vpop.f32.mrf.mxu1 }
 0x422   : > { %10109 = vst [vmem:[#allocation44_spill] sm:$0xff] %v8569_v15 }
 0x42c   : > { %v8573_v7 = vpop.f32.mrf.mxu1 }
 0x42d   : > { %10110 = vst [vmem:[#allocation107_spill] sm:$0xff] %v8573_v7 }
 0x42e   : > { %v8577_v61 = vpop.f32.mrf.mxu1 }
 0x431   : > { %v8579_v58 = vpop.f32.mrf.mxu1 }
 0x433   : > { %v8583_v37 = vpop.f32.mrf.mxu1 }
 0x435   : > { %v8587_v25 = vpop.f32.mrf.mxu1 }
 0x437   : > { %v8589_v28 = vpop.f32.mrf.mxu1 }
 0x439   : > { %v8593_v41 = vpop.f32.mrf.mxu1 }
 0x43b   : > { %v8595_v60 = vpop.f32.mrf.mxu1 }
 0x43d   : > { %v8597_v55 = vpop.f32.mrf.mxu1 }
 0x43f   : > { %v8601_v1 = vpop.f32.mrf.mxu1 }
 0x441   : > { %v8603_v10 = vpop.f32.mrf.mxu1 }
 0x443   : > { %v8605_v36 = vpop.f32.mrf.mxu1 }
 0x445   : > { %v8607_v48 = vpop.f32.mrf.mxu1 }
 0x447   : > { %v8609_v3 = vpop.f32.mrf.mxu1 }
 0x449   : > { %v8611_v39 = vpop.f32.mrf.mxu1 }
 0x44b   : > { %v2904_v14 = vpop.f32.mrf.mxu0  ;;  %v8613_v22 = vpop.f32.mrf.mxu1 }
 0x44c   : > { %v2905_v43 = vadd.f32 %v2904_v14, %v2744_v21  ;;  %v2762_v21 = vadd.f32 %v2761_v44, %v2566_v32  ;;  %v2770_v44 = vadd.f32 %v8557_v23, %v2571_v59  ;;  %v2830_v27 = vadd.f32 %v8613_v22, %v8547_v0 }
 0x44d   : > { %v2906_v29 = vpop.f32.mrf.mxu0  ;;  %v8615_v19 = vpop.f32.mrf.mxu1  ;;  %v2818_v22 = vadd.f32 %v8605_v36, %v8555_v26 }
 0x44e   : > { %v2907_v31 = vadd.f32 %v2906_v29, %v2746_v47 }
 0x44f   : > { %v2910_v18 = vpop.f32.mrf.mxu0  ;;  %v8617_v62 = vpop.f32.mrf.mxu1 }
 0x450   : > { %v2911_v11 = vadd.f32 %v2910_v18, %v2750_v51 }
 0x451   : > { %v2912_v13 = vpop.f32.mrf.mxu0 }
 0x452   : > { %v2913_v4 = vadd.f32 %v2912_v13, %v2752_v35 }
 0x453   : > { %v2916_v56 = vpop.f32.mrf.mxu0  ;;  %v3065_v57 = vpop.f32.mrf.mxu1 }
 0x454   : > { %v2917_v5 = vadd.f32 %v2916_v56, %v2756_v17  ;;  %v8619_v6 = vadd.f32 %v3065_v57, %v2905_v43 }
 0x455   : > { %v2918_v50 = vpop.f32.mrf.mxu0  ;;  %v3067_v47 = vpop.f32.mrf.mxu1 }
 0x456   : > { %10113 = vst [vmem:[#allocation99_spill] sm:$0xff] %v8619_v6  ;;  %v2919_v14 = vadd.f32 %v2918_v50, %v2758_v42  ;;  %v8621_v29 = vadd.f32 %v3067_v47, %v2907_v31 }
 0x457   : > { %v2922_v40 = vpop.f32.mrf.mxu0  ;;  %v3071_v9 = vpop.f32.mrf.mxu1 }
 0x458   : > { %10114 = vst [vmem:[#allocation46_spill] sm:$0xff] %v8621_v29  ;;  %v2923_v51 = vadd.f32 %v2922_v40, %v2762_v21  ;;  %v8624_v18 = vadd.f32 %v3071_v9, %v2911_v11 }
 0x459   : > { %v2924_v35 = vpop.f32.mrf.mxu0  ;;  %v3073_v13 = vpop.f32.mrf.mxu1 }
 0x45a   : > { %10115 = vst [vmem:[#allocation94_spill] sm:$0xff] %v8624_v18  ;;  %v2925_v54 = vadd.f32 %v2924_v35, %v2764_v12  ;;  %v8627_v43 = vadd.f32 %v3073_v13, %v2913_v4 }
 0x45b   : > { %v2928_v17 = vpop.f32.mrf.mxu0  ;;  %v3077_v31 = vpop.f32.mrf.mxu1 }
 0x45c   : > { %10116 = vst [vmem:[#allocation91_spill] sm:$0xff] %v8627_v43  ;;  %v2929_v56 = vadd.f32 %v2928_v17, %v2768_v20  ;;  %v8630_v42 = vadd.f32 %v3077_v31, %v2917_v5 }
 0x45d   : > { %v2930_v57 = vpop.f32.mrf.mxu0  ;;  %v3079_v32 = vpop.f32.mrf.mxu1 }
 0x45e   : > { %10117 = vst [vmem:[#allocation45_spill] sm:$0xff] %v8630_v42  ;;  %v2931_v38 = vadd.f32 %v2930_v57, %v2770_v44  ;;  %v8632_v50 = vadd.f32 %v3079_v32, %v2919_v14 }
 0x45f   : > { %v8634_v11 = vpop.f32.mrf.mxu0  ;;  %v3083_v21 = vpop.f32.mrf.mxu1 }
 0x460   : > { %10118 = vst [vmem:[#allocation85_spill] sm:$0xff] %v8632_v50  ;;  %10119 = vst [vmem:[#allocation84_spill] sm:$0xff] %v8634_v11  ;;  %v8636_v2 = vadd.f32 %v3083_v21, %v2923_v51 }
 0x461   : > { %v8638_v47 = vpop.f32.mrf.mxu0  ;;  %v3085_v4 = vpop.f32.mrf.mxu1 }
 0x462   : > { %10120 = vst [vmem:[#allocation48_spill] sm:$0xff] %v8636_v2  ;;  %10121 = vst [vmem:[#allocation80_spill] sm:$0xff] %v8638_v47  ;;  %v8640_v40 = vadd.f32 %v3085_v4, %v2925_v54 }
 0x463   : > { %v8642_v23 = vpop.f32.mrf.mxu0  ;;  %v3089_v59 = vpop.f32.mrf.mxu1 }
 0x464   : > { %10122 = vst [vmem:[#allocation78_spill] sm:$0xff] %v8640_v40  ;;  %10123 = vst [vmem:[#allocation57_spill] sm:$0xff] %v8642_v23  ;;  %v8644_v5 = vadd.f32 %v3089_v59, %v2929_v56 }
 0x465   : > { %v8646_v12 = vpop.f32.mrf.mxu0  ;;  %v3091_v9 = vpop.f32.mrf.mxu1 }
 0x466   : > { %10124 = vst [vmem:[#allocation47_spill] sm:$0xff] %v8644_v5  ;;  %10125 = vst [vmem:[#allocation73_spill] sm:$0xff] %v8646_v12  ;;  %v8648_v14 = vadd.f32 %v3091_v9, %v2931_v38 }
 0x467   : > { %v8650_v35 = vpop.f32.mrf.mxu0  ;;  %v8652_v20 = vpop.f32.mrf.mxu1 }
 0x468   : > { %10126 = vst [vmem:[#allocation72_spill] sm:$0xff] %v8648_v14  ;;  %10127 = vst [vmem:[#allocation34_spill] sm:$0xff] %v8650_v35  ;;  %v2828_v35 = vadd.f32 %v8611_v39, %v8547_v0  ;;  %v2816_v0 = vadd.f32 %v8603_v10, %v8555_v26 }
 0x469   : > { %10128 = vst [vmem:[#allocation35_spill] sm:$0xff] %v8652_v20  ;;  %v8654_v51 = vpop.f32.mrf.mxu0  ;;  %v8656_v13 = vpop.f32.mrf.mxu1 }
 0x46a   : > { %10129 = vst [vmem:[#allocation59_spill] sm:$0xff] %v8654_v51  ;;  %10130 = vst [vmem:[#allocation118_spill] sm:$0xff] %v8656_v13  ;;  %v2824_v51 = vadd.f32 %v8609_v3, %v8561_v24 }
 0x46b   : > { %v8658_v54 = vpop.f32.mrf.mxu0  ;;  %v8660_v17 = vpop.f32.mrf.mxu1 }
 0x46c   : > { %10131 = vst [vmem:[#allocation50_spill] sm:$0xff] %v8658_v54  ;;  %10132 = vst [vmem:[#allocation115_spill] sm:$0xff] %v8660_v17 }
 0x46d   : > { %v8662_v44 = vpop.f32.mrf.mxu0  ;;  %v8664_v56 = vpop.f32.mrf.mxu1 }
 0x46e   : > { %10133 = vst [vmem:[#allocation40_spill] sm:$0xff] %v8664_v56 }
 0x46f   : > { %v8666_v31 = vpop.f32.mrf.mxu0  ;;  %v8668_v57 = vpop.f32.mrf.mxu1 }
 0x470   : > { %10134 = vst [vmem:[#allocation60_spill] sm:$0xff] %v8668_v57 }
 0x471   : > { %v8670_v38 = vpop.f32.mrf.mxu0  ;;  %v8672_v32 = vpop.f32.mrf.mxu1 }
 0x472   : > { %10135 = vst [vmem:[#allocation112_spill] sm:$0xff] %v8672_v32  ;;  %v2834_v32 = vadd.f32 %v8615_v19, %v8551_v46  ;;  %v2822_v19 = vadd.f32 %v8607_v48, %v8561_v24 }
 0x473   : > { %v8674_v21 = vpop.f32.mrf.mxu0  ;;  %v8676_v4 = vpop.f32.mrf.mxu1 }
 0x474   : > { %10136 = vst [vmem:[#allocation49_spill] sm:$0xff] %v8676_v4  ;;  %v2836_v4 = vadd.f32 %v8617_v62, %v8551_v46 }
 0x475   : > { %v8678_v59 = vpop.f32.mrf.mxu0  ;;  %v8680_v9 = vpop.f32.mrf.mxu1 }
 0x476   : > { %10137 = vst [vmem:[#allocation109_spill] sm:$0xff] %v8680_v9 }
 0x477   : > { %v2970_v53 = vpop.f32.mrf.mxu0  ;;  %v8682_v6 = vpop.f32.mrf.mxu1 }
 0x478   : > { %10138 = vst [vmem:[#allocation116_spill] sm:$0xff] %v8682_v6 }
 0x479   : > { %v2972_v29 = vpop.f32.mrf.mxu0  ;;  %v8684_v18 = vpop.f32.mrf.mxu1 }
 0x47a   : > { %10139 = vst [vmem:[#allocation114_spill] sm:$0xff] %v8684_v18 }
 0x47b   : > { %v2976_v43 = vpop.f32.mrf.mxu0  ;;  %v8686_v42 = vpop.f32.mrf.mxu1 }
 0x47c   : > { %v2977_v48 = vadd.f32 %v2976_v43, %v2816_v0 }
 0x47d   : > { %v2978_v50 = vpop.f32.mrf.mxu0  ;;  %v8688_v2 = vpop.f32.mrf.mxu1 }
 0x47e   : > { %v2979_v3 = vadd.f32 %v2978_v50, %v2818_v22 }
 0x47f   : > { %v2982_v40 = vpop.f32.mrf.mxu0  ;;  %v3131_v5 = vpop.f32.mrf.mxu1 }
 0x480   : > { %v2983_v39 = vadd.f32 %v2982_v40, %v2822_v19 }
 0x481   : > { %v2984_v14 = vpop.f32.mrf.mxu0  ;;  %v3133_v20 = vpop.f32.mrf.mxu1 }
 0x482   : > { %v2985_v46 = vadd.f32 %v2984_v14, %v2824_v51  ;;  %v10142_v51 = vld [vmem:[#allocation50_spill] sm:$0xff] }
 0x483   : > { %v2988_v13 = vpop.f32.mrf.mxu0  ;;  %v3137_v17 = vpop.f32.mrf.mxu1 }
 0x484   : > { %v2989_v6 = vadd.f32 %v2988_v13, %v2828_v35 }
 0x485   : > { %v2990_v11 = vpop.f32.mrf.mxu0  ;;  %v3139_v56 = vpop.f32.mrf.mxu1 }
 0x486   : > { %v2991_v15 = vadd.f32 %v2990_v11, %v2830_v27  ;;  %v2812_v27 = vadd.f32 %v8601_v1, %v8571_v8  ;;  %v3138_v1 = vadd.f32 %v3137_v17, %v2977_v48  ;;  %v10145_v17 = vld [vmem:[#allocation44_spill] sm:$0xff]  ;;  %v10156_v48 = vld [vmem:[#allocation57_spill] sm:$0xff] }
 0x487   : > { %v3143_v47 = vpop.f32.mrf.mxu1  ;;  %v2994_v57 = vpop.f32.mrf.mxu0 }
 0x488   : > { %v2995_v34 = vadd.f32 %v2994_v57, %v2834_v32 }
 0x489   : > { %v3145_v23 = vpop.f32.mrf.mxu1  ;;  %v2996_v12 = vpop.f32.mrf.mxu0 }
 0x48a   : > { %v2997_v16 = vadd.f32 %v2996_v12, %v2836_v4  ;;  %v3146_v11 = vadd.f32 %v3145_v23, %v2985_v46  ;;  %v3144_v12 = vadd.f32 %v3143_v47, %v2983_v39  ;;  %v2792_v47 = vadd.f32 %v8579_v58, %v8575_v63  ;;  %v10143_v58 = vld [vmem:[#allocation116_spill] sm:$0xff]  ;;  %v10151_v46 = vld [vmem:[#allocation101_spill] sm:$0xff] }
 0x48b   : > { %v3149_v49 = vpop.f32.mrf.mxu1  ;;  %v2788_v23 = vadd.f32 %v8577_v61, %v8591_v45  ;;  %v10153_v39 = vld [vmem:[#allocation73_spill] sm:$0xff] }
 0x48c   : > { %v3150_v57 = vadd.f32 %v3149_v49, %v2989_v6  ;;  %v2804_v49 = vadd.f32 %v8593_v41, %v8565_v30  ;;  %v3186_v50 = vmax.f32 %v3144_v12, 0.0 }
 0x48d   : > { %v3151_v33 = vpop.f32.mrf.mxu1 }
 0x48e   : > { %v3152_v62 = vadd.f32 %v3151_v33, %v2991_v15  ;;  %v2806_v33 = vadd.f32 %v8595_v60, %v8565_v30  ;;  %v2973_v15 = vadd.f32 %v2972_v29, %v2812_v27  ;;  %v3188_v10 = vmax.f32 %v3150_v57, 0.0  ;;  %v10154_v27 = vld [vmem:[#allocation112_spill] sm:$0xff] }
 0x48f   : > { %v3155_v9 = vpop.f32.mrf.mxu1  ;;  %v2798_v60 = vadd.f32 %v8587_v25, %v8581_v52  ;;  %v2965_v29 = vadd.f32 %v8674_v21, %v2804_v49  ;;  %v3184_v25 = vmax.f32 %v3138_v1, 0.0  ;;  %v10148_v21 = vld [vmem:[#allocation39_spill] sm:$0xff]  ;;  %v10159_v49 = vld [vmem:[#allocation40_spill] sm:$0xff] }
 0x490   : > { %v3156_v54 = vadd.f32 %v3155_v9, %v2995_v34  ;;  %v2810_v34 = vadd.f32 %v8597_v55, %v8571_v8  ;;  %v3189_v26 = vmax.f32 %v3152_v62, 0.0  ;;  %v2800_v8 = vadd.f32 %v8589_v28, %v8581_v52  ;;  %v10150_v9 = vld [vmem:[#allocation49_spill] sm:$0xff]  ;;  %v10152_v62 = vld [vmem:[#allocation42_spill] sm:$0xff] }
 0x491   : > { %v3157_v7 = vpop.f32.mrf.mxu1  ;;  %v2967_v55 = vadd.f32 %v8678_v59, %v2806_v33  ;;  %v3134_v6 = vadd.f32 %v3133_v20, %v2973_v15  ;;  %v2959_v40 = vadd.f32 %v8666_v31, %v2798_v60  ;;  %v3126_v52 = vadd.f32 %v8686_v42, %v2965_v29  ;;  %v10144_v42 = vld [vmem:[#allocation43_spill] sm:$0xff]  ;;  %v10149_v59 = vld [vmem:[#allocation34_spill] sm:$0xff] }
 0x492   : > { %v3158_v18 = vadd.f32 %v3157_v7, %v2997_v16  ;;  %v3190_v36 = vmax.f32 %v3156_v54, 0.0  ;;  %v3140_v7 = vadd.f32 %v3139_v56, %v2979_v3  ;;  %v2971_v16 = vadd.f32 %v2970_v53, %v2810_v34  ;;  %v10146_v31 = vld [vmem:[#allocation59_spill] sm:$0xff]  ;;  %v10162_v60 = vld [vmem:[#allocation118_spill] sm:$0xff] }
 0x493   : > { %v2794_v53 = vadd.f32 %v8583_v37, %v8575_v63  ;;  %v2961_v30 = vadd.f32 %v8670_v38, %v2800_v8  ;;  %v3128_v28 = vadd.f32 %v8688_v2, %v2967_v55  ;;  %v3183_v35 = vmax.f32 %v3134_v6, 0.0  ;;  %v10141_v2 = vld [vmem:[#allocation107_spill] sm:$0xff]  ;;  %v10147_v38 = vld [vmem:[#allocation109_spill] sm:$0xff] }
 0x494   : > { %v3191_v24 = vmax.f32 %v3158_v18, 0.0  ;;  %v3187_v18 = vmax.f32 %v3146_v11, 0.0  ;;  %v3132_v43 = vadd.f32 %v3131_v5, %v2971_v16  ;;  %v3185_v41 = vmax.f32 %v3140_v7, 0.0  ;;  %v10140_v5 = vld [vmem:[#allocation114_spill] sm:$0xff]  ;;  %v10158_v7 = vld [vmem:[#allocation80_spill] sm:$0xff]  ;;  %v10161_v55 = vld [vmem:[#allocation115_spill] sm:$0xff] }
 0x495   : > { %v2955_v37 = vadd.f32 %v8662_v44, %v2794_v53  ;;  %v3122_v14 = vadd.f32 %v10140_v5, %v2961_v30  ;;  %v2786_v20 = vadd.f32 %v10141_v2, %v8591_v45  ;;  %v2953_v63 = vadd.f32 %v10142_v51, %v2792_v47  ;;  %v10166_v5 = vld [vmem:[#allocation78_spill] sm:$0xff] }
 0x496   : > { %3199 = vmatprep.subr.mxu0 %v3191_v24  ;;  %v3120_v13 = vadd.f32 %v10143_v58, %v2959_v40  ;;  %v3182_v54 = vmax.f32 %v3132_v43, 0.0  ;;  %v2782_v56 = vadd.f32 %v10145_v17, %v10144_v42  ;;  %v2949_v61 = vadd.f32 %v10146_v31, %v2788_v23  ;;  %v10155_v24 = vld [vmem:[#allocation38_spill] sm:$0xff]  ;;  %v10165_v23 = vld [vmem:[#allocation47_spill] sm:$0xff] }
 0x497   : > { %3200 = vmatpush1.msra.mxu0 %v3190_v36  ;;  %v3116_v44 = vadd.f32 %v10147_v38, %v2955_v37  ;;  %v3181_v32 = vmax.f32 %v3128_v28, 0.0  ;;  %v2780_v4 = vadd.f32 %v10148_v21, %v10144_v42  ;;  %v2947_v45 = vadd.f32 %v10149_v59, %v2786_v20  ;;  %v10157_v36 = vld [vmem:[#allocation60_spill] sm:$0xff]  ;;  %v10168_v20 = vld [vmem:[#allocation85_spill] sm:$0xff]  ;;  %v10171_v42 = vld [vmem:[#allocation94_spill] sm:$0xff] }
 0x498   : > { %3201 = vmatprep.subr.mxu0 %v3189_v26  ;;  %v3114_v19 = vadd.f32 %v10150_v9, %v2953_v63  ;;  %v3180_v22 = vmax.f32 %v3126_v52, 0.0  ;;  %v2776_v0 = vadd.f32 %v10152_v62, %v10151_v46  ;;  %v2943_v57 = vadd.f32 %v10153_v39, %v2782_v56  ;;  %v10164_v52 = vld [vmem:[#allocation72_spill] sm:$0xff]  ;;  %v10169_v63 = vld [vmem:[#allocation45_spill] sm:$0xff]  ;;  %v10172_v56 = vld [vmem:[#allocation46_spill] sm:$0xff] }
 0x499   : > { %3202 = vmatpush1.msra.mxu0 %v3188_v10  ;;  %v3110_v3 = vadd.f32 %v10154_v27, %v2949_v61  ;;  %v3179_v11 = vmax.f32 %v3122_v14, 0.0  ;;  %v2774_v34 = vadd.f32 %v10155_v24, %v10151_v46  ;;  %v2941_v12 = vadd.f32 %v10156_v48, %v2780_v4  ;;  %v10160_v10 = vld [vmem:[#allocation84_spill] sm:$0xff]  ;;  %v10173_v61 = vld [vmem:[#allocation99_spill] sm:$0xff] }
 0x49a   : > { %3203 = vmatprep.subr.mxu0 %v3187_v18  ;;  %v3108_v33 = vadd.f32 %v10157_v36, %v2947_v45  ;;  %v3178_v15 = vmax.f32 %v3120_v13, 0.0  ;;  %v2937_v26 = vadd.f32 %v10158_v7, %v2776_v0  ;;  %v3104_v16 = vadd.f32 %v10159_v49, %v2943_v57  ;;  %v10170_v13 = vld [vmem:[#allocation91_spill] sm:$0xff]  ;;  %v10175_v45 = vld [vmem:[#allocation26_spill] sm:$0xff] }
 0x49b   : > { %3204 = vmatpush1.msra.mxu0 %v3186_v50  ;;  %v3177_v1 = vmax.f32 %v3116_v44, 0.0  ;;  %v2935_v8 = vadd.f32 %v10160_v10, %v2774_v34  ;;  %v3102_v6 = vadd.f32 %v10161_v55, %v2941_v12  ;;  %v3176_v18 = vmax.f32 %v3114_v19, 0.0  ;;  %v10163_v50 = vld [vmem:[#allocation35_spill] sm:$0xff]  ;;  %v3192_v44 = vld [vmem:[#allocation10] sm:$0x3]  ;;  %v3197_v19 = vpop.permute.xlu1 %3196 }
 0x49c   : > { %3205 = vmatprep.subr.mxu0 %v3185_v41  ;;  %v3098_v29 = vadd.f32 %v10162_v60, %v2937_v26  ;;  %v3175_v43 = vmax.f32 %v3110_v3, 0.0  ;;  %v3174_v30 = vmax.f32 %v3108_v33, 0.0  ;;  %v3173_v28 = vmax.f32 %v3104_v16, 0.0  ;;  %v10176_v24 = vld [vmem:[#allocation27_spill] sm:$0xff]  ;;  %v8787_v26 = vld [vmem:[#allocation12] sm:$0xff]  ;;  %v8797_v16 = vld [vmem:[#allocation12 + $0x38] sm:$0xff] }
 0x49d   : > { %3206 = vmatpush1.msra.mxu0 %v3184_v25  ;;  %v3096_v53 = vadd.f32 %v10163_v50, %v2935_v8  ;;  %v3172_v41 = vmax.f32 %v3102_v6, 0.0  ;;  %v3169_v25 = vmax.f32 %v10164_v52, 0.0  ;;  %v3168_v37 = vmax.f32 %v10165_v23, 0.0  ;;  %v8777_v33 = vld [vmem:[#allocation12 + $0x28] sm:$0xff]  ;;  %v3456_v52 = vld [vmem:[#allocation12 + $0x18] sm:$0xff] }
 0x49e   : > { %3207 = vmatprep.subr.mxu0 %v3183_v35  ;;  %v3171_v47 = vmax.f32 %v3098_v29, 0.0  ;;  %v3167_v14 = vmax.f32 %v10166_v5, 0.0  ;;  %v10167_v35 = vld [vmem:[#allocation48_spill] sm:$0xff]  ;;  %v3165_v51 = vmax.f32 %v10168_v20, 0.0  ;;  %v3164_v58 = vmax.f32 %v10169_v63, 0.0  ;;  %v8783_v7 = vld [vmem:[#allocation12 + $0x8] sm:$0xff] }
 0x49f   : > { %3208 = vmatpush1.msra.mxu0 %v3182_v54  ;;  %v3170_v40 = vmax.f32 %v3096_v53, 0.0  ;;  %v3166_v2 = vmax.f32 %v10167_v35, 0.0  ;;  %v3163_v54 = vmax.f32 %v10170_v13, 0.0  ;;  %v3162_v17 = vmax.f32 %v10171_v42, 0.0 }
 0x4a0   : > { %3209 = vmatprep.subr.mxu0 %v3181_v32  ;;  %v3161_v31 = vmax.f32 %v10172_v56, 0.0  ;;  %v3160_v38 = vmax.f32 %v10173_v61, 0.0  ;;  %v10174_v32 = vmov 0.0   ;;  %v6281_v21 = vmov 1966171168  }
 0x4a1   : > { %3210 = vmatpush1.msra.mxu0 %v3180_v22  ;;  %v3272_v4 = vunpack.c.l.s4 %v6281_v21 }
 0x4a2   : > { %3211 = vmatprep.subr.mxu0 %v3179_v11 }
 0x4a3   : > { %3212 = vmatpush1.msra.mxu0 %v3178_v15  ;;  %v3273_v59 = vunpack.c.0.s8 %v3272_v4  ;;  %v8779_v15 = vld [vmem:[#allocation12 + $0x20] sm:$0xff] }
 0x4a4   : > { %3213 = vmatprep.subr.mxu0 %v3177_v1 }
 0x4a5   : > { %3214 = vmatpush1.msra.mxu0 %v3176_v18  ;;  %v3276_v9 = vsub.s32 %v3273_v59, %v10175_v45 }
 0x4a6   : > { %3215 = vmatprep.subr.mxu0 %v3175_v43 }
 0x4a7   : > { %3216 = vmatpush1.msra.mxu0 %v3174_v30 }
 0x4a8   : > { %3217 = vmatprep.subr.mxu0 %v3173_v28  ;;  %v3459_v28 = vld [vmem:[#allocation12 + $0x30] sm:$0xff] }
 0x4a9   : > { %3218 = vmatpush1.msra.mxu0 %v3172_v41 }
 0x4aa   : > { %3219 = vmatprep.subr.mxu0 %v3171_v47 }
 0x4ab   : > { %3220 = vmatpush1.msra.mxu0 %v3170_v40 }
 0x4ac   : > { %3221 = vmatprep.subr.mxu0 %v3169_v25  ;;  %v3455_v25 = vld [vmem:[#allocation12 + $0x10] sm:$0xff] }
 0x4ad   : > { %3222 = vmatpush1.msra.mxu0 %v3168_v37 }
 0x4ae   : > { %3223 = vmatprep.subr.mxu0 %v3167_v14 }
 0x4af   : > { %3224 = vmatpush1.msra.mxu0 %v3166_v2 }
 0x4b0   : > { %3225 = vmatprep.subr.mxu0 %v3165_v51 }
 0x4b1   : > { %3226 = vmatpush1.msra.mxu0 %v3164_v58 }
 0x4b2   : > { %3227 = vmatprep.subr.mxu0 %v3163_v54 }
 0x4b3   : > { %3228 = vmatpush1.msra.mxu0 %v3162_v17 }
 0x4b4   : > { %3229 = vmatprep.subr.mxu0 %v3161_v31 }
 0x4b5   : > { %3230 = vmatpush1.msra.mxu0 %v3160_v38 }
 0x4b6   : > { %3264 = vmatmul.mubr.f32.vlgmr.msra.gmra.mxu0 %v3192_v44  ;;  %3497 = vmatprep.subr.mxu0 %v8777_v33 }
 0x4b7   : > { %3533 = vmatprep.mubr.f32.mxu0 %v10174_v32  ;;  %3498 = vmatpush1.msra.mxu0 %v8779_v15 }
 0x4b8   : > { %3499 = vmatprep.subr.mxu0 %v8783_v7 }
 0x4b9   : > { %3500 = vmatpush1.msra.mxu0 %v8787_v26 }
 0x4ba   : > { %3574 = vmatprep.subr.mxu0 %v8797_v16 }
 0x576   : > { %v3265_v22 = vpop.f32.mrf.mxu0 }
 0x577   : > { %v3266_v46 = vadd.f32 %v3265_v22, %v3197_v19 }
 0x578   : > { %v3267_v62 = vpop.f32.mrf.mxu0 }
 0x579   : > { %v3277_v0 = vrot.slane %v3266_v46, %v3276_v9  ;;  %v3268_v39 = vadd.f32 %v3267_v62, %v3197_v19 }
 0x57b   : > { %v3278_v57 = vcombine.high %v3277_v0, %v3277_v0  ;;  %v3285_v27 = vrot.slane %v3277_v0, %v3276_v9  ;;  %v3369_v3 = vrot.slane %v3268_v39, %v3276_v9 }
 0x57d   : > { %v3292_v11 = vrot.slane %v3278_v57, %v3276_v9  ;;  %3296 = vst.msk [vmem:[#allocation5] sm:$0x1] %vm3295_vm4, %v3285_v27  ;;  %v3301_v34 = vrot.slane %v3285_v27, %v10176_v24  ;;  %v3370_v48 = vcombine.high %v3369_v3, %v3369_v3  ;;  %v3377_v12 = vrot.slane %v3369_v3, %v3276_v9 }
 0x57f   : > { %3297 = vst.msk [vmem:[#allocation5 + $0x10] sm:$0x1] %vm3295_vm4, %v3292_v11  ;;  %v3384_v36 = vrot.slane %v3370_v48, %v3276_v9  ;;  %3387 = vst.msk [vmem:[#allocation5 + $0x8] sm:$0x1] %vm3295_vm4, %v3377_v12  ;;  %3314 = vrot.lane.b32.xlu1 %v3301_v34, %s6282_s2  ;;  %3306 = vrot.lane.b32.xlu0 %v3301_v34, %s9816_s5  ;;  %v3392_v49 = vrot.slane %v3377_v12, %v10176_v24 }
 0x580   : > { %v3305_v1 = vrot.slane %v3292_v11, %v10176_v24 }
 0x581   : > { %3388 = vst.msk [vmem:[#allocation5 + $0x18] sm:$0x1] %vm3295_vm4, %v3384_v36  ;;  %v3396_v10 = vrot.slane %v3384_v36, %v10176_v24 }
 0x583   : > { %3330 = vrot.lane.b32.xlu1 %v3301_v34, %s6283_s25  ;;  %3322 = vrot.lane.b32.xlu0 %v3301_v34, %s6284_s7 }
 0x587   : > { %3346 = vrot.lane.b32.xlu1 %v3301_v34, %s6285_s8  ;;  %3338 = vrot.lane.b32.xlu0 %v3301_v34, %s6286_s3 }
 0x58b   : > { %3397 = vrot.lane.b32.xlu1 %v3392_v49, %s9816_s5  ;;  %3354 = vrot.lane.b32.xlu0 %v3301_v34, %s6279_s12 }
 0x58f   : > { %3413 = vrot.lane.b32.xlu1 %v3392_v49, %s6284_s7  ;;  %3405 = vrot.lane.b32.xlu0 %v3392_v49, %s6282_s2 }
 0x593   : > { %3429 = vrot.lane.b32.xlu1 %v3392_v49, %s6286_s3  ;;  %3421 = vrot.lane.b32.xlu0 %v3392_v49, %s6283_s25 }
 0x597   : > { %3445 = vrot.lane.b32.xlu1 %v3392_v49, %s6279_s12  ;;  %3437 = vrot.lane.b32.xlu0 %v3392_v49, %s6285_s8 }
 0x59b   : > { %3316 = vrot.lane.b32.xlu1 %v3305_v1, %s6282_s2  ;;  %3308 = vrot.lane.b32.xlu0 %v3305_v1, %s9816_s5 }
 0x59f   : > { %3332 = vrot.lane.b32.xlu1 %v3305_v1, %s6283_s25  ;;  %3324 = vrot.lane.b32.xlu0 %v3305_v1, %s6284_s7 }
 0x5a3   : > { %3348 = vrot.lane.b32.xlu1 %v3305_v1, %s6285_s8  ;;  %3340 = vrot.lane.b32.xlu0 %v3305_v1, %s6286_s3 }
 0x5a7   : > { %3399 = vrot.lane.b32.xlu1 %v3396_v10, %s9816_s5  ;;  %3356 = vrot.lane.b32.xlu0 %v3305_v1, %s6279_s12 }
 0x5ab   : > { %3415 = vrot.lane.b32.xlu1 %v3396_v10, %s6284_s7  ;;  %3407 = vrot.lane.b32.xlu0 %v3396_v10, %s6282_s2 }
 0x5af   : > { %3431 = vrot.lane.b32.xlu1 %v3396_v10, %s6286_s3  ;;  %3423 = vrot.lane.b32.xlu0 %v3396_v10, %s6283_s25 }
 0x5b3   : > { %3447 = vrot.lane.b32.xlu1 %v3396_v10, %s6279_s12  ;;  %3439 = vrot.lane.b32.xlu0 %v3396_v10, %s6285_s8 }
 0x5f1   : > { %v3315_v8 = vpop.permute.xlu1 %3314  ;;  %v3307_v55 = vpop.permute.xlu0 %3306 }
 0x5f2   : > { %3320 = vst.msk [vmem:[#allocation5 + $0x2] sm:$0x1] %vm3295_vm4, %v3315_v8  ;;  %3312 = vst.msk [vmem:[#allocation5 + $0x1] sm:$0x1] %vm3295_vm4, %v3307_v55 }
 0x5f5   : > { %v3331_v6 = vpop.permute.xlu1 %3330  ;;  %v3323_v18 = vpop.permute.xlu0 %3322 }
 0x5f6   : > { %3336 = vst.msk [vmem:[#allocation5 + $0x4] sm:$0x1] %vm3295_vm4, %v3331_v6  ;;  %3328 = vst.msk [vmem:[#allocation5 + $0x3] sm:$0x1] %vm3295_vm4, %v3323_v18 }
 0x5f9   : > { %v3347_v60 = vpop.permute.xlu1 %3346  ;;  %v3339_v29 = vpop.permute.xlu0 %3338 }
 0x5fa   : > { %3352 = vst.msk [vmem:[#allocation5 + $0x6] sm:$0x1] %vm3295_vm4, %v3347_v60  ;;  %3344 = vst.msk [vmem:[#allocation5 + $0x5] sm:$0x1] %vm3295_vm4, %v3339_v29 }
 0x5fd   : > { %v3398_v43 = vpop.permute.xlu1 %3397  ;;  %v3355_v50 = vpop.permute.xlu0 %3354 }
 0x5fe   : > { %3403 = vst.msk [vmem:[#allocation5 + $0x9] sm:$0x1] %vm3295_vm4, %v3398_v43  ;;  %3360 = vst.msk [vmem:[#allocation5 + $0x7] sm:$0x1] %vm3295_vm4, %v3355_v50 }
 0x601   : > { %v3414_v53 = vpop.permute.xlu1 %3413  ;;  %v3406_v30 = vpop.permute.xlu0 %3405 }
 0x602   : > { %3419 = vst.msk [vmem:[#allocation5 + $0xb] sm:$0x1] %vm3295_vm4, %v3414_v53  ;;  %3411 = vst.msk [vmem:[#allocation5 + $0xa] sm:$0x1] %vm3295_vm4, %v3406_v30 }
 0x605   : > { %v3430_v41 = vpop.permute.xlu1 %3429  ;;  %v3422_v47 = vpop.permute.xlu0 %3421  ;;  %v3461_v40 = vld [vmem:[#allocation5] sm:$0xff] }
 0x606   : > { %3435 = vst.msk [vmem:[#allocation5 + $0xd] sm:$0x1] %vm3295_vm4, %v3430_v41  ;;  %3427 = vst.msk [vmem:[#allocation5 + $0xc] sm:$0x1] %vm3295_vm4, %v3422_v47  ;;  %5445 = vmatmul.mubr.msk.f32.vlgmr.msra.gmra.mxu0 %vm521_vm7, %v3461_v40 }
 0x607   : > { %3539 = vmatprep.mubr.f32.mxu0 %v10174_v32  ;;  %3575 = vmatpush1.msra.mxu0 %v3459_v28 }
 0x608   : > { %3576 = vmatprep.subr.mxu0 %v3456_v52 }
 0x609   : > { %v3446_v23 = vpop.permute.xlu1 %3445  ;;  %v3438_v37 = vpop.permute.xlu0 %3437  ;;  %3577 = vmatpush1.msra.mxu0 %v3455_v25 }
 0x60a   : > { %3451 = vst.msk [vmem:[#allocation5 + $0xf] sm:$0x1] %vm3295_vm4, %v3446_v23  ;;  %3443 = vst.msk [vmem:[#allocation5 + $0xe] sm:$0x1] %vm3295_vm4, %v3438_v37  ;;  %3668 = vmatprep.subr.mxu0 %v8777_v33 }
 0x60d   : > { %v3317_v5 = vpop.permute.xlu1 %3316  ;;  %v3309_v14 = vpop.permute.xlu0 %3308 }
 0x60e   : > { %3321 = vst.msk [vmem:[#allocation5 + $0x12] sm:$0x1] %vm3295_vm4, %v3317_v5  ;;  %3313 = vst.msk [vmem:[#allocation5 + $0x11] sm:$0x1] %vm3295_vm4, %v3309_v14 }
 0x611   : > { %v3333_v35 = vpop.permute.xlu1 %3332  ;;  %v3325_v2 = vpop.permute.xlu0 %3324  ;;  %v3462_v20 = vld [vmem:[#allocation5 + $0x8] sm:$0xff] }
 0x612   : > { %3337 = vst.msk [vmem:[#allocation5 + $0x14] sm:$0x1] %vm3295_vm4, %v3333_v35  ;;  %3329 = vst.msk [vmem:[#allocation5 + $0x13] sm:$0x1] %vm3295_vm4, %v3325_v2  ;;  %5446 = vmatmul.mubr.msk.f32.gmra.mxu0 %vm521_vm7, %v3462_v20 }
 0x613   : > { %3610 = vmatprep.mubr.f32.mxu0 %v10174_v32 }
 0x615   : > { %v3349_v51 = vpop.permute.xlu1 %3348  ;;  %v3341_v63 = vpop.permute.xlu0 %3340 }
 0x616   : > { %3353 = vst.msk [vmem:[#allocation5 + $0x16] sm:$0x1] %vm3295_vm4, %v3349_v51  ;;  %3345 = vst.msk [vmem:[#allocation5 + $0x15] sm:$0x1] %vm3295_vm4, %v3341_v63  ;;  %5447 = vmatmul.mubr.msk.f32.vlgmr.msra.gmra.mxu0 %vm521_vm7, %v3461_v40 }
 0x617   : > { %3616 = vmatprep.mubr.f32.mxu0 %v10174_v32  ;;  %3669 = vmatpush1.msra.mxu0 %v8779_v15 }
 0x618   : > { %3670 = vmatprep.subr.mxu0 %v8783_v7 }
 0x619   : > { %v3400_v58 = vpop.permute.xlu1 %3399  ;;  %v3357_v13 = vpop.permute.xlu0 %3356  ;;  %3671 = vmatpush1.msra.mxu0 %v8787_v26 }
 0x61a   : > { %3404 = vst.msk [vmem:[#allocation5 + $0x19] sm:$0x1] %vm3295_vm4, %v3400_v58  ;;  %3361 = vst.msk [vmem:[#allocation5 + $0x17] sm:$0x1] %vm3295_vm4, %v3357_v13  ;;  %5448 = vmatmul.mubr.msk.f32.gmra.mxu0 %vm521_vm7, %v3462_v20  ;;  %3745 = vmatprep.subr.mxu0 %v8797_v16 }
 0x61b   : > { %3704 = vmatprep.mubr.f32.mxu0 %v10174_v32 }
 0x61d   : > { %v3416_v54 = vpop.permute.xlu1 %3415  ;;  %v3408_v42 = vpop.permute.xlu0 %3407 }
 0x61e   : > { %3420 = vst.msk [vmem:[#allocation5 + $0x1b] sm:$0x1] %vm3295_vm4, %v3416_v54  ;;  %3412 = vst.msk [vmem:[#allocation5 + $0x1a] sm:$0x1] %vm3295_vm4, %v3408_v42 }
 0x621   : > { %v3432_v17 = vpop.permute.xlu1 %3431  ;;  %v3424_v56 = vpop.permute.xlu0 %3423  ;;  %v3632_v31 = vld [vmem:[#allocation5 + $0x10] sm:$0xff] }
 0x622   : > { %3436 = vst.msk [vmem:[#allocation5 + $0x1d] sm:$0x1] %vm3295_vm4, %v3432_v17  ;;  %3428 = vst.msk [vmem:[#allocation5 + $0x1c] sm:$0x1] %vm3295_vm4, %v3424_v56  ;;  %5449 = vmatmul.mubr.msk.f32.vlgmr.msra.gmra.mxu0 %vm521_vm7, %v3632_v31 }
 0x623   : > { %3710 = vmatprep.mubr.f32.mxu0 %v10174_v32  ;;  %3746 = vmatpush1.msra.mxu0 %v3459_v28 }
 0x624   : > { %3747 = vmatprep.subr.mxu0 %v3456_v52 }
 0x625   : > { %v3448_v61 = vpop.permute.xlu1 %3447  ;;  %v3440_v38 = vpop.permute.xlu0 %3439  ;;  %3748 = vmatpush1.msra.mxu0 %v3455_v25 }
 0x626   : > { %3452 = vst.msk [vmem:[#allocation5 + $0x1f] sm:$0x1] %vm3295_vm4, %v3448_v61  ;;  %3444 = vst.msk [vmem:[#allocation5 + $0x1e] sm:$0x1] %vm3295_vm4, %v3440_v38 }
 0x62d   : > { %v3633_v44 = vld [vmem:[#allocation5 + $0x18] sm:$0xff] }
 0x62e   : > { %5450 = vmatmul.mubr.msk.f32.gmra.mxu0 %vm521_vm7, %v3633_v44 }
 0x62f   : > { %3781 = vmatprep.mubr.f32.mxu0 %v10174_v32 }
 0x632   : > { %5451 = vmatmul.mubr.msk.f32.vlgmr.msra.gmra.mxu0 %vm521_vm7, %v3632_v31 }
 0x633   : > { %3787 = vmatprep.mubr.f32.mxu0 %v10174_v32 }
 0x636   : > { %5452 = vmatmul.mubr.msk.f32.gmra.mxu0 %vm521_vm7, %v3633_v44 }
 0x6c6   : > { %v3535_v21 = vpop.f32.mrf.mxu0 }
 0x6c7   : > { %3623 = vst [vmem:[#allocation6] sm:$0xff] %v3535_v21 }
 0x6c8   : > { %v3537_v4 = vpop.f32.mrf.mxu0 }
 0x6c9   : > { %3624 = vst [vmem:[#allocation6 + $0x28] sm:$0xff] %v3537_v4 }
 0x6d2   : > { %v3541_v59 = vpop.f32.mrf.mxu0 }
 0x6d3   : > { %3627 = vst [vmem:[#allocation6 + $0x8] sm:$0xff] %v3541_v59 }
 0x6d4   : > { %v3543_v45 = vpop.f32.mrf.mxu0 }
 0x6d5   : > { %3628 = vst [vmem:[#allocation6 + $0x30] sm:$0xff] %v3543_v45 }
 0x6d6   : > { %v3612_v9 = vpop.f32.mrf.mxu0 }
 0x6d7   : > { %3625 = vst [vmem:[#allocation6 + $0x68] sm:$0xff] %v3612_v9 }
 0x6d8   : > { %v3614_v19 = vpop.f32.mrf.mxu0 }
 0x6d9   : > { %3626 = vst [vmem:[#allocation6 + $0x78] sm:$0xff] %v3614_v19 }
 0x6da   : > { %v3618_v22 = vpop.f32.mrf.mxu0 }
 0x6db   : > { %3629 = vst [vmem:[#allocation6 + $0x20] sm:$0xff] %v3618_v22 }
 0x6dc   : > { %v3620_v46 = vpop.f32.mrf.mxu0 }
 0x6dd   : > { %3630 = vst [vmem:[#allocation6 + $0x58] sm:$0xff] %v3620_v46 }
 0x6e2   : > { %v3706_v62 = vpop.f32.mrf.mxu0 }
 0x6e3   : > { %3794 = vst [vmem:[#allocation6 + $0x70] sm:$0xff] %v3706_v62 }
 0x6e4   : > { %v3708_v32 = vpop.f32.mrf.mxu0 }
 0x6e5   : > { %3795 = vst [vmem:[#allocation6 + $0x60] sm:$0xff] %v3708_v32 }
 0x6ee   : > { %v3712_v0 = vpop.f32.mrf.mxu0 }
 0x6ef   : > { %3798 = vst [vmem:[#allocation6 + $0x10] sm:$0xff] %v3712_v0 }
 0x6f0   : > { %v3714_v39 = vpop.f32.mrf.mxu0 }
 0x6f1   : > { %3799 = vst [vmem:[#allocation6 + $0x50] sm:$0xff] %v3714_v39 }
 0x6f2   : > { %v3783_v57 = vpop.f32.mrf.mxu0 }
 0x6f3   : > { %3796 = vst [vmem:[#allocation6 + $0x18] sm:$0xff] %v3783_v57 }
 0x6f4   : > { %v3785_v27 = vpop.f32.mrf.mxu0 }
 0x6f5   : > { %3797 = vst [vmem:[#allocation6 + $0x40] sm:$0xff] %v3785_v27 }
 0x6f6   : > { %v3789_v3 = vpop.f32.mrf.mxu0 }
 0x6f7   : > { %3800 = vst [vmem:[#allocation6 + $0x48] sm:$0xff] %v3789_v3 }
 0x6f8   : > { %v3791_v11 = vpop.f32.mrf.mxu0 }
 0x6f9   : > { %3801 = vst [vmem:[#allocation6 + $0x38] sm:$0xff] %v3791_v11 }
 0x6fa PF: > { %v3843_v24 = vld [vmem:[#allocation6 + $0x30] sm:$0xff]  ;;  %v3845_v34 = vld [vmem:[#allocation6 + $0x58] sm:$0xff]  ;;  %v3842_v48 = vld [vmem:[#allocation6 + $0x8] sm:$0xff]  ;;  %vm3850_vm6 = vcmask 130048   ;;  %v6287_v49 = vmov 0.0  }
 0x6fb   : > { %3975 = vmatprep.subr.mxu0 %v3843_v24  ;;  %4232 = vmatprep.subr.mxu1 %v3845_v34  ;;  %v3844_v12 = vld [vmem:[#allocation6 + $0x20] sm:$0xff]  ;;  %v3835_v36 = vld [vmem:[#allocation6 + $0x28] sm:$0xff]  ;;  %v3837_v33 = vld [vmem:[#allocation6 + $0x78] sm:$0xff] }
 0x6fc   : > { %3976 = vmatpush1.msra.mxu0 %v3842_v48  ;;  %4233 = vmatpush1.msra.mxu1 %v3844_v12  ;;  %v3834_v15 = vld [vmem:[#allocation6] sm:$0xff]  ;;  %v3836_v7 = vld [vmem:[#allocation6 + $0x68] sm:$0xff]  ;;  %v3847_v16 = vld [vmem:[#allocation6 + $0x50] sm:$0xff] }
 0x6fd   : > { %3977 = vmatprep.subr.mxu0 %v3835_v36  ;;  %4234 = vmatprep.subr.mxu1 %v3837_v33  ;;  %v8866_v26 = vld [vmem:[%s6522_s4] sm:$0xff]  ;;  %v3846_v10 = vld [vmem:[#allocation6 + $0x10] sm:$0xff]  ;;  %v3840_v29 = vld [vmem:[#allocation6 + $0x18] sm:$0xff] }
 0x6fe   : > { %3978 = vmatpush1.msra.mxu0 %v3834_v15  ;;  %4011 = vmatprep.mubr.f32.mxu0 %v6287_v49  ;;  %v3848_v8 = vld [vmem:[#allocation6 + $0x48] sm:$0xff]  ;;  %v3839_v6 = vld [vmem:[#allocation6 + $0x60] sm:$0xff]  ;;  %v3838_v60 = vld [vmem:[#allocation6 + $0x70] sm:$0xff] }
 0x6ff   : > { %4235 = vmatpush1.msra.mxu1 %v3836_v7  ;;  %4268 = vmatprep.mubr.f32.mxu1 %v6287_v49  ;;  %v8875_v55 = vld [vmem:[%s6522_s4 + $0x8] sm:$0xff]  ;;  %v3841_v18 = vld [vmem:[#allocation6 + $0x40] sm:$0xff]  ;;  %v8886_v43 = vld [vmem:[%s6522_s4 + $0x10] sm:$0xff] }
 0x700   : > { %v3849_v1 = vld [vmem:[#allocation6 + $0x38] sm:$0xff]  ;;  %5453 = vmatmul.mubr.msk.f32.vlgmr.msra.gmra.mxu0 %vm3850_vm6, %v8866_v26  ;;  %5485 = vmatmul.mubr.msk.f32.vlgmr.msra.gmra.mxu1 %vm3850_vm6, %v8866_v26  ;;  %v8904_v53 = vld [vmem:[%s6522_s4 + $0x20] sm:$0xff]  ;;  %v8913_v30 = vld [vmem:[%s6522_s4 + $0x28] sm:$0xff] }
 0x701   : > { %4489 = vmatprep.subr.mxu0 %v3847_v16  ;;  %4746 = vmatprep.subr.mxu1 %v3849_v1  ;;  %v8895_v50 = vld [vmem:[%s6522_s4 + $0x18] sm:$0xff]  ;;  %v8922_v28 = vld [vmem:[%s6522_s4 + $0x30] sm:$0xff]  ;;  %v8940_v47 = vld [vmem:[%s6522_s4 + $0x40] sm:$0xff] }
 0x702   : > { %4490 = vmatpush1.msra.mxu0 %v3846_v10  ;;  %4747 = vmatpush1.msra.mxu1 %v3848_v8  ;;  %v8931_v41 = vld [vmem:[%s6522_s4 + $0x38] sm:$0xff]  ;;  %v8949_v40 = vld [vmem:[%s6522_s4 + $0x48] sm:$0xff]  ;;  %v8958_v52 = vld [vmem:[%s6522_s4 + $0x50] sm:$0xff] }
 0x703   : > { %4017 = vmatprep.mubr.f32.mxu0 %v6287_v49  ;;  %4274 = vmatprep.mubr.f32.mxu1 %v6287_v49  ;;  %v8967_v25 = vld [vmem:[%s6522_s4 + $0x58] sm:$0xff]  ;;  %v8976_v23 = vld [vmem:[%s6522_s4 + $0x60] sm:$0xff]  ;;  %v8985_v37 = vld [vmem:[%s6522_s4 + $0x68] sm:$0xff] }
 0x704   : > { %5454 = vmatmul.mubr.msk.f32.gmra.mxu0 %vm3850_vm6, %v8875_v55  ;;  %5486 = vmatmul.mubr.msk.f32.gmra.mxu1 %vm3850_vm6, %v8875_v55  ;;  %v8994_v5 = vld [vmem:[%s6522_s4 + $0x70] sm:$0xff]  ;;  %v9003_v14 = vld [vmem:[%s6522_s4 + $0x78] sm:$0xff]  ;;  %v9012_v35 = vld [vmem:[%s6522_s4 + $0x80] sm:$0xff] }
 0x705   : > { %4023 = vmatprep.mubr.f32.mxu0 %v6287_v49  ;;  %4280 = vmatprep.mubr.f32.mxu1 %v6287_v49  ;;  %v9021_v2 = vld [vmem:[%s6522_s4 + $0x88] sm:$0xff]  ;;  %v9030_v20 = vld [vmem:[%s6522_s4 + $0x90] sm:$0xff]  ;;  %v9039_v51 = vld [vmem:[%s6522_s4 + $0x98] sm:$0xff] }
 0x706   : > { %4491 = vmatprep.subr.mxu0 %v3839_v6  ;;  %4748 = vmatprep.subr.mxu1 %v3841_v18  ;;  %v9048_v63 = vld [vmem:[%s6522_s4 + $0xa0] sm:$0xff]  ;;  %v9057_v58 = vld [vmem:[%s6522_s4 + $0xa8] sm:$0xff]  ;;  %v9066_v13 = vld [vmem:[%s6522_s4 + $0xb0] sm:$0xff] }
 0x707   : > { %4492 = vmatpush1.msra.mxu0 %v3838_v60  ;;  %4749 = vmatpush1.msra.mxu1 %v3840_v29  ;;  %v9075_v54 = vld [vmem:[%s6522_s4 + $0xb8] sm:$0xff]  ;;  %v9084_v42 = vld [vmem:[%s6522_s4 + $0xc0] sm:$0xff]  ;;  %v9093_v17 = vld [vmem:[%s6522_s4 + $0xc8] sm:$0xff] }
 0x708   : > { %5455 = vmatmul.mubr.msk.f32.gmra.mxu0 %vm3850_vm6, %v8886_v43  ;;  %5487 = vmatmul.mubr.msk.f32.gmra.mxu1 %vm3850_vm6, %v8886_v43  ;;  %v9102_v56 = vld [vmem:[%s6522_s4 + $0xd0] sm:$0xff]  ;;  %v9111_v31 = vld [vmem:[%s6522_s4 + $0xd8] sm:$0xff]  ;;  %v9120_v61 = vld [vmem:[%s6522_s4 + $0xe0] sm:$0xff] }
 0x709   : > { %4029 = vmatprep.mubr.f32.mxu0 %v6287_v49  ;;  %4286 = vmatprep.mubr.f32.mxu1 %v6287_v49  ;;  %v9129_v38 = vld [vmem:[%s6522_s4 + $0xe8] sm:$0xff]  ;;  %v9138_v44 = vld [vmem:[%s6522_s4 + $0xf0] sm:$0xff]  ;;  %v9147_v21 = vld [vmem:[%s6522_s4 + $0xf8] sm:$0xff]  ;;  %s10177_s4 = sand.u32 1, %s6223_s14  }
 0x70a   : > { %s5233_s12 = scalar_lea.sflag [#allocation9], %s10177_s4 }
 0x70c   : > { %5456 = vmatmul.mubr.msk.f32.gmra.mxu0 %vm3850_vm6, %v8895_v50  ;;  %5488 = vmatmul.mubr.msk.f32.gmra.mxu1 %vm3850_vm6, %v8895_v50 }
 0x70d   : > { %4035 = vmatprep.mubr.f32.mxu0 %v6287_v49  ;;  %4292 = vmatprep.mubr.f32.mxu1 %v6287_v49 }
 0x710   : > { %5457 = vmatmul.mubr.msk.f32.gmra.mxu0 %vm3850_vm6, %v8904_v53  ;;  %5489 = vmatmul.mubr.msk.f32.gmra.mxu1 %vm3850_vm6, %v8904_v53 }
 0x711   : > { %4041 = vmatprep.mubr.f32.mxu0 %v6287_v49  ;;  %4298 = vmatprep.mubr.f32.mxu1 %v6287_v49 }
 0x714   : > { %5458 = vmatmul.mubr.msk.f32.gmra.mxu0 %vm3850_vm6, %v8913_v30  ;;  %5490 = vmatmul.mubr.msk.f32.gmra.mxu1 %vm3850_vm6, %v8913_v30 }
 0x715   : > { %4047 = vmatprep.mubr.f32.mxu0 %v6287_v49  ;;  %4304 = vmatprep.mubr.f32.mxu1 %v6287_v49 }
 0x718   : > { %5459 = vmatmul.mubr.msk.f32.gmra.mxu0 %vm3850_vm6, %v8922_v28  ;;  %5491 = vmatmul.mubr.msk.f32.gmra.mxu1 %vm3850_vm6, %v8922_v28 }
 0x719   : > { %4053 = vmatprep.mubr.f32.mxu0 %v6287_v49  ;;  %4310 = vmatprep.mubr.f32.mxu1 %v6287_v49 }
 0x71c   : > { %5460 = vmatmul.mubr.msk.f32.gmra.mxu0 %vm3850_vm6, %v8931_v41  ;;  %5492 = vmatmul.mubr.msk.f32.gmra.mxu1 %vm3850_vm6, %v8931_v41 }
 0x71d   : > { %4059 = vmatprep.mubr.f32.mxu0 %v6287_v49  ;;  %4316 = vmatprep.mubr.f32.mxu1 %v6287_v49 }
 0x720   : > { %5461 = vmatmul.mubr.msk.f32.gmra.mxu0 %vm3850_vm6, %v8940_v47  ;;  %5493 = vmatmul.mubr.msk.f32.gmra.mxu1 %vm3850_vm6, %v8940_v47 }
 0x721   : > { %4065 = vmatprep.mubr.f32.mxu0 %v6287_v49  ;;  %4322 = vmatprep.mubr.f32.mxu1 %v6287_v49 }
 0x724   : > { %5462 = vmatmul.mubr.msk.f32.gmra.mxu0 %vm3850_vm6, %v8949_v40  ;;  %5494 = vmatmul.mubr.msk.f32.gmra.mxu1 %vm3850_vm6, %v8949_v40 }
 0x725   : > { %4071 = vmatprep.mubr.f32.mxu0 %v6287_v49  ;;  %4328 = vmatprep.mubr.f32.mxu1 %v6287_v49 }
 0x728   : > { %5463 = vmatmul.mubr.msk.f32.gmra.mxu0 %vm3850_vm6, %v8958_v52  ;;  %5495 = vmatmul.mubr.msk.f32.gmra.mxu1 %vm3850_vm6, %v8958_v52 }
 0x729   : > { %4077 = vmatprep.mubr.f32.mxu0 %v6287_v49  ;;  %4334 = vmatprep.mubr.f32.mxu1 %v6287_v49 }
 0x72c   : > { %5464 = vmatmul.mubr.msk.f32.gmra.mxu0 %vm3850_vm6, %v8967_v25  ;;  %5496 = vmatmul.mubr.msk.f32.gmra.mxu1 %vm3850_vm6, %v8967_v25 }
 0x72d   : > { %4083 = vmatprep.mubr.f32.mxu0 %v6287_v49  ;;  %4340 = vmatprep.mubr.f32.mxu1 %v6287_v49 }
 0x730   : > { %5465 = vmatmul.mubr.msk.f32.gmra.mxu0 %vm3850_vm6, %v8976_v23  ;;  %5497 = vmatmul.mubr.msk.f32.gmra.mxu1 %vm3850_vm6, %v8976_v23 }
 0x731   : > { %4089 = vmatprep.mubr.f32.mxu0 %v6287_v49  ;;  %4346 = vmatprep.mubr.f32.mxu1 %v6287_v49 }
 0x734   : > { %5466 = vmatmul.mubr.msk.f32.gmra.mxu0 %vm3850_vm6, %v8985_v37  ;;  %5498 = vmatmul.mubr.msk.f32.gmra.mxu1 %vm3850_vm6, %v8985_v37 }
 0x735   : > { %4095 = vmatprep.mubr.f32.mxu0 %v6287_v49  ;;  %4352 = vmatprep.mubr.f32.mxu1 %v6287_v49 }
 0x738   : > { %5467 = vmatmul.mubr.msk.f32.gmra.mxu0 %vm3850_vm6, %v8994_v5  ;;  %5499 = vmatmul.mubr.msk.f32.gmra.mxu1 %vm3850_vm6, %v8994_v5 }
 0x739   : > { %4101 = vmatprep.mubr.f32.mxu0 %v6287_v49  ;;  %4358 = vmatprep.mubr.f32.mxu1 %v6287_v49 }
 0x73c   : > { %5468 = vmatmul.mubr.msk.f32.gmra.mxu0 %vm3850_vm6, %v9003_v14  ;;  %5500 = vmatmul.mubr.msk.f32.gmra.mxu1 %vm3850_vm6, %v9003_v14 }
 0x73d   : > { %4107 = vmatprep.mubr.f32.mxu0 %v6287_v49  ;;  %4364 = vmatprep.mubr.f32.mxu1 %v6287_v49 }
 0x740   : > { %5469 = vmatmul.mubr.msk.f32.gmra.mxu0 %vm3850_vm6, %v9012_v35  ;;  %5501 = vmatmul.mubr.msk.f32.gmra.mxu1 %vm3850_vm6, %v9012_v35 }
 0x741   : > { %4113 = vmatprep.mubr.f32.mxu0 %v6287_v49  ;;  %4370 = vmatprep.mubr.f32.mxu1 %v6287_v49 }
 0x744   : > { %5470 = vmatmul.mubr.msk.f32.gmra.mxu0 %vm3850_vm6, %v9021_v2  ;;  %5502 = vmatmul.mubr.msk.f32.gmra.mxu1 %vm3850_vm6, %v9021_v2 }
 0x745   : > { %4119 = vmatprep.mubr.f32.mxu0 %v6287_v49  ;;  %4376 = vmatprep.mubr.f32.mxu1 %v6287_v49 }
 0x748   : > { %5471 = vmatmul.mubr.msk.f32.gmra.mxu0 %vm3850_vm6, %v9030_v20  ;;  %5503 = vmatmul.mubr.msk.f32.gmra.mxu1 %vm3850_vm6, %v9030_v20 }
 0x749   : > { %4125 = vmatprep.mubr.f32.mxu0 %v6287_v49  ;;  %4382 = vmatprep.mubr.f32.mxu1 %v6287_v49 }
 0x74c   : > { %5472 = vmatmul.mubr.msk.f32.gmra.mxu0 %vm3850_vm6, %v9039_v51  ;;  %5504 = vmatmul.mubr.msk.f32.gmra.mxu1 %vm3850_vm6, %v9039_v51 }
 0x74d   : > { %4131 = vmatprep.mubr.f32.mxu0 %v6287_v49  ;;  %4388 = vmatprep.mubr.f32.mxu1 %v6287_v49 }
 0x750   : > { %5473 = vmatmul.mubr.msk.f32.gmra.mxu0 %vm3850_vm6, %v9048_v63  ;;  %5505 = vmatmul.mubr.msk.f32.gmra.mxu1 %vm3850_vm6, %v9048_v63 }
 0x751   : > { %4137 = vmatprep.mubr.f32.mxu0 %v6287_v49  ;;  %4394 = vmatprep.mubr.f32.mxu1 %v6287_v49 }
 0x754   : > { %5474 = vmatmul.mubr.msk.f32.gmra.mxu0 %vm3850_vm6, %v9057_v58  ;;  %5506 = vmatmul.mubr.msk.f32.gmra.mxu1 %vm3850_vm6, %v9057_v58 }
 0x755   : > { %4143 = vmatprep.mubr.f32.mxu0 %v6287_v49  ;;  %4400 = vmatprep.mubr.f32.mxu1 %v6287_v49 }
 0x758   : > { %5475 = vmatmul.mubr.msk.f32.gmra.mxu0 %vm3850_vm6, %v9066_v13  ;;  %5507 = vmatmul.mubr.msk.f32.gmra.mxu1 %vm3850_vm6, %v9066_v13 }
 0x759   : > { %4149 = vmatprep.mubr.f32.mxu0 %v6287_v49  ;;  %4406 = vmatprep.mubr.f32.mxu1 %v6287_v49 }
 0x75c   : > { %5476 = vmatmul.mubr.msk.f32.gmra.mxu0 %vm3850_vm6, %v9075_v54  ;;  %5508 = vmatmul.mubr.msk.f32.gmra.mxu1 %vm3850_vm6, %v9075_v54 }
 0x75d   : > { %4155 = vmatprep.mubr.f32.mxu0 %v6287_v49  ;;  %4412 = vmatprep.mubr.f32.mxu1 %v6287_v49 }
 0x760   : > { %5477 = vmatmul.mubr.msk.f32.gmra.mxu0 %vm3850_vm6, %v9084_v42  ;;  %5509 = vmatmul.mubr.msk.f32.gmra.mxu1 %vm3850_vm6, %v9084_v42 }
 0x761   : > { %4161 = vmatprep.mubr.f32.mxu0 %v6287_v49  ;;  %4418 = vmatprep.mubr.f32.mxu1 %v6287_v49 }
 0x764   : > { %5478 = vmatmul.mubr.msk.f32.gmra.mxu0 %vm3850_vm6, %v9093_v17  ;;  %5510 = vmatmul.mubr.msk.f32.gmra.mxu1 %vm3850_vm6, %v9093_v17 }
 0x765   : > { %4167 = vmatprep.mubr.f32.mxu0 %v6287_v49  ;;  %4424 = vmatprep.mubr.f32.mxu1 %v6287_v49 }
 0x768   : > { %5479 = vmatmul.mubr.msk.f32.gmra.mxu0 %vm3850_vm6, %v9102_v56  ;;  %5511 = vmatmul.mubr.msk.f32.gmra.mxu1 %vm3850_vm6, %v9102_v56 }
 0x769   : > { %4173 = vmatprep.mubr.f32.mxu0 %v6287_v49  ;;  %4430 = vmatprep.mubr.f32.mxu1 %v6287_v49 }
 0x76c   : > { %5480 = vmatmul.mubr.msk.f32.gmra.mxu0 %vm3850_vm6, %v9111_v31  ;;  %5512 = vmatmul.mubr.msk.f32.gmra.mxu1 %vm3850_vm6, %v9111_v31 }
 0x76d   : > { %4179 = vmatprep.mubr.f32.mxu0 %v6287_v49  ;;  %4436 = vmatprep.mubr.f32.mxu1 %v6287_v49 }
 0x770   : > { %5481 = vmatmul.mubr.msk.f32.gmra.mxu0 %vm3850_vm6, %v9120_v61  ;;  %5513 = vmatmul.mubr.msk.f32.gmra.mxu1 %vm3850_vm6, %v9120_v61 }
 0x771   : > { %4185 = vmatprep.mubr.f32.mxu0 %v6287_v49  ;;  %4442 = vmatprep.mubr.f32.mxu1 %v6287_v49 }
 0x774   : > { %5482 = vmatmul.mubr.msk.f32.gmra.mxu0 %vm3850_vm6, %v9129_v38  ;;  %5514 = vmatmul.mubr.msk.f32.gmra.mxu1 %vm3850_vm6, %v9129_v38 }
 0x775   : > { %4191 = vmatprep.mubr.f32.mxu0 %v6287_v49  ;;  %4448 = vmatprep.mubr.f32.mxu1 %v6287_v49 }
 0x778   : > { %5483 = vmatmul.mubr.msk.f32.gmra.mxu0 %vm3850_vm6, %v9138_v44  ;;  %5515 = vmatmul.mubr.msk.f32.gmra.mxu1 %vm3850_vm6, %v9138_v44 }
 0x779   : > { %4197 = vmatprep.mubr.f32.mxu0 %v6287_v49  ;;  %4454 = vmatprep.mubr.f32.mxu1 %v6287_v49 }
 0x77c   : > { %5484 = vmatmul.mubr.msk.f32.gmra.mxu0 %vm3850_vm6, %v9147_v21  ;;  %5516 = vmatmul.mubr.msk.f32.gmra.mxu1 %vm3850_vm6, %v9147_v21 }
 0x77d   : > { %4525 = vmatprep.mubr.f32.mxu0 %v6287_v49  ;;  %4782 = vmatprep.mubr.f32.mxu1 %v6287_v49 }
 0x780   : > { %5517 = vmatmul.mubr.msk.f32.vlgmr.msra.gmra.mxu0 %vm3850_vm6, %v8866_v26  ;;  %5549 = vmatmul.mubr.msk.f32.vlgmr.msra.gmra.mxu1 %vm3850_vm6, %v8866_v26 }
 0x781   : > { %4531 = vmatprep.mubr.f32.mxu0 %v6287_v49  ;;  %4788 = vmatprep.mubr.f32.mxu1 %v6287_v49 }
 0x784   : > { %5518 = vmatmul.mubr.msk.f32.gmra.mxu0 %vm3850_vm6, %v8875_v55  ;;  %5550 = vmatmul.mubr.msk.f32.gmra.mxu1 %vm3850_vm6, %v8875_v55 }
 0x785   : > { %4537 = vmatprep.mubr.f32.mxu0 %v6287_v49  ;;  %4794 = vmatprep.mubr.f32.mxu1 %v6287_v49 }
 0x788   : > { %5519 = vmatmul.mubr.msk.f32.gmra.mxu0 %vm3850_vm6, %v8886_v43  ;;  %5551 = vmatmul.mubr.msk.f32.gmra.mxu1 %vm3850_vm6, %v8886_v43 }
 0x789   : > { %4543 = vmatprep.mubr.f32.mxu0 %v6287_v49  ;;  %4800 = vmatprep.mubr.f32.mxu1 %v6287_v49 }
 0x78c   : > { %5520 = vmatmul.mubr.msk.f32.gmra.mxu0 %vm3850_vm6, %v8895_v50  ;;  %5552 = vmatmul.mubr.msk.f32.gmra.mxu1 %vm3850_vm6, %v8895_v50 }
 0x78d   : > { %4549 = vmatprep.mubr.f32.mxu0 %v6287_v49  ;;  %4806 = vmatprep.mubr.f32.mxu1 %v6287_v49 }
 0x790   : > { %5521 = vmatmul.mubr.msk.f32.gmra.mxu0 %vm3850_vm6, %v8904_v53  ;;  %5553 = vmatmul.mubr.msk.f32.gmra.mxu1 %vm3850_vm6, %v8904_v53 }
 0x791   : > { %4555 = vmatprep.mubr.f32.mxu0 %v6287_v49  ;;  %4812 = vmatprep.mubr.f32.mxu1 %v6287_v49 }
 0x794   : > { %5522 = vmatmul.mubr.msk.f32.gmra.mxu0 %vm3850_vm6, %v8913_v30  ;;  %5554 = vmatmul.mubr.msk.f32.gmra.mxu1 %vm3850_vm6, %v8913_v30 }
 0x795   : > { %4561 = vmatprep.mubr.f32.mxu0 %v6287_v49  ;;  %4818 = vmatprep.mubr.f32.mxu1 %v6287_v49 }
 0x798   : > { %5523 = vmatmul.mubr.msk.f32.gmra.mxu0 %vm3850_vm6, %v8922_v28  ;;  %5555 = vmatmul.mubr.msk.f32.gmra.mxu1 %vm3850_vm6, %v8922_v28 }
 0x799   : > { %4567 = vmatprep.mubr.f32.mxu0 %v6287_v49  ;;  %4824 = vmatprep.mubr.f32.mxu1 %v6287_v49 }
 0x79c   : > { %5524 = vmatmul.mubr.msk.f32.gmra.mxu0 %vm3850_vm6, %v8931_v41  ;;  %5556 = vmatmul.mubr.msk.f32.gmra.mxu1 %vm3850_vm6, %v8931_v41 }
 0x79d   : > { %4573 = vmatprep.mubr.f32.mxu0 %v6287_v49  ;;  %4830 = vmatprep.mubr.f32.mxu1 %v6287_v49 }
 0x7a0   : > { %5525 = vmatmul.mubr.msk.f32.gmra.mxu0 %vm3850_vm6, %v8940_v47  ;;  %5557 = vmatmul.mubr.msk.f32.gmra.mxu1 %vm3850_vm6, %v8940_v47 }
 0x7a1   : > { %4579 = vmatprep.mubr.f32.mxu0 %v6287_v49  ;;  %4836 = vmatprep.mubr.f32.mxu1 %v6287_v49 }
 0x7a4   : > { %5526 = vmatmul.mubr.msk.f32.gmra.mxu0 %vm3850_vm6, %v8949_v40  ;;  %5558 = vmatmul.mubr.msk.f32.gmra.mxu1 %vm3850_vm6, %v8949_v40 }
 0x7a5   : > { %4585 = vmatprep.mubr.f32.mxu0 %v6287_v49  ;;  %4842 = vmatprep.mubr.f32.mxu1 %v6287_v49 }
 0x7a8   : > { %5527 = vmatmul.mubr.msk.f32.gmra.mxu0 %vm3850_vm6, %v8958_v52  ;;  %5559 = vmatmul.mubr.msk.f32.gmra.mxu1 %vm3850_vm6, %v8958_v52 }
 0x7a9   : > { %4591 = vmatprep.mubr.f32.mxu0 %v6287_v49  ;;  %4848 = vmatprep.mubr.f32.mxu1 %v6287_v49 }
 0x7ac   : > { %5528 = vmatmul.mubr.msk.f32.gmra.mxu0 %vm3850_vm6, %v8967_v25  ;;  %5560 = vmatmul.mubr.msk.f32.gmra.mxu1 %vm3850_vm6, %v8967_v25 }
 0x7ad   : > { %4597 = vmatprep.mubr.f32.mxu0 %v6287_v49  ;;  %4854 = vmatprep.mubr.f32.mxu1 %v6287_v49 }
 0x7b0   : > { %5529 = vmatmul.mubr.msk.f32.gmra.mxu0 %vm3850_vm6, %v8976_v23  ;;  %5561 = vmatmul.mubr.msk.f32.gmra.mxu1 %vm3850_vm6, %v8976_v23 }
 0x7b1   : > { %4603 = vmatprep.mubr.f32.mxu0 %v6287_v49  ;;  %4860 = vmatprep.mubr.f32.mxu1 %v6287_v49 }
 0x7b4   : > { %5530 = vmatmul.mubr.msk.f32.gmra.mxu0 %vm3850_vm6, %v8985_v37  ;;  %5562 = vmatmul.mubr.msk.f32.gmra.mxu1 %vm3850_vm6, %v8985_v37 }
 0x7b5   : > { %4609 = vmatprep.mubr.f32.mxu0 %v6287_v49  ;;  %4866 = vmatprep.mubr.f32.mxu1 %v6287_v49 }
 0x7b8   : > { %5531 = vmatmul.mubr.msk.f32.gmra.mxu0 %vm3850_vm6, %v8994_v5  ;;  %5563 = vmatmul.mubr.msk.f32.gmra.mxu1 %vm3850_vm6, %v8994_v5 }
 0x7b9   : > { %4615 = vmatprep.mubr.f32.mxu0 %v6287_v49  ;;  %4872 = vmatprep.mubr.f32.mxu1 %v6287_v49 }
 0x7bc   : > { %5532 = vmatmul.mubr.msk.f32.gmra.mxu0 %vm3850_vm6, %v9003_v14  ;;  %5564 = vmatmul.mubr.msk.f32.gmra.mxu1 %vm3850_vm6, %v9003_v14 }
 0x7bd   : > { %4621 = vmatprep.mubr.f32.mxu0 %v6287_v49  ;;  %4878 = vmatprep.mubr.f32.mxu1 %v6287_v49 }
 0x7c0   : > { %v4013_v4 = vpop.f32.mrf.mxu0  ;;  %v4270_v59 = vpop.f32.mrf.mxu1  ;;  %5533 = vmatmul.mubr.msk.f32.gmra.mxu0 %vm3850_vm6, %v9012_v35  ;;  %5565 = vmatmul.mubr.msk.f32.gmra.mxu1 %vm3850_vm6, %v9012_v35 }
 0x7c1   : > { %4975 = vst [vmem:[%s6536_s6] sm:$0xff] %v4013_v4  ;;  %4977 = vst [vmem:[%s6536_s6 + $0x10] sm:$0xff] %v4270_v59  ;;  %4627 = vmatprep.mubr.f32.mxu0 %v6287_v49  ;;  %4884 = vmatprep.mubr.f32.mxu1 %v6287_v49 }
 0x7c2   : > { %v4015_v45 = vpop.f32.mrf.mxu0  ;;  %v4272_v9 = vpop.f32.mrf.mxu1 }
 0x7c3   : > { %4976 = vst [vmem:[%s6536_s6 + $0x8] sm:$0xff] %v4015_v45  ;;  %4978 = vst [vmem:[%s6536_s6 + $0x18] sm:$0xff] %v4272_v9 }
 0x7c4   : > { %v4019_v19 = vpop.f32.mrf.mxu0  ;;  %v4276_v22 = vpop.f32.mrf.mxu1  ;;  %5534 = vmatmul.mubr.msk.f32.gmra.mxu0 %vm3850_vm6, %v9021_v2  ;;  %5566 = vmatmul.mubr.msk.f32.gmra.mxu1 %vm3850_vm6, %v9021_v2 }
 0x7c5   : > { %4979 = vst [vmem:[%s6536_s6 + $0x20] sm:$0xff] %v4019_v19  ;;  %4981 = vst [vmem:[%s6536_s6 + $0x30] sm:$0xff] %v4276_v22  ;;  %4633 = vmatprep.mubr.f32.mxu0 %v6287_v49  ;;  %4890 = vmatprep.mubr.f32.mxu1 %v6287_v49 }
 0x7c6   : > { %v4021_v46 = vpop.f32.mrf.mxu0  ;;  %v4278_v62 = vpop.f32.mrf.mxu1 }
 0x7c7   : > { %4980 = vst [vmem:[%s6536_s6 + $0x28] sm:$0xff] %v4021_v46  ;;  %4982 = vst [vmem:[%s6536_s6 + $0x38] sm:$0xff] %v4278_v62 }
 0x7c8   : > { %v4025_v32 = vpop.f32.mrf.mxu0  ;;  %v4282_v0 = vpop.f32.mrf.mxu1  ;;  %5535 = vmatmul.mubr.msk.f32.gmra.mxu0 %vm3850_vm6, %v9030_v20  ;;  %5567 = vmatmul.mubr.msk.f32.gmra.mxu1 %vm3850_vm6, %v9030_v20 }
 0x7c9   : > { %4983 = vst [vmem:[%s6536_s6 + $0x40] sm:$0xff] %v4025_v32  ;;  %4985 = vst [vmem:[%s6536_s6 + $0x50] sm:$0xff] %v4282_v0  ;;  %4639 = vmatprep.mubr.f32.mxu0 %v6287_v49  ;;  %4896 = vmatprep.mubr.f32.mxu1 %v6287_v49 }
 0x7ca   : > { %v4027_v39 = vpop.f32.mrf.mxu0  ;;  %v4284_v57 = vpop.f32.mrf.mxu1 }
 0x7cb   : > { %4984 = vst [vmem:[%s6536_s6 + $0x48] sm:$0xff] %v4027_v39  ;;  %4986 = vst [vmem:[%s6536_s6 + $0x58] sm:$0xff] %v4284_v57 }
 0x7cc   : > { %v4031_v27 = vpop.f32.mrf.mxu0  ;;  %v4288_v3 = vpop.f32.mrf.mxu1  ;;  %5536 = vmatmul.mubr.msk.f32.gmra.mxu0 %vm3850_vm6, %v9039_v51  ;;  %5568 = vmatmul.mubr.msk.f32.gmra.mxu1 %vm3850_vm6, %v9039_v51 }
 0x7cd   : > { %4987 = vst [vmem:[%s6536_s6 + $0x60] sm:$0xff] %v4031_v27  ;;  %4989 = vst [vmem:[%s6536_s6 + $0x70] sm:$0xff] %v4288_v3  ;;  %4645 = vmatprep.mubr.f32.mxu0 %v6287_v49  ;;  %4902 = vmatprep.mubr.f32.mxu1 %v6287_v49 }
 0x7ce   : > { %v4033_v11 = vpop.f32.mrf.mxu0  ;;  %v4290_v24 = vpop.f32.mrf.mxu1 }
 0x7cf   : > { %4988 = vst [vmem:[%s6536_s6 + $0x68] sm:$0xff] %v4033_v11  ;;  %4990 = vst [vmem:[%s6536_s6 + $0x78] sm:$0xff] %v4290_v24 }
 0x7d0   : > { %v4037_v34 = vpop.f32.mrf.mxu0  ;;  %v4294_v48 = vpop.f32.mrf.mxu1  ;;  %5537 = vmatmul.mubr.msk.f32.gmra.mxu0 %vm3850_vm6, %v9048_v63  ;;  %5569 = vmatmul.mubr.msk.f32.gmra.mxu1 %vm3850_vm6, %v9048_v63 }
 0x7d1   : > { %4991 = vst [vmem:[%s6536_s6 + $0x80] sm:$0xff] %v4037_v34  ;;  %4993 = vst [vmem:[%s6536_s6 + $0x90] sm:$0xff] %v4294_v48  ;;  %4651 = vmatprep.mubr.f32.mxu0 %v6287_v49  ;;  %4908 = vmatprep.mubr.f32.mxu1 %v6287_v49 }
 0x7d2   : > { %v4039_v12 = vpop.f32.mrf.mxu0  ;;  %v4296_v36 = vpop.f32.mrf.mxu1 }
 0x7d3   : > { %4992 = vst [vmem:[%s6536_s6 + $0x88] sm:$0xff] %v4039_v12  ;;  %4994 = vst [vmem:[%s6536_s6 + $0x98] sm:$0xff] %v4296_v36 }
 0x7d4   : > { %v4043_v33 = vpop.f32.mrf.mxu0  ;;  %v4300_v15 = vpop.f32.mrf.mxu1  ;;  %5538 = vmatmul.mubr.msk.f32.gmra.mxu0 %vm3850_vm6, %v9057_v58  ;;  %5570 = vmatmul.mubr.msk.f32.gmra.mxu1 %vm3850_vm6, %v9057_v58 }
 0x7d5   : > { %4995 = vst [vmem:[%s6536_s6 + $0xa0] sm:$0xff] %v4043_v33  ;;  %4997 = vst [vmem:[%s6536_s6 + $0xb0] sm:$0xff] %v4300_v15  ;;  %4657 = vmatprep.mubr.f32.mxu0 %v6287_v49  ;;  %4914 = vmatprep.mubr.f32.mxu1 %v6287_v49 }
 0x7d6   : > { %v4045_v7 = vpop.f32.mrf.mxu0  ;;  %v4302_v26 = vpop.f32.mrf.mxu1 }
 0x7d7   : > { %4996 = vst [vmem:[%s6536_s6 + $0xa8] sm:$0xff] %v4045_v7  ;;  %4998 = vst [vmem:[%s6536_s6 + $0xb8] sm:$0xff] %v4302_v26 }
 0x7d8   : > { %v4049_v16 = vpop.f32.mrf.mxu0  ;;  %v4306_v1 = vpop.f32.mrf.mxu1  ;;  %5539 = vmatmul.mubr.msk.f32.gmra.mxu0 %vm3850_vm6, %v9066_v13  ;;  %5571 = vmatmul.mubr.msk.f32.gmra.mxu1 %vm3850_vm6, %v9066_v13 }
 0x7d9   : > { %4999 = vst [vmem:[%s6536_s6 + $0xc0] sm:$0xff] %v4049_v16  ;;  %5001 = vst [vmem:[%s6536_s6 + $0xd0] sm:$0xff] %v4306_v1  ;;  %4663 = vmatprep.mubr.f32.mxu0 %v6287_v49  ;;  %4920 = vmatprep.mubr.f32.mxu1 %v6287_v49 }
 0x7da   : > { %v4051_v10 = vpop.f32.mrf.mxu0  ;;  %v4308_v8 = vpop.f32.mrf.mxu1 }
 0x7db   : > { %5000 = vst [vmem:[%s6536_s6 + $0xc8] sm:$0xff] %v4051_v10  ;;  %5002 = vst [vmem:[%s6536_s6 + $0xd8] sm:$0xff] %v4308_v8 }
 0x7dc   : > { %v4055_v55 = vpop.f32.mrf.mxu0  ;;  %v4312_v6 = vpop.f32.mrf.mxu1  ;;  %5540 = vmatmul.mubr.msk.f32.gmra.mxu0 %vm3850_vm6, %v9075_v54  ;;  %5572 = vmatmul.mubr.msk.f32.gmra.mxu1 %vm3850_vm6, %v9075_v54 }
 0x7dd   : > { %5003 = vst [vmem:[%s6536_s6 + $0xe0] sm:$0xff] %v4055_v55  ;;  %5005 = vst [vmem:[%s6536_s6 + $0xf0] sm:$0xff] %v4312_v6  ;;  %4669 = vmatprep.mubr.f32.mxu0 %v6287_v49  ;;  %4926 = vmatprep.mubr.f32.mxu1 %v6287_v49 }
 0x7de   : > { %v4057_v18 = vpop.f32.mrf.mxu0  ;;  %v4314_v60 = vpop.f32.mrf.mxu1 }
 0x7df   : > { %5004 = vst [vmem:[%s6536_s6 + $0xe8] sm:$0xff] %v4057_v18  ;;  %5006 = vst [vmem:[%s6536_s6 + $0xf8] sm:$0xff] %v4314_v60 }
 0x7e0   : > { %v4061_v29 = vpop.f32.mrf.mxu0  ;;  %v4318_v43 = vpop.f32.mrf.mxu1  ;;  %5541 = vmatmul.mubr.msk.f32.gmra.mxu0 %vm3850_vm6, %v9084_v42  ;;  %5573 = vmatmul.mubr.msk.f32.gmra.mxu1 %vm3850_vm6, %v9084_v42 }
 0x7e1   : > { %5007 = vst [vmem:[%s6536_s6 + $0x100] sm:$0xff] %v4061_v29  ;;  %5009 = vst [vmem:[%s6536_s6 + $0x110] sm:$0xff] %v4318_v43  ;;  %4675 = vmatprep.mubr.f32.mxu0 %v6287_v49  ;;  %4932 = vmatprep.mubr.f32.mxu1 %v6287_v49 }
 0x7e2   : > { %v4063_v50 = vpop.f32.mrf.mxu0  ;;  %v4320_v53 = vpop.f32.mrf.mxu1 }
 0x7e3   : > { %5008 = vst [vmem:[%s6536_s6 + $0x108] sm:$0xff] %v4063_v50  ;;  %5010 = vst [vmem:[%s6536_s6 + $0x118] sm:$0xff] %v4320_v53 }
 0x7e4   : > { %v4067_v30 = vpop.f32.mrf.mxu0  ;;  %v4324_v28 = vpop.f32.mrf.mxu1  ;;  %5542 = vmatmul.mubr.msk.f32.gmra.mxu0 %vm3850_vm6, %v9093_v17  ;;  %5574 = vmatmul.mubr.msk.f32.gmra.mxu1 %vm3850_vm6, %v9093_v17 }
 0x7e5   : > { %5011 = vst [vmem:[%s6536_s6 + $0x120] sm:$0xff] %v4067_v30  ;;  %5013 = vst [vmem:[%s6536_s6 + $0x130] sm:$0xff] %v4324_v28  ;;  %4681 = vmatprep.mubr.f32.mxu0 %v6287_v49  ;;  %4938 = vmatprep.mubr.f32.mxu1 %v6287_v49 }
 0x7e6   : > { %v4069_v41 = vpop.f32.mrf.mxu0  ;;  %v4326_v47 = vpop.f32.mrf.mxu1 }
 0x7e7   : > { %5012 = vst [vmem:[%s6536_s6 + $0x128] sm:$0xff] %v4069_v41  ;;  %5014 = vst [vmem:[%s6536_s6 + $0x138] sm:$0xff] %v4326_v47 }
 0x7e8   : > { %v4073_v40 = vpop.f32.mrf.mxu0  ;;  %v4330_v52 = vpop.f32.mrf.mxu1  ;;  %5543 = vmatmul.mubr.msk.f32.gmra.mxu0 %vm3850_vm6, %v9102_v56  ;;  %5575 = vmatmul.mubr.msk.f32.gmra.mxu1 %vm3850_vm6, %v9102_v56 }
 0x7e9   : > { %5015 = vst [vmem:[%s6536_s6 + $0x140] sm:$0xff] %v4073_v40  ;;  %5017 = vst [vmem:[%s6536_s6 + $0x150] sm:$0xff] %v4330_v52  ;;  %4687 = vmatprep.mubr.f32.mxu0 %v6287_v49  ;;  %4944 = vmatprep.mubr.f32.mxu1 %v6287_v49 }
 0x7ea   : > { %v4075_v25 = vpop.f32.mrf.mxu0  ;;  %v4332_v23 = vpop.f32.mrf.mxu1 }
 0x7eb   : > { %5016 = vst [vmem:[%s6536_s6 + $0x148] sm:$0xff] %v4075_v25  ;;  %5018 = vst [vmem:[%s6536_s6 + $0x158] sm:$0xff] %v4332_v23 }
 0x7ec   : > { %v4079_v37 = vpop.f32.mrf.mxu0  ;;  %v4336_v5 = vpop.f32.mrf.mxu1  ;;  %5544 = vmatmul.mubr.msk.f32.gmra.mxu0 %vm3850_vm6, %v9111_v31  ;;  %5576 = vmatmul.mubr.msk.f32.gmra.mxu1 %vm3850_vm6, %v9111_v31 }
 0x7ed   : > { %5019 = vst [vmem:[%s6536_s6 + $0x160] sm:$0xff] %v4079_v37  ;;  %5021 = vst [vmem:[%s6536_s6 + $0x170] sm:$0xff] %v4336_v5  ;;  %4693 = vmatprep.mubr.f32.mxu0 %v6287_v49  ;;  %4950 = vmatprep.mubr.f32.mxu1 %v6287_v49 }
 0x7ee   : > { %v4081_v14 = vpop.f32.mrf.mxu0  ;;  %v4338_v35 = vpop.f32.mrf.mxu1 }
 0x7ef   : > { %5020 = vst [vmem:[%s6536_s6 + $0x168] sm:$0xff] %v4081_v14  ;;  %5022 = vst [vmem:[%s6536_s6 + $0x178] sm:$0xff] %v4338_v35 }
 0x7f0   : > { %v4085_v2 = vpop.f32.mrf.mxu0  ;;  %v4342_v20 = vpop.f32.mrf.mxu1  ;;  %5545 = vmatmul.mubr.msk.f32.gmra.mxu0 %vm3850_vm6, %v9120_v61  ;;  %5577 = vmatmul.mubr.msk.f32.gmra.mxu1 %vm3850_vm6, %v9120_v61 }
 0x7f1   : > { %5023 = vst [vmem:[%s6536_s6 + $0x180] sm:$0xff] %v4085_v2  ;;  %5025 = vst [vmem:[%s6536_s6 + $0x190] sm:$0xff] %v4342_v20  ;;  %4699 = vmatprep.mubr.f32.mxu0 %v6287_v49  ;;  %4956 = vmatprep.mubr.f32.mxu1 %v6287_v49 }
 0x7f2   : > { %v4087_v51 = vpop.f32.mrf.mxu0  ;;  %v4344_v63 = vpop.f32.mrf.mxu1 }
 0x7f3   : > { %5024 = vst [vmem:[%s6536_s6 + $0x188] sm:$0xff] %v4087_v51  ;;  %5026 = vst [vmem:[%s6536_s6 + $0x198] sm:$0xff] %v4344_v63 }
 0x7f4   : > { %v4091_v58 = vpop.f32.mrf.mxu0  ;;  %v4348_v13 = vpop.f32.mrf.mxu1  ;;  %5546 = vmatmul.mubr.msk.f32.gmra.mxu0 %vm3850_vm6, %v9129_v38  ;;  %5578 = vmatmul.mubr.msk.f32.gmra.mxu1 %vm3850_vm6, %v9129_v38 }
 0x7f5   : > { %5027 = vst [vmem:[%s6536_s6 + $0x1a0] sm:$0xff] %v4091_v58  ;;  %5029 = vst [vmem:[%s6536_s6 + $0x1b0] sm:$0xff] %v4348_v13  ;;  %4705 = vmatprep.mubr.f32.mxu0 %v6287_v49  ;;  %4962 = vmatprep.mubr.f32.mxu1 %v6287_v49 }
 0x7f6   : > { %v4093_v54 = vpop.f32.mrf.mxu0  ;;  %v4350_v42 = vpop.f32.mrf.mxu1 }
 0x7f7   : > { %5028 = vst [vmem:[%s6536_s6 + $0x1a8] sm:$0xff] %v4093_v54  ;;  %5030 = vst [vmem:[%s6536_s6 + $0x1b8] sm:$0xff] %v4350_v42 }
 0x7f8   : > { %v4097_v17 = vpop.f32.mrf.mxu0  ;;  %v4354_v56 = vpop.f32.mrf.mxu1  ;;  %5547 = vmatmul.mubr.msk.f32.gmra.mxu0 %vm3850_vm6, %v9138_v44  ;;  %5579 = vmatmul.mubr.msk.f32.gmra.mxu1 %vm3850_vm6, %v9138_v44 }
 0x7f9   : > { %5031 = vst [vmem:[%s6536_s6 + $0x1c0] sm:$0xff] %v4097_v17  ;;  %5033 = vst [vmem:[%s6536_s6 + $0x1d0] sm:$0xff] %v4354_v56  ;;  %4711 = vmatprep.mubr.f32.mxu0 %v6287_v49  ;;  %4968 = vmatprep.mubr.f32.mxu1 %v6287_v49 }
 0x7fa   : > { %v4099_v31 = vpop.f32.mrf.mxu0  ;;  %v4356_v61 = vpop.f32.mrf.mxu1 }
 0x7fb   : > { %5032 = vst [vmem:[%s6536_s6 + $0x1c8] sm:$0xff] %v4099_v31  ;;  %5034 = vst [vmem:[%s6536_s6 + $0x1d8] sm:$0xff] %v4356_v61 }
 0x7fc   : > { %v4103_v38 = vpop.f32.mrf.mxu0  ;;  %v4360_v4 = vpop.f32.mrf.mxu1  ;;  %5548 = vmatmul.mubr.msk.f32.gmra.mxu0 %vm3850_vm6, %v9147_v21  ;;  %5580 = vmatmul.mubr.msk.f32.gmra.mxu1 %vm3850_vm6, %v9147_v21 }
 0x7fd   : > { %5035 = vst [vmem:[%s6536_s6 + $0x1e0] sm:$0xff] %v4103_v38  ;;  %5037 = vst [vmem:[%s6536_s6 + $0x1f0] sm:$0xff] %v4360_v4 }
 0x7fe   : > { %v4105_v49 = vpop.f32.mrf.mxu0  ;;  %v4362_v44 = vpop.f32.mrf.mxu1 }
 0x7ff   : > { %5036 = vst [vmem:[%s6536_s6 + $0x1e8] sm:$0xff] %v4105_v49  ;;  %5038 = vst [vmem:[%s6536_s6 + $0x1f8] sm:$0xff] %v4362_v44 }
 0x800   : > { %v4109_v59 = vpop.f32.mrf.mxu0  ;;  %v4366_v45 = vpop.f32.mrf.mxu1 }
 0x801   : > { %5039 = vst [vmem:[%s6536_s6 + $0x200] sm:$0xff] %v4109_v59  ;;  %5041 = vst [vmem:[%s6536_s6 + $0x210] sm:$0xff] %v4366_v45 }
 0x802   : > { %v4111_v9 = vpop.f32.mrf.mxu0  ;;  %v4368_v19 = vpop.f32.mrf.mxu1 }
 0x803   : > { %5040 = vst [vmem:[%s6536_s6 + $0x208] sm:$0xff] %v4111_v9  ;;  %5042 = vst [vmem:[%s6536_s6 + $0x218] sm:$0xff] %v4368_v19 }
 0x804   : > { %v4115_v21 = vpop.f32.mrf.mxu0  ;;  %v4372_v22 = vpop.f32.mrf.mxu1 }
 0x805   : > { %5043 = vst [vmem:[%s6536_s6 + $0x220] sm:$0xff] %v4115_v21  ;;  %5045 = vst [vmem:[%s6536_s6 + $0x230] sm:$0xff] %v4372_v22 }
 0x806   : > { %v4117_v46 = vpop.f32.mrf.mxu0  ;;  %v4374_v62 = vpop.f32.mrf.mxu1 }
 0x807   : > { %5044 = vst [vmem:[%s6536_s6 + $0x228] sm:$0xff] %v4117_v46  ;;  %5046 = vst [vmem:[%s6536_s6 + $0x238] sm:$0xff] %v4374_v62 }
 0x808   : > { %v4121_v32 = vpop.f32.mrf.mxu0  ;;  %v4378_v0 = vpop.f32.mrf.mxu1 }
 0x809   : > { %5047 = vst [vmem:[%s6536_s6 + $0x240] sm:$0xff] %v4121_v32  ;;  %5049 = vst [vmem:[%s6536_s6 + $0x250] sm:$0xff] %v4378_v0 }
 0x80a   : > { %v4123_v39 = vpop.f32.mrf.mxu0  ;;  %v4380_v57 = vpop.f32.mrf.mxu1 }
 0x80b   : > { %5048 = vst [vmem:[%s6536_s6 + $0x248] sm:$0xff] %v4123_v39  ;;  %5050 = vst [vmem:[%s6536_s6 + $0x258] sm:$0xff] %v4380_v57 }
 0x80c   : > { %v4127_v27 = vpop.f32.mrf.mxu0  ;;  %v4384_v3 = vpop.f32.mrf.mxu1 }
 0x80d   : > { %5051 = vst [vmem:[%s6536_s6 + $0x260] sm:$0xff] %v4127_v27  ;;  %5053 = vst [vmem:[%s6536_s6 + $0x270] sm:$0xff] %v4384_v3 }
 0x80e   : > { %v4129_v11 = vpop.f32.mrf.mxu0  ;;  %v4386_v24 = vpop.f32.mrf.mxu1 }
 0x80f   : > { %5052 = vst [vmem:[%s6536_s6 + $0x268] sm:$0xff] %v4129_v11  ;;  %5054 = vst [vmem:[%s6536_s6 + $0x278] sm:$0xff] %v4386_v24 }
 0x810   : > { %v4133_v34 = vpop.f32.mrf.mxu0  ;;  %v4390_v48 = vpop.f32.mrf.mxu1 }
 0x811   : > { %5055 = vst [vmem:[%s6536_s6 + $0x280] sm:$0xff] %v4133_v34  ;;  %5057 = vst [vmem:[%s6536_s6 + $0x290] sm:$0xff] %v4390_v48 }
 0x812   : > { %v4135_v12 = vpop.f32.mrf.mxu0  ;;  %v4392_v36 = vpop.f32.mrf.mxu1 }
 0x813   : > { %5056 = vst [vmem:[%s6536_s6 + $0x288] sm:$0xff] %v4135_v12  ;;  %5058 = vst [vmem:[%s6536_s6 + $0x298] sm:$0xff] %v4392_v36 }
 0x814   : > { %v4139_v33 = vpop.f32.mrf.mxu0  ;;  %v4396_v15 = vpop.f32.mrf.mxu1 }
 0x815   : > { %5059 = vst [vmem:[%s6536_s6 + $0x2a0] sm:$0xff] %v4139_v33  ;;  %5061 = vst [vmem:[%s6536_s6 + $0x2b0] sm:$0xff] %v4396_v15 }
 0x816   : > { %v4141_v7 = vpop.f32.mrf.mxu0  ;;  %v4398_v26 = vpop.f32.mrf.mxu1 }
 0x817   : > { %5060 = vst [vmem:[%s6536_s6 + $0x2a8] sm:$0xff] %v4141_v7  ;;  %5062 = vst [vmem:[%s6536_s6 + $0x2b8] sm:$0xff] %v4398_v26 }
 0x818   : > { %v4145_v16 = vpop.f32.mrf.mxu0  ;;  %v4402_v1 = vpop.f32.mrf.mxu1 }
 0x819   : > { %5063 = vst [vmem:[%s6536_s6 + $0x2c0] sm:$0xff] %v4145_v16  ;;  %5065 = vst [vmem:[%s6536_s6 + $0x2d0] sm:$0xff] %v4402_v1 }
 0x81a   : > { %v4147_v10 = vpop.f32.mrf.mxu0  ;;  %v4404_v8 = vpop.f32.mrf.mxu1 }
 0x81b   : > { %5064 = vst [vmem:[%s6536_s6 + $0x2c8] sm:$0xff] %v4147_v10  ;;  %5066 = vst [vmem:[%s6536_s6 + $0x2d8] sm:$0xff] %v4404_v8 }
 0x81c   : > { %v4151_v55 = vpop.f32.mrf.mxu0  ;;  %v4408_v6 = vpop.f32.mrf.mxu1 }
 0x81d   : > { %5067 = vst [vmem:[%s6536_s6 + $0x2e0] sm:$0xff] %v4151_v55  ;;  %5069 = vst [vmem:[%s6536_s6 + $0x2f0] sm:$0xff] %v4408_v6 }
 0x81e   : > { %v4153_v18 = vpop.f32.mrf.mxu0  ;;  %v4410_v60 = vpop.f32.mrf.mxu1 }
 0x81f   : > { %5068 = vst [vmem:[%s6536_s6 + $0x2e8] sm:$0xff] %v4153_v18  ;;  %5070 = vst [vmem:[%s6536_s6 + $0x2f8] sm:$0xff] %v4410_v60 }
 0x820   : > { %v4157_v29 = vpop.f32.mrf.mxu0  ;;  %v4414_v43 = vpop.f32.mrf.mxu1 }
 0x821   : > { %5071 = vst [vmem:[%s6536_s6 + $0x300] sm:$0xff] %v4157_v29  ;;  %5073 = vst [vmem:[%s6536_s6 + $0x310] sm:$0xff] %v4414_v43 }
 0x822   : > { %v4159_v50 = vpop.f32.mrf.mxu0  ;;  %v4416_v53 = vpop.f32.mrf.mxu1 }
 0x823   : > { %5072 = vst [vmem:[%s6536_s6 + $0x308] sm:$0xff] %v4159_v50  ;;  %5074 = vst [vmem:[%s6536_s6 + $0x318] sm:$0xff] %v4416_v53 }
 0x824   : > { %v4163_v30 = vpop.f32.mrf.mxu0  ;;  %v4420_v28 = vpop.f32.mrf.mxu1 }
 0x825   : > { %5075 = vst [vmem:[%s6536_s6 + $0x320] sm:$0xff] %v4163_v30  ;;  %5077 = vst [vmem:[%s6536_s6 + $0x330] sm:$0xff] %v4420_v28 }
 0x826   : > { %v4165_v41 = vpop.f32.mrf.mxu0  ;;  %v4422_v47 = vpop.f32.mrf.mxu1 }
 0x827   : > { %5076 = vst [vmem:[%s6536_s6 + $0x328] sm:$0xff] %v4165_v41  ;;  %5078 = vst [vmem:[%s6536_s6 + $0x338] sm:$0xff] %v4422_v47 }
 0x828   : > { %v4169_v40 = vpop.f32.mrf.mxu0  ;;  %v4426_v52 = vpop.f32.mrf.mxu1 }
 0x829   : > { %5079 = vst [vmem:[%s6536_s6 + $0x340] sm:$0xff] %v4169_v40  ;;  %5081 = vst [vmem:[%s6536_s6 + $0x350] sm:$0xff] %v4426_v52 }
 0x82a   : > { %v4171_v25 = vpop.f32.mrf.mxu0  ;;  %v4428_v23 = vpop.f32.mrf.mxu1 }
 0x82b   : > { %5080 = vst [vmem:[%s6536_s6 + $0x348] sm:$0xff] %v4171_v25  ;;  %5082 = vst [vmem:[%s6536_s6 + $0x358] sm:$0xff] %v4428_v23 }
 0x82c   : > { %v4175_v37 = vpop.f32.mrf.mxu0  ;;  %v4432_v5 = vpop.f32.mrf.mxu1 }
 0x82d   : > { %5083 = vst [vmem:[%s6536_s6 + $0x360] sm:$0xff] %v4175_v37  ;;  %5085 = vst [vmem:[%s6536_s6 + $0x370] sm:$0xff] %v4432_v5 }
 0x82e   : > { %v4177_v14 = vpop.f32.mrf.mxu0  ;;  %v4434_v35 = vpop.f32.mrf.mxu1 }
 0x82f   : > { %5084 = vst [vmem:[%s6536_s6 + $0x368] sm:$0xff] %v4177_v14  ;;  %5086 = vst [vmem:[%s6536_s6 + $0x378] sm:$0xff] %v4434_v35 }
 0x830   : > { %v4181_v2 = vpop.f32.mrf.mxu0  ;;  %v4438_v20 = vpop.f32.mrf.mxu1 }
 0x831   : > { %5087 = vst [vmem:[%s6536_s6 + $0x380] sm:$0xff] %v4181_v2  ;;  %5089 = vst [vmem:[%s6536_s6 + $0x390] sm:$0xff] %v4438_v20 }
 0x832   : > { %v4183_v51 = vpop.f32.mrf.mxu0  ;;  %v4440_v63 = vpop.f32.mrf.mxu1 }
 0x833   : > { %5088 = vst [vmem:[%s6536_s6 + $0x388] sm:$0xff] %v4183_v51  ;;  %5090 = vst [vmem:[%s6536_s6 + $0x398] sm:$0xff] %v4440_v63 }
 0x834   : > { %v4187_v58 = vpop.f32.mrf.mxu0  ;;  %v4444_v13 = vpop.f32.mrf.mxu1 }
 0x835   : > { %5091 = vst [vmem:[%s6536_s6 + $0x3a0] sm:$0xff] %v4187_v58  ;;  %5093 = vst [vmem:[%s6536_s6 + $0x3b0] sm:$0xff] %v4444_v13 }
 0x836   : > { %v4189_v54 = vpop.f32.mrf.mxu0  ;;  %v4446_v42 = vpop.f32.mrf.mxu1 }
 0x837   : > { %5092 = vst [vmem:[%s6536_s6 + $0x3a8] sm:$0xff] %v4189_v54  ;;  %5094 = vst [vmem:[%s6536_s6 + $0x3b8] sm:$0xff] %v4446_v42 }
 0x838   : > { %v4193_v17 = vpop.f32.mrf.mxu0  ;;  %v4450_v56 = vpop.f32.mrf.mxu1 }
 0x839   : > { %5095 = vst [vmem:[%s6536_s6 + $0x3c0] sm:$0xff] %v4193_v17  ;;  %5097 = vst [vmem:[%s6536_s6 + $0x3d0] sm:$0xff] %v4450_v56 }
 0x83a   : > { %v4195_v31 = vpop.f32.mrf.mxu0  ;;  %v4452_v61 = vpop.f32.mrf.mxu1 }
 0x83b   : > { %5096 = vst [vmem:[%s6536_s6 + $0x3c8] sm:$0xff] %v4195_v31  ;;  %5098 = vst [vmem:[%s6536_s6 + $0x3d8] sm:$0xff] %v4452_v61 }
 0x83c   : > { %v4199_v38 = vpop.f32.mrf.mxu0  ;;  %v4456_v4 = vpop.f32.mrf.mxu1 }
 0x83d   : > { %5099 = vst [vmem:[%s6536_s6 + $0x3e0] sm:$0xff] %v4199_v38  ;;  %5101 = vst [vmem:[%s6536_s6 + $0x3f0] sm:$0xff] %v4456_v4 }
 0x83e   : > { %v4201_v49 = vpop.f32.mrf.mxu0  ;;  %v4458_v44 = vpop.f32.mrf.mxu1 }
 0x83f   : > { %5100 = vst [vmem:[%s6536_s6 + $0x3e8] sm:$0xff] %v4201_v49  ;;  %5102 = vst [vmem:[%s6536_s6 + $0x3f8] sm:$0xff] %v4458_v44 }
 0x840   : > { %v4527_v59 = vpop.f32.mrf.mxu0  ;;  %v4784_v45 = vpop.f32.mrf.mxu1 }
 0x841   : > { %5581 = vst [vmem:[%s6536_s6 + $0x400] sm:$0xff] %v4527_v59  ;;  %5583 = vst [vmem:[%s6536_s6 + $0x410] sm:$0xff] %v4784_v45 }
 0x842   : > { %v4529_v9 = vpop.f32.mrf.mxu0  ;;  %v4786_v19 = vpop.f32.mrf.mxu1 }
 0x843   : > { %5582 = vst [vmem:[%s6536_s6 + $0x408] sm:$0xff] %v4529_v9  ;;  %5584 = vst [vmem:[%s6536_s6 + $0x418] sm:$0xff] %v4786_v19 }
 0x844   : > { %v4533_v21 = vpop.f32.mrf.mxu0  ;;  %v4790_v22 = vpop.f32.mrf.mxu1 }
 0x845   : > { %5585 = vst [vmem:[%s6536_s6 + $0x420] sm:$0xff] %v4533_v21  ;;  %5587 = vst [vmem:[%s6536_s6 + $0x430] sm:$0xff] %v4790_v22 }
 0x846   : > { %v4535_v46 = vpop.f32.mrf.mxu0  ;;  %v4792_v62 = vpop.f32.mrf.mxu1 }
 0x847   : > { %5586 = vst [vmem:[%s6536_s6 + $0x428] sm:$0xff] %v4535_v46  ;;  %5588 = vst [vmem:[%s6536_s6 + $0x438] sm:$0xff] %v4792_v62 }
 0x848   : > { %v4539_v32 = vpop.f32.mrf.mxu0  ;;  %v4796_v0 = vpop.f32.mrf.mxu1 }
 0x849   : > { %5589 = vst [vmem:[%s6536_s6 + $0x440] sm:$0xff] %v4539_v32  ;;  %5591 = vst [vmem:[%s6536_s6 + $0x450] sm:$0xff] %v4796_v0 }
 0x84a   : > { %v4541_v39 = vpop.f32.mrf.mxu0  ;;  %v4798_v57 = vpop.f32.mrf.mxu1 }
 0x84b   : > { %5590 = vst [vmem:[%s6536_s6 + $0x448] sm:$0xff] %v4541_v39  ;;  %5592 = vst [vmem:[%s6536_s6 + $0x458] sm:$0xff] %v4798_v57 }
 0x84c   : > { %v4545_v27 = vpop.f32.mrf.mxu0  ;;  %v4802_v3 = vpop.f32.mrf.mxu1 }
 0x84d   : > { %5593 = vst [vmem:[%s6536_s6 + $0x460] sm:$0xff] %v4545_v27  ;;  %5595 = vst [vmem:[%s6536_s6 + $0x470] sm:$0xff] %v4802_v3 }
 0x84e   : > { %v4547_v11 = vpop.f32.mrf.mxu0  ;;  %v4804_v24 = vpop.f32.mrf.mxu1 }
 0x84f   : > { %5594 = vst [vmem:[%s6536_s6 + $0x468] sm:$0xff] %v4547_v11  ;;  %5596 = vst [vmem:[%s6536_s6 + $0x478] sm:$0xff] %v4804_v24 }
 0x850   : > { %v4551_v34 = vpop.f32.mrf.mxu0  ;;  %v4808_v48 = vpop.f32.mrf.mxu1 }
 0x851   : > { %5597 = vst [vmem:[%s6536_s6 + $0x480] sm:$0xff] %v4551_v34  ;;  %5599 = vst [vmem:[%s6536_s6 + $0x490] sm:$0xff] %v4808_v48 }
 0x852   : > { %v4553_v12 = vpop.f32.mrf.mxu0  ;;  %v4810_v36 = vpop.f32.mrf.mxu1 }
 0x853   : > { %5598 = vst [vmem:[%s6536_s6 + $0x488] sm:$0xff] %v4553_v12  ;;  %5600 = vst [vmem:[%s6536_s6 + $0x498] sm:$0xff] %v4810_v36 }
 0x854   : > { %v4557_v33 = vpop.f32.mrf.mxu0  ;;  %v4814_v15 = vpop.f32.mrf.mxu1 }
 0x855   : > { %5601 = vst [vmem:[%s6536_s6 + $0x4a0] sm:$0xff] %v4557_v33  ;;  %5603 = vst [vmem:[%s6536_s6 + $0x4b0] sm:$0xff] %v4814_v15 }
 0x856   : > { %v4559_v7 = vpop.f32.mrf.mxu0  ;;  %v4816_v26 = vpop.f32.mrf.mxu1 }
 0x857   : > { %5602 = vst [vmem:[%s6536_s6 + $0x4a8] sm:$0xff] %v4559_v7  ;;  %5604 = vst [vmem:[%s6536_s6 + $0x4b8] sm:$0xff] %v4816_v26 }
 0x858   : > { %v4563_v16 = vpop.f32.mrf.mxu0  ;;  %v4820_v1 = vpop.f32.mrf.mxu1 }
 0x859   : > { %5605 = vst [vmem:[%s6536_s6 + $0x4c0] sm:$0xff] %v4563_v16  ;;  %5607 = vst [vmem:[%s6536_s6 + $0x4d0] sm:$0xff] %v4820_v1 }
 0x85a   : > { %v4565_v10 = vpop.f32.mrf.mxu0  ;;  %v4822_v8 = vpop.f32.mrf.mxu1 }
 0x85b   : > { %5606 = vst [vmem:[%s6536_s6 + $0x4c8] sm:$0xff] %v4565_v10  ;;  %5608 = vst [vmem:[%s6536_s6 + $0x4d8] sm:$0xff] %v4822_v8 }
 0x85c   : > { %v4569_v55 = vpop.f32.mrf.mxu0  ;;  %v4826_v6 = vpop.f32.mrf.mxu1 }
 0x85d   : > { %5609 = vst [vmem:[%s6536_s6 + $0x4e0] sm:$0xff] %v4569_v55  ;;  %5611 = vst [vmem:[%s6536_s6 + $0x4f0] sm:$0xff] %v4826_v6 }
 0x85e   : > { %v4571_v18 = vpop.f32.mrf.mxu0  ;;  %v4828_v60 = vpop.f32.mrf.mxu1 }
 0x85f   : > { %5610 = vst [vmem:[%s6536_s6 + $0x4e8] sm:$0xff] %v4571_v18  ;;  %5612 = vst [vmem:[%s6536_s6 + $0x4f8] sm:$0xff] %v4828_v60 }
 0x860   : > { %v4575_v29 = vpop.f32.mrf.mxu0  ;;  %v4832_v43 = vpop.f32.mrf.mxu1 }
 0x861   : > { %5613 = vst [vmem:[%s6536_s6 + $0x500] sm:$0xff] %v4575_v29  ;;  %5615 = vst [vmem:[%s6536_s6 + $0x510] sm:$0xff] %v4832_v43 }
 0x862   : > { %v4577_v50 = vpop.f32.mrf.mxu0  ;;  %v4834_v53 = vpop.f32.mrf.mxu1 }
 0x863   : > { %5614 = vst [vmem:[%s6536_s6 + $0x508] sm:$0xff] %v4577_v50  ;;  %5616 = vst [vmem:[%s6536_s6 + $0x518] sm:$0xff] %v4834_v53 }
 0x864   : > { %v4581_v30 = vpop.f32.mrf.mxu0  ;;  %v4838_v28 = vpop.f32.mrf.mxu1 }
 0x865   : > { %5617 = vst [vmem:[%s6536_s6 + $0x520] sm:$0xff] %v4581_v30  ;;  %5619 = vst [vmem:[%s6536_s6 + $0x530] sm:$0xff] %v4838_v28 }
 0x866   : > { %v4583_v41 = vpop.f32.mrf.mxu0  ;;  %v4840_v47 = vpop.f32.mrf.mxu1 }
 0x867   : > { %5618 = vst [vmem:[%s6536_s6 + $0x528] sm:$0xff] %v4583_v41  ;;  %5620 = vst [vmem:[%s6536_s6 + $0x538] sm:$0xff] %v4840_v47 }
 0x868   : > { %v4587_v40 = vpop.f32.mrf.mxu0  ;;  %v4844_v52 = vpop.f32.mrf.mxu1 }
 0x869   : > { %5621 = vst [vmem:[%s6536_s6 + $0x540] sm:$0xff] %v4587_v40  ;;  %5623 = vst [vmem:[%s6536_s6 + $0x550] sm:$0xff] %v4844_v52 }
 0x86a   : > { %v4589_v25 = vpop.f32.mrf.mxu0  ;;  %v4846_v23 = vpop.f32.mrf.mxu1 }
 0x86b   : > { %5622 = vst [vmem:[%s6536_s6 + $0x548] sm:$0xff] %v4589_v25  ;;  %5624 = vst [vmem:[%s6536_s6 + $0x558] sm:$0xff] %v4846_v23 }
 0x86c   : > { %v4593_v37 = vpop.f32.mrf.mxu0  ;;  %v4850_v5 = vpop.f32.mrf.mxu1 }
 0x86d   : > { %5625 = vst [vmem:[%s6536_s6 + $0x560] sm:$0xff] %v4593_v37  ;;  %5627 = vst [vmem:[%s6536_s6 + $0x570] sm:$0xff] %v4850_v5 }
 0x86e   : > { %v4595_v14 = vpop.f32.mrf.mxu0  ;;  %v4852_v35 = vpop.f32.mrf.mxu1 }
 0x86f   : > { %5626 = vst [vmem:[%s6536_s6 + $0x568] sm:$0xff] %v4595_v14  ;;  %5628 = vst [vmem:[%s6536_s6 + $0x578] sm:$0xff] %v4852_v35 }
 0x870   : > { %v4599_v2 = vpop.f32.mrf.mxu0  ;;  %v4856_v20 = vpop.f32.mrf.mxu1 }
 0x871   : > { %5629 = vst [vmem:[%s6536_s6 + $0x580] sm:$0xff] %v4599_v2  ;;  %5631 = vst [vmem:[%s6536_s6 + $0x590] sm:$0xff] %v4856_v20 }
 0x872   : > { %v4601_v51 = vpop.f32.mrf.mxu0  ;;  %v4858_v63 = vpop.f32.mrf.mxu1 }
 0x873   : > { %5630 = vst [vmem:[%s6536_s6 + $0x588] sm:$0xff] %v4601_v51  ;;  %5632 = vst [vmem:[%s6536_s6 + $0x598] sm:$0xff] %v4858_v63 }
 0x874   : > { %v4605_v58 = vpop.f32.mrf.mxu0  ;;  %v4862_v13 = vpop.f32.mrf.mxu1 }
 0x875   : > { %5633 = vst [vmem:[%s6536_s6 + $0x5a0] sm:$0xff] %v4605_v58  ;;  %5635 = vst [vmem:[%s6536_s6 + $0x5b0] sm:$0xff] %v4862_v13 }
 0x876   : > { %v4607_v54 = vpop.f32.mrf.mxu0  ;;  %v4864_v42 = vpop.f32.mrf.mxu1 }
 0x877   : > { %5634 = vst [vmem:[%s6536_s6 + $0x5a8] sm:$0xff] %v4607_v54  ;;  %5636 = vst [vmem:[%s6536_s6 + $0x5b8] sm:$0xff] %v4864_v42 }
 0x878   : > { %v4611_v17 = vpop.f32.mrf.mxu0  ;;  %v4868_v56 = vpop.f32.mrf.mxu1 }
 0x879   : > { %5637 = vst [vmem:[%s6536_s6 + $0x5c0] sm:$0xff] %v4611_v17  ;;  %5639 = vst [vmem:[%s6536_s6 + $0x5d0] sm:$0xff] %v4868_v56 }
 0x87a   : > { %v4613_v31 = vpop.f32.mrf.mxu0  ;;  %v4870_v61 = vpop.f32.mrf.mxu1 }
 0x87b   : > { %5638 = vst [vmem:[%s6536_s6 + $0x5c8] sm:$0xff] %v4613_v31  ;;  %5640 = vst [vmem:[%s6536_s6 + $0x5d8] sm:$0xff] %v4870_v61 }
 0x87c   : > { %v4617_v38 = vpop.f32.mrf.mxu0  ;;  %v4874_v4 = vpop.f32.mrf.mxu1 }
 0x87d   : > { %5641 = vst [vmem:[%s6536_s6 + $0x5e0] sm:$0xff] %v4617_v38  ;;  %5643 = vst [vmem:[%s6536_s6 + $0x5f0] sm:$0xff] %v4874_v4 }
 0x87e   : > { %v4619_v49 = vpop.f32.mrf.mxu0  ;;  %v4876_v44 = vpop.f32.mrf.mxu1 }
 0x87f   : > { %5642 = vst [vmem:[%s6536_s6 + $0x5e8] sm:$0xff] %v4619_v49  ;;  %5644 = vst [vmem:[%s6536_s6 + $0x5f8] sm:$0xff] %v4876_v44 }
 0x880   : > { %v4623_v59 = vpop.f32.mrf.mxu0  ;;  %v4880_v45 = vpop.f32.mrf.mxu1 }
 0x881   : > { %5645 = vst [vmem:[%s6536_s6 + $0x600] sm:$0xff] %v4623_v59  ;;  %5647 = vst [vmem:[%s6536_s6 + $0x610] sm:$0xff] %v4880_v45 }
 0x882   : > { %v4625_v9 = vpop.f32.mrf.mxu0  ;;  %v4882_v19 = vpop.f32.mrf.mxu1 }
 0x883   : > { %5646 = vst [vmem:[%s6536_s6 + $0x608] sm:$0xff] %v4625_v9  ;;  %5648 = vst [vmem:[%s6536_s6 + $0x618] sm:$0xff] %v4882_v19 }
 0x884   : > { %v4629_v21 = vpop.f32.mrf.mxu0  ;;  %v4886_v22 = vpop.f32.mrf.mxu1 }
 0x885   : > { %5649 = vst [vmem:[%s6536_s6 + $0x620] sm:$0xff] %v4629_v21  ;;  %5651 = vst [vmem:[%s6536_s6 + $0x630] sm:$0xff] %v4886_v22 }
 0x886   : > { %v4631_v46 = vpop.f32.mrf.mxu0  ;;  %v4888_v62 = vpop.f32.mrf.mxu1 }
 0x887   : > { %5650 = vst [vmem:[%s6536_s6 + $0x628] sm:$0xff] %v4631_v46  ;;  %5652 = vst [vmem:[%s6536_s6 + $0x638] sm:$0xff] %v4888_v62 }
 0x888   : > { %v4635_v32 = vpop.f32.mrf.mxu0  ;;  %v4892_v0 = vpop.f32.mrf.mxu1 }
 0x889   : > { %5653 = vst [vmem:[%s6536_s6 + $0x640] sm:$0xff] %v4635_v32  ;;  %5655 = vst [vmem:[%s6536_s6 + $0x650] sm:$0xff] %v4892_v0 }
 0x88a   : > { %v4637_v39 = vpop.f32.mrf.mxu0  ;;  %v4894_v57 = vpop.f32.mrf.mxu1 }
 0x88b   : > { %5654 = vst [vmem:[%s6536_s6 + $0x648] sm:$0xff] %v4637_v39  ;;  %5656 = vst [vmem:[%s6536_s6 + $0x658] sm:$0xff] %v4894_v57 }
 0x88c   : > { %v4641_v27 = vpop.f32.mrf.mxu0  ;;  %v4898_v3 = vpop.f32.mrf.mxu1 }
 0x88d   : > { %5657 = vst [vmem:[%s6536_s6 + $0x660] sm:$0xff] %v4641_v27  ;;  %5659 = vst [vmem:[%s6536_s6 + $0x670] sm:$0xff] %v4898_v3 }
 0x88e   : > { %v4643_v11 = vpop.f32.mrf.mxu0  ;;  %v4900_v24 = vpop.f32.mrf.mxu1 }
 0x88f   : > { %5658 = vst [vmem:[%s6536_s6 + $0x668] sm:$0xff] %v4643_v11  ;;  %5660 = vst [vmem:[%s6536_s6 + $0x678] sm:$0xff] %v4900_v24 }
 0x890   : > { %v4647_v34 = vpop.f32.mrf.mxu0  ;;  %v4904_v48 = vpop.f32.mrf.mxu1 }
 0x891   : > { %5661 = vst [vmem:[%s6536_s6 + $0x680] sm:$0xff] %v4647_v34  ;;  %5663 = vst [vmem:[%s6536_s6 + $0x690] sm:$0xff] %v4904_v48 }
 0x892   : > { %v4649_v12 = vpop.f32.mrf.mxu0  ;;  %v4906_v36 = vpop.f32.mrf.mxu1 }
 0x893   : > { %5662 = vst [vmem:[%s6536_s6 + $0x688] sm:$0xff] %v4649_v12  ;;  %5664 = vst [vmem:[%s6536_s6 + $0x698] sm:$0xff] %v4906_v36 }
 0x894   : > { %v4653_v33 = vpop.f32.mrf.mxu0  ;;  %v4910_v15 = vpop.f32.mrf.mxu1 }
 0x895   : > { %5665 = vst [vmem:[%s6536_s6 + $0x6a0] sm:$0xff] %v4653_v33  ;;  %5667 = vst [vmem:[%s6536_s6 + $0x6b0] sm:$0xff] %v4910_v15 }
 0x896   : > { %v4655_v7 = vpop.f32.mrf.mxu0  ;;  %v4912_v26 = vpop.f32.mrf.mxu1 }
 0x897   : > { %5666 = vst [vmem:[%s6536_s6 + $0x6a8] sm:$0xff] %v4655_v7  ;;  %5668 = vst [vmem:[%s6536_s6 + $0x6b8] sm:$0xff] %v4912_v26 }
 0x898   : > { %v4659_v16 = vpop.f32.mrf.mxu0  ;;  %v4916_v1 = vpop.f32.mrf.mxu1 }
 0x899   : > { %5669 = vst [vmem:[%s6536_s6 + $0x6c0] sm:$0xff] %v4659_v16  ;;  %5671 = vst [vmem:[%s6536_s6 + $0x6d0] sm:$0xff] %v4916_v1 }
 0x89a   : > { %v4661_v10 = vpop.f32.mrf.mxu0  ;;  %v4918_v8 = vpop.f32.mrf.mxu1 }
 0x89b   : > { %5670 = vst [vmem:[%s6536_s6 + $0x6c8] sm:$0xff] %v4661_v10  ;;  %5672 = vst [vmem:[%s6536_s6 + $0x6d8] sm:$0xff] %v4918_v8 }
 0x89c   : > { %v4665_v55 = vpop.f32.mrf.mxu0  ;;  %v4922_v6 = vpop.f32.mrf.mxu1 }
 0x89d   : > { %5673 = vst [vmem:[%s6536_s6 + $0x6e0] sm:$0xff] %v4665_v55  ;;  %5675 = vst [vmem:[%s6536_s6 + $0x6f0] sm:$0xff] %v4922_v6 }
 0x89e   : > { %v4667_v18 = vpop.f32.mrf.mxu0  ;;  %v4924_v60 = vpop.f32.mrf.mxu1 }
 0x89f   : > { %5674 = vst [vmem:[%s6536_s6 + $0x6e8] sm:$0xff] %v4667_v18  ;;  %5676 = vst [vmem:[%s6536_s6 + $0x6f8] sm:$0xff] %v4924_v60 }
 0x8a0   : > { %v4671_v29 = vpop.f32.mrf.mxu0  ;;  %v4928_v43 = vpop.f32.mrf.mxu1 }
 0x8a1   : > { %5677 = vst [vmem:[%s6536_s6 + $0x700] sm:$0xff] %v4671_v29  ;;  %5679 = vst [vmem:[%s6536_s6 + $0x710] sm:$0xff] %v4928_v43 }
 0x8a2   : > { %v4673_v50 = vpop.f32.mrf.mxu0  ;;  %v4930_v53 = vpop.f32.mrf.mxu1 }
 0x8a3   : > { %5678 = vst [vmem:[%s6536_s6 + $0x708] sm:$0xff] %v4673_v50  ;;  %5680 = vst [vmem:[%s6536_s6 + $0x718] sm:$0xff] %v4930_v53 }
 0x8a4   : > { %v4677_v30 = vpop.f32.mrf.mxu0  ;;  %v4934_v28 = vpop.f32.mrf.mxu1 }
 0x8a5   : > { %5681 = vst [vmem:[%s6536_s6 + $0x720] sm:$0xff] %v4677_v30  ;;  %5683 = vst [vmem:[%s6536_s6 + $0x730] sm:$0xff] %v4934_v28 }
 0x8a6   : > { %v4679_v41 = vpop.f32.mrf.mxu0  ;;  %v4936_v47 = vpop.f32.mrf.mxu1 }
 0x8a7   : > { %5682 = vst [vmem:[%s6536_s6 + $0x728] sm:$0xff] %v4679_v41  ;;  %5684 = vst [vmem:[%s6536_s6 + $0x738] sm:$0xff] %v4936_v47 }
 0x8a8   : > { %v4683_v40 = vpop.f32.mrf.mxu0  ;;  %v4940_v52 = vpop.f32.mrf.mxu1 }
 0x8a9   : > { %5685 = vst [vmem:[%s6536_s6 + $0x740] sm:$0xff] %v4683_v40  ;;  %5687 = vst [vmem:[%s6536_s6 + $0x750] sm:$0xff] %v4940_v52 }
 0x8aa   : > { %v4685_v25 = vpop.f32.mrf.mxu0  ;;  %v4942_v23 = vpop.f32.mrf.mxu1 }
 0x8ab   : > { %5686 = vst [vmem:[%s6536_s6 + $0x748] sm:$0xff] %v4685_v25  ;;  %5688 = vst [vmem:[%s6536_s6 + $0x758] sm:$0xff] %v4942_v23 }
 0x8ac   : > { %v4689_v37 = vpop.f32.mrf.mxu0  ;;  %v4946_v5 = vpop.f32.mrf.mxu1 }
 0x8ad   : > { %5689 = vst [vmem:[%s6536_s6 + $0x760] sm:$0xff] %v4689_v37  ;;  %5691 = vst [vmem:[%s6536_s6 + $0x770] sm:$0xff] %v4946_v5 }
 0x8ae   : > { %v4691_v14 = vpop.f32.mrf.mxu0  ;;  %v4948_v35 = vpop.f32.mrf.mxu1 }
 0x8af   : > { %5690 = vst [vmem:[%s6536_s6 + $0x768] sm:$0xff] %v4691_v14  ;;  %5692 = vst [vmem:[%s6536_s6 + $0x778] sm:$0xff] %v4948_v35 }
 0x8b0   : > { %v4695_v2 = vpop.f32.mrf.mxu0  ;;  %v4952_v20 = vpop.f32.mrf.mxu1 }
 0x8b1   : > { %5693 = vst [vmem:[%s6536_s6 + $0x780] sm:$0xff] %v4695_v2  ;;  %5695 = vst [vmem:[%s6536_s6 + $0x790] sm:$0xff] %v4952_v20 }
 0x8b2   : > { %v4697_v51 = vpop.f32.mrf.mxu0  ;;  %v4954_v63 = vpop.f32.mrf.mxu1 }
 0x8b3   : > { %5694 = vst [vmem:[%s6536_s6 + $0x788] sm:$0xff] %v4697_v51  ;;  %5696 = vst [vmem:[%s6536_s6 + $0x798] sm:$0xff] %v4954_v63 }
 0x8b4   : > { %v4701_v58 = vpop.f32.mrf.mxu0  ;;  %v4958_v13 = vpop.f32.mrf.mxu1 }
 0x8b5   : > { %5697 = vst [vmem:[%s6536_s6 + $0x7a0] sm:$0xff] %v4701_v58  ;;  %5699 = vst [vmem:[%s6536_s6 + $0x7b0] sm:$0xff] %v4958_v13 }
 0x8b6   : > { %v4703_v54 = vpop.f32.mrf.mxu0  ;;  %v4960_v42 = vpop.f32.mrf.mxu1 }
 0x8b7   : > { %5698 = vst [vmem:[%s6536_s6 + $0x7a8] sm:$0xff] %v4703_v54  ;;  %5700 = vst [vmem:[%s6536_s6 + $0x7b8] sm:$0xff] %v4960_v42 }
 0x8b8   : > { %v4707_v17 = vpop.f32.mrf.mxu0  ;;  %v4964_v56 = vpop.f32.mrf.mxu1 }
 0x8b9   : > { %5701 = vst [vmem:[%s6536_s6 + $0x7c0] sm:$0xff] %v4707_v17  ;;  %5703 = vst [vmem:[%s6536_s6 + $0x7d0] sm:$0xff] %v4964_v56 }
 0x8ba   : > { %v4709_v31 = vpop.f32.mrf.mxu0  ;;  %v4966_v61 = vpop.f32.mrf.mxu1 }
 0x8bb   : > { %5702 = vst [vmem:[%s6536_s6 + $0x7c8] sm:$0xff] %v4709_v31  ;;  %5704 = vst [vmem:[%s6536_s6 + $0x7d8] sm:$0xff] %v4966_v61 }
 0x8bc   : > { %v4713_v38 = vpop.f32.mrf.mxu0  ;;  %v4970_v4 = vpop.f32.mrf.mxu1 }
 0x8bd   : > { %5705 = vst [vmem:[%s6536_s6 + $0x7e0] sm:$0xff] %v4713_v38  ;;  %5707 = vst [vmem:[%s6536_s6 + $0x7f0] sm:$0xff] %v4970_v4 }
 0x8be   : > { %v4715_v49 = vpop.f32.mrf.mxu0  ;;  %v4972_v44 = vpop.f32.mrf.mxu1 }
 0x8bf   : > { %5706 = vst [vmem:[%s6536_s6 + $0x7e8] sm:$0xff] %v4715_v49  ;;  %5708 = vst [vmem:[%s6536_s6 + $0x7f8] sm:$0xff] %v4972_v44 }
 0x8c0   : > { %s10178_s5 = sld [smem:[#allocation23_spill]]  ;;  %s5718_s27 = sshll.u32 %s6243_s19, 7 }
 0x8c1   : > { %s5712_s16 = sshll.u32 %s6247_s20, 9  ;;  %s5259_s10 = sshll.u32 %s6536_s6, 4  ;;  %s5260_s10 = int_to_ptr.vmem [resolvable:$true] %s5259_s10 }
 0x8c2   : > { %s5246_s30 = sadd.s32 %s5718_s27, %s5712_s16  ;;  %s10179_s8 = sld [smem:[#allocation129_spill]] }
 0x8c3   : > { %s5713_s2 = sshll.u32 %s5246_s30, 7  ;;  %s6288_s4 = smov 16384  }
 0x8c4   : > { %s6289_s0 = smov 32768   ;;  %s6290_s1 = smov 32  }
 0x8c5   : > { %s6291_s19 = smov 512   ;;  %s6292_s20 = smov 131072  }
 0x8c6   : > { %p10180_p6 = scmp.ne.s32.totalorder %s10178_s5, 0  ;;  %s6293_s6 = smov 0  }
 0x8c8   : > { %s5248_s3 = scalar_lea.hbm %s10179_s8, %s5713_s2  ;;  %5895 = sst [smem:[#allocation17]] (%p10180_p6), %s6288_s4 }
 0x8c9   : > { %5896 = sst [smem:[#allocation17 + $0x1]] (%p10180_p6), %s6289_s0 }
 0x8ca   : > { %5897 = sst [smem:[#allocation17 + $0x2]] (%p10180_p6), %s6290_s1 }
 0x8cb   : > { %5898 = sst [smem:[#allocation17 + $0x3]] (%p10180_p6), %s6291_s19 }
 0x8cc   : > { %5899 = sst [smem:[#allocation17 + $0x4]] (%p10180_p6), %s6291_s19 }
 0x8cd   : > { %5900 = sst [smem:[#allocation17 + $0x5]] (%p10180_p6), %s6290_s1 }
 0x8ce   : > { %5901 = dma.general (%p10180_p6), %s5260_s10, 32768, %s5248_s3, %s5233_s12, %s6292_s20, [#allocation17], %s6293_s6, 0  }
 0x8cf PF: > { %s10181_s27 = sld [smem:[#allocation22_spill]]  ;;  %p5928_p4 = scmp.ge.s32.totalorder %s6259_s23, 2 }
 0x8d0   : > { %s10182_s16 = sld [smem:[#allocation24_spill]] }
 0x8d5   : > { %s5287_s0 = sand.u32 1, %s10181_s27  }
 0x8d6   : > { %p10183_p1 = scmp.ne.s32.totalorder %s10182_s16, 0  ;;  %s5288_s30 = scalar_lea.sflag [#allocation9], %s5287_s0 }
 0x8d8   : > { %p5918_p5 = pnand %p5928_p4, %p10183_p1 }
 0x8da   : > { %p5919_p8 = pneg %p5918_p5 }
 0x8dc   : > { %6214 = dma.done.wait (%p5919_p8), %s5288_s30, 32768  }
 0x8dd   : > { %6216 = vsyncadd (%p5919_p8), %s5288_s30, 4294934528  ;;  %s28_s23 = sadd.s32 1, %s6259_s23   ;;  %s10184_s1 = sld [smem:[#allocation25_spill]] }
 0x8de   : > { %p25_p9 = scmp.ge.s32.totalorder %s28_s23, 6   ;;  %s10185_s12 = smov %s10201_s13 }
 0x8df   : > { %s10186_s13 = smov %s6223_s14  ;;  %s10187_s14 = smov %s6227_s15 }
 0x8e0   : > { %s10188_s15 = smov %s6494_s28  ;;  %s10189_s16 = smov %s6235_s17 }
 0x8e1   : > { %s10190_s17 = smov %s6239_s18  ;;  %s10191_s18 = smov %s6487_s24 }
 0x8e2   : > { %s10192_s19 = smov %s6251_s21  ;;  %s10193_s20 = smov %s6255_s22 }
 0x8e3   : > { %s10194_s21 = smov %s10184_s1  ;;  %s10195_s22 = smov %s10185_s12 }
 0x8e4   :  { %27 = sbr.rel (!%p25_p9) target bundleno = 22 (0x16), region = 132 }
 0x8e9   :  { %5293 = vsyncpa [#allocation8], 1 }
 0x8ea   :  { %5295 = vsyncpa [#allocation8 + $0x1], 1 }
 0x8eb   :  { %5296 = vsyncpa [#allocation11], 1 }
 0x8ec   :  { %5297 = vsyncpa [#allocation14], 1 }
 0x8ed   :  { %5299 = vsyncpa [#allocation14 + $0x1], 1 }
 0x8ee   :  { %5300 = vsyncpa [#allocation9], 1 }
 0x8ef   :  { %5302 = vsyncpa [#allocation9 + $0x1], 1 }

</bundles_post_ra>
